<compile_context>
chip_gen: v6e
topology: v6e:2x2x1
jax: 0.10.0
libtpu: 0.0.40
codegen_flags: <defaults>
</compile_context>

<pallas_src>
import math
import functools

import jax
import jax.numpy as jnp
from jax.experimental import pallas as pl
from jax.experimental.pallas import tpu as pltpu

_MASK_VALUE = -1e30            # finite large-negative mask value (NaN-safe)
_LOG2_E = 1.4426950408889634   # log2(e)


def _flash_fwd_kernel(q_ref, k_ref, v_ref, o_ref,
                      m_sc, l_sc, acc_sc,
                      *, scale, causal, block_q, block_k, num_heads, head_dim):
    """Online-softmax (base-2) flash attention forward, heads fused in lanes.

    Grid: (B, S//block_q, S//block_k); kv axis (last) is the reduction axis.
    Refs (H*D fused in the last / lane dim):
      q_ref, o_ref: (1, block_q, H*D)   k_ref, v_ref: (1, block_k, H*D)
    Scratch (persist across the kv axis):
      m_sc, l_sc: (H, block_q, 1) f32 ; acc_sc: (H, block_q, head_dim) f32
    """
    q_blk = pl.program_id(1)
    kv_blk = pl.program_id(2)

    @pl.when(kv_blk == 0)
    def _init():
        m_sc[...] = jnp.full_like(m_sc, -jnp.inf)
        l_sc[...] = jnp.zeros_like(l_sc)
        acc_sc[...] = jnp.zeros_like(acc_sc)

    def compute(apply_mask):
        # Fold scale*log2(e) into Q once per step (bf16, block_q x H*D elems):
        # much cheaper than scaling the f32 (block_q x block_k) score tile per
        # head, and the exp2 softmax removes exp's hidden x log2(e) multiply.
        q_all = q_ref[0] * jnp.asarray(scale * _LOG2_E, dtype=q_ref.dtype)
        k_all = k_ref[0]   # (block_k, H*D) bf16
        v_all = v_ref[0]   # (block_k, H*D) bf16

        if apply_mask:
            row = q_blk * block_q + jax.lax.broadcasted_iota(
                jnp.int32, (block_q, block_k), 0)
            col = kv_blk * block_k + jax.lax.broadcasted_iota(
                jnp.int32, (block_q, block_k), 1)
            causal_mask = col <= row   # hoisted out of the head loop

        # Static head loop is fine for small H (<= 4); for larger H a head grid
        # axis or lax.fori_loop would bound live ranges / vreg pressure.
        for h in range(num_heads):
            lo = h * head_dim
            hi = lo + head_dim
            q_h = q_all[:, lo:hi]      # (block_q, D) bf16 (pre-scaled)
            k_h = k_all[:, lo:hi]      # (block_k, D) bf16
            v_h = v_all[:, lo:hi]      # (block_k, D) bf16

            # bf16 MXU matmul, f32 accumulation; contract the shared last dim
            # directly (no explicit K transpose).  t is in the log2 domain.
            t = jax.lax.dot_general(
                q_h, k_h, (((1,), (1,)), ((), ())),
                preferred_element_type=jnp.float32)          # (bq, bk) f32
            if apply_mask:
                t = jnp.where(causal_mask, t, _MASK_VALUE)

            m_prev = m_sc[h]                                  # (bq, 1)
            m_new = jnp.maximum(m_prev, t.max(axis=-1, keepdims=True))
            alpha = jnp.exp2(m_prev - m_new)                  # (bq, 1)
            p = jnp.exp2(t - m_new)                           # (bq, bk) f32

            l_sc[h] = alpha * l_sc[h] + p.sum(axis=-1, keepdims=True)
            acc_sc[h] = alpha * acc_sc[h] + jnp.dot(
                p.astype(v_h.dtype), v_h,                     # bf16 MXU feed
                preferred_element_type=jnp.float32)
            m_sc[h] = m_new

    if causal:
        q_start = q_blk * block_q
        kv_start = kv_blk * block_k
        # not_skipped: block has at least one col <= some row (intersects or is
        # below the diagonal).  fully_unmasked: every col <= every row.
        not_skipped = kv_start < q_start + block_q
        fully_unmasked = kv_start + block_k - 1 <= q_start

        @pl.when(jnp.logical_and(not_skipped, fully_unmasked))
        def _():
            compute(apply_mask=False)       # fast path: no iota/compare/select

        @pl.when(jnp.logical_and(not_skipped, jnp.logical_not(fully_unmasked)))
        def _():
            compute(apply_mask=True)        # diagonal-intersecting blocks only
    else:
        compute(apply_mask=False)

    @pl.when(kv_blk == pl.num_programs(2) - 1)
    def _finalize():
        outs = []
        for h in range(num_heads):
            inv_l = pl.reciprocal(l_sc[h])   # exact; once per q block
            outs.append((acc_sc[h] * inv_l).astype(o_ref.dtype))
        if num_heads == 1:
            o_ref[0] = outs[0]
        else:
            # Single lane-dense (block_q, H*D) store.
            o_ref[0] = jnp.concatenate(outs, axis=-1)


def flash_self_attention(q, k, v, *, causal=False, softmax_scale=None,
                         block_q=128, block_k=512):
    """q, k, v: (B, S, H, D) bf16/fp16.  Returns (B, S, H, D), input dtype."""
    orig_dtype = q.dtype
    assert orig_dtype in (jnp.bfloat16, jnp.float16), "fp16/bf16 inputs only"
    B, S, H, D = q.shape
    assert k.shape == (B, S, H, D) and v.shape == (B, S, H, D)

    if orig_dtype == jnp.float16:
        # TPU MXU/VPU path is bf16; cast at the boundary, restore on output.
        q = q.astype(jnp.bfloat16)
        k = k.astype(jnp.bfloat16)
        v = v.astype(jnp.bfloat16)

    scale = softmax_scale if softmax_scale is not None else 1.0 / math.sqrt(D)

    block_q = min(block_q, S)
    while S % block_q:
        block_q //= 2
    block_k = min(block_k, S)
    while S % block_k:
        block_k //= 2
    assert S % block_q == 0 and S % block_k == 0

    HD = H * D
    # Contiguous (free) reshape: (B, S, H, D) -> (B, S, H*D).  No transposes.
    qf = q.reshape(B, S, HD)
    kf = k.reshape(B, S, HD)
    vf = v.reshape(B, S, HD)

    kernel = functools.partial(
        _flash_fwd_kernel, scale=scale, causal=causal,
        block_q=block_q, block_k=block_k, num_heads=H, head_dim=D)

    grid = (B, S // block_q, S // block_k)

    def q_index_map(b, qi, ki):
        return (b, qi, 0)

    if causal:
        def kv_index_map(b, qi, ki):
            # Clamp to the last useful kv block so skipped steps issue no DMA.
            last_ki = ((qi + 1) * block_q - 1) // block_k
            return (b, jnp.minimum(ki, last_ki), 0)
    else:
        def kv_index_map(b, qi, ki):
            return (b, ki, 0)

    out = pl.pallas_call(
        kernel,
        out_shape=jax.ShapeDtypeStruct((B, S, HD), jnp.bfloat16),
        grid_spec=pltpu.PrefetchScalarGridSpec(
            num_scalar_prefetch=0,
            grid=grid,
            in_specs=[
                pl.BlockSpec((1, block_q, HD), q_index_map),
                pl.BlockSpec((1, block_k, HD), kv_index_map),
                pl.BlockSpec((1, block_k, HD), kv_index_map),
            ],
            out_specs=pl.BlockSpec((1, block_q, HD), q_index_map),
            scratch_shapes=[
                pltpu.VMEM((H, block_q, 1), jnp.float32),   # running max m
                pltpu.VMEM((H, block_q, 1), jnp.float32),   # running denom l
                pltpu.VMEM((H, block_q, D), jnp.float32),   # output accumulator
            ],
        ),
        compiler_params=pltpu.CompilerParams(
            dimension_semantics=("parallel", "parallel", "arbitrary")),
    )(qf, kf, vf)

    # Contiguous (free) reshape back: (B, S, H*D) -> (B, S, H, D).
    return out.reshape(B, S, H, D).astype(orig_dtype)


def _reference_attention(q, k, v, *, causal=False, softmax_scale=None):
    B, S, H, D = q.shape
    scale = softmax_scale if softmax_scale is not None else 1.0 / math.sqrt(D)
    qf = q.astype(jnp.float32)
    kf = k.astype(jnp.float32)
    vf = v.astype(jnp.float32)
    s = jnp.einsum("bqhd,bkhd->bhqk", qf, kf) * scale
    if causal:
        mask = jnp.tril(jnp.ones((S, S), dtype=bool))
        s = jnp.where(mask[None, None], s, -jnp.inf)
    p = jax.nn.softmax(s, axis=-1)
    o = jnp.einsum("bhqk,bkhd->bqhd", p, vf)
    return o  # f32 reference


if __name__ == "__main__":
    # Small but TPU-friendly shapes: (B, S, H, D) = (2, 512, 2, 64)
    # -> H*D = 128 (lane-dense); default blocks (128, 512) give grid (2, 4, 1).
    B, S, H, D = 2, 512, 2, 64
    key = jax.random.PRNGKey(0)
    kq, kk, kv = jax.random.split(key, 3)
    q = jax.random.normal(kq, (B, S, H, D), dtype=jnp.bfloat16)
    k = jax.random.normal(kk, (B, S, H, D), dtype=jnp.bfloat16)
    v = jax.random.normal(kv, (B, S, H, D), dtype=jnp.bfloat16)

    # Module defaults: causal=False, softmax_scale=None (-> 1/sqrt(D)), dropout 0.0
    out = flash_self_attention(q, k, v, causal=False, softmax_scale=None)
    out = jax.block_until_ready(out)
    assert out.shape == (B, S, H, D) and out.dtype == q.dtype
    ref = _reference_attention(q, k, v, causal=False, softmax_scale=None)
    max_err = jnp.max(jnp.abs(out.astype(jnp.float32) - ref))
    assert max_err < 3e-2, f"non-causal mismatch vs reference: {max_err}"

    # Causal with default blocks (single kv block -> masked path only).
    out_c = flash_self_attention(q, k, v, causal=True, softmax_scale=None)
    out_c = jax.block_until_ready(out_c)
    ref_c = _reference_attention(q, k, v, causal=True, softmax_scale=None)
    max_err_c = jnp.max(jnp.abs(out_c.astype(jnp.float32) - ref_c))
    assert max_err_c < 3e-2, f"causal mismatch vs reference: {max_err_c}"

    # Causal with small blocks: exercises all three kv-block paths
    # (skip / unmasked fast path / masked) and the clamped K/V index_map.
    out_c2 = flash_self_attention(q, k, v, causal=True, softmax_scale=None,
                                  block_q=128, block_k=128)
    out_c2 = jax.block_until_ready(out_c2)
    max_err_c2 = jnp.max(jnp.abs(out_c2.astype(jnp.float32) - ref_c))
    assert max_err_c2 < 3e-2, f"causal(small blocks) mismatch: {max_err_c2}"

    print("KERNEL_OK")
</pallas_src>

<mosaic_0001>
module attributes {stable_mosaic.version = 11 : i64} {
  func.func @_flash_fwd_kernel(%arg0: i32, %arg1: i32, %arg2: i32, %arg3: memref<1x128x128xbf16, #tpu.memory_space<vmem>>, %arg4: memref<1x512x128xbf16, #tpu.memory_space<vmem>>, %arg5: memref<1x512x128xbf16, #tpu.memory_space<vmem>>, %arg6: memref<1x128x128xbf16, #tpu.memory_space<vmem>>, %arg7: memref<2x128x1xf32, #tpu.memory_space<vmem>>, %arg8: memref<2x128x1xf32, #tpu.memory_space<vmem>>, %arg9: memref<2x128x64xf32, #tpu.memory_space<vmem>>) attributes {dimension_semantics = [#tpu.dimension_semantics<parallel>, #tpu.dimension_semantics<parallel>, #tpu.dimension_semantics<arbitrary>], iteration_bounds = array<i64: 2, 4, 1>, scalar_prefetch = 0 : i64, scratch_operands = 3 : i64, tpu.core_type = #tpu.core_type<tc>, window_params = [{transform_indices = @transform_0, window_bounds = array<i64: 1, 128, 128>}, {transform_indices = @transform_1, window_bounds = array<i64: 1, 512, 128>}, {transform_indices = @transform_2, window_bounds = array<i64: 1, 512, 128>}, {transform_indices = @transform_3, window_bounds = array<i64: 1, 128, 128>}]} {
    %c0_i32 = arith.constant 0 : i32
    %0 = arith.cmpi eq, %arg2, %c0_i32 : i32
    %1 = arith.extui %0 : i1 to i32
    %c0_i32_0 = arith.constant 0 : i32
    %2 = arith.cmpi ne, %1, %c0_i32_0 : i32
    scf.if %2 {
      %cst_54 = arith.constant 0xFF800000 : f32
      %86 = vector.broadcast %cst_54 : f32 to vector<2x128x1xf32>
      %c0_55 = arith.constant 0 : index
      %c0_56 = arith.constant 0 : index
      %c0_57 = arith.constant 0 : index
      %87 = vector.load %arg7[%c0_55, %c0_56, %c0_57] : memref<2x128x1xf32, #tpu.memory_space<vmem>>, vector<2x128x1xf32>
      tpu.vector_store %arg7[%c0_55, %c0_56, %c0_57], %86 {strides = array<i32>} : memref<2x128x1xf32, #tpu.memory_space<vmem>>, vector<2x128x1xf32>,
      %cst_58 = arith.constant 0.000000e+00 : f32
      %88 = vector.broadcast %cst_58 : f32 to vector<2x128x1xf32>
      %c0_59 = arith.constant 0 : index
      %c0_60 = arith.constant 0 : index
      %c0_61 = arith.constant 0 : index
      %89 = vector.load %arg8[%c0_59, %c0_60, %c0_61] : memref<2x128x1xf32, #tpu.memory_space<vmem>>, vector<2x128x1xf32>
      tpu.vector_store %arg8[%c0_59, %c0_60, %c0_61], %88 {strides = array<i32>} : memref<2x128x1xf32, #tpu.memory_space<vmem>>, vector<2x128x1xf32>,
      %cst_62 = arith.constant 0.000000e+00 : f32
      %90 = vector.broadcast %cst_62 : f32 to vector<2x128x64xf32>
      %c0_63 = arith.constant 0 : index
      %c0_64 = arith.constant 0 : index
      %c0_65 = arith.constant 0 : index
      %91 = vector.load %arg9[%c0_63, %c0_64, %c0_65] : memref<2x128x64xf32, #tpu.memory_space<vmem>>, vector<2x128x64xf32>
      tpu.vector_store %arg9[%c0_63, %c0_64, %c0_65], %90 {strides = array<i32>} : memref<2x128x64xf32, #tpu.memory_space<vmem>>, vector<2x128x64xf32>,
    } else {
    }
    %c0 = arith.constant 0 : index
    %c0_1 = arith.constant 0 : index
    %c0_2 = arith.constant 0 : index
    %3 = vector.load %arg3[%c0, %c0_1, %c0_2] : memref<1x128x128xbf16, #tpu.memory_space<vmem>>, vector<1x128x128xbf16>
    %4 = vector.shape_cast %3 : vector<1x128x128xbf16> to vector<128x128xbf16>
    %cst = arith.constant 1.806640e-01 : bf16
    %5 = vector.broadcast %cst : bf16 to vector<128x128xbf16>
    %6 = arith.mulf %4, %5 : vector<128x128xbf16>
    %c0_3 = arith.constant 0 : index
    %c0_4 = arith.constant 0 : index
    %c0_5 = arith.constant 0 : index
    %7 = vector.load %arg4[%c0_3, %c0_4, %c0_5] : memref<1x512x128xbf16, #tpu.memory_space<vmem>>, vector<1x512x128xbf16>
    %8 = vector.shape_cast %7 : vector<1x512x128xbf16> to vector<512x128xbf16>
    %c0_6 = arith.constant 0 : index
    %c0_7 = arith.constant 0 : index
    %c0_8 = arith.constant 0 : index
    %9 = vector.load %arg5[%c0_6, %c0_7, %c0_8] : memref<1x512x128xbf16, #tpu.memory_space<vmem>>, vector<1x512x128xbf16>
    %10 = vector.shape_cast %9 : vector<1x512x128xbf16> to vector<512x128xbf16>
    %11 = vector.extract_strided_slice %6 {offsets = [0, 0], sizes = [128, 64], strides = [1, 1]} : vector<128x128xbf16> to vector<128x64xbf16>
    %12 = vector.extract_strided_slice %8 {offsets = [0, 0], sizes = [512, 64], strides = [1, 1]} : vector<512x128xbf16> to vector<512x64xbf16>
    %13 = vector.extract_strided_slice %10 {offsets = [0, 0], sizes = [512, 64], strides = [1, 1]} : vector<512x128xbf16> to vector<512x64xbf16>
    %cst_9 = arith.constant dense<0.000000e+00> : vector<128x512xf32>
    %14 = tpu.matmul %11, %12, %cst_9 {dimension_numbers = #tpu.dot_dimension_numbers<[1], [1], [0], [0], [0, 0, 1, 0], [], []>} : vector<128x64xbf16>, vector<512x64xbf16>, vector<128x512xf32> -> vector<128x512xf32>
    %c0_10 = arith.constant 0 : index
    %c0_11 = arith.constant 0 : index
    %c0_12 = arith.constant 0 : index
    %15 = vector.load %arg7[%c0_10, %c0_11, %c0_12] : memref<2x128x1xf32, #tpu.memory_space<vmem>>, vector<1x128x1xf32>
    %16 = vector.shape_cast %15 : vector<1x128x1xf32> to vector<128x1xf32>
    %cst_13 = arith.constant dense<0xFF800000> : vector<128xf32>
    %17 = vector.multi_reduction <maximumf>, %14, %cst_13 [1] : vector<128x512xf32> to vector<128xf32>
    %18 = vector.shape_cast %17 : vector<128xf32> to vector<128x1xf32>
    %19 = arith.maximumf %16, %18 : vector<128x1xf32>
    %20 = arith.subf %16, %19 : vector<128x1xf32>
    %21 = math.exp2 %20 : vector<128x1xf32>
    %22 = vector.broadcast %19 : vector<128x1xf32> to vector<128x512xf32>
    %23 = arith.subf %14, %22 : vector<128x512xf32>
    %24 = math.exp2 %23 : vector<128x512xf32>
    %c0_14 = arith.constant 0 : index
    %c0_15 = arith.constant 0 : index
    %c0_16 = arith.constant 0 : index
    %25 = vector.load %arg8[%c0_14, %c0_15, %c0_16] : memref<2x128x1xf32, #tpu.memory_space<vmem>>, vector<1x128x1xf32>
    %26 = vector.shape_cast %25 : vector<1x128x1xf32> to vector<128x1xf32>
    %27 = arith.mulf %21, %26 : vector<128x1xf32>
    %cst_17 = arith.constant dense<0.000000e+00> : vector<128xf32>
    %28 = vector.multi_reduction <add>, %24, %cst_17 [1] : vector<128x512xf32> to vector<128xf32>
    %29 = vector.shape_cast %28 : vector<128xf32> to vector<128x1xf32>
    %30 = arith.addf %27, %29 : vector<128x1xf32>
    %c0_18 = arith.constant 0 : index
    %c0_19 = arith.constant 0 : index
    %c0_20 = arith.constant 0 : index
    %31 = vector.load %arg8[%c0_18, %c0_19, %c0_20] : memref<2x128x1xf32, #tpu.memory_space<vmem>>, vector<1x128x1xf32>
    %32 = vector.shape_cast %31 : vector<1x128x1xf32> to vector<128x1xf32>
    %33 = vector.shape_cast %30 : vector<128x1xf32> to vector<1x128x1xf32>
    tpu.vector_store %arg8[%c0_18, %c0_19, %c0_20], %33 {strides = array<i32>} : memref<2x128x1xf32, #tpu.memory_space<vmem>>, vector<1x128x1xf32>,
    %c0_21 = arith.constant 0 : index
    %c0_22 = arith.constant 0 : index
    %c0_23 = arith.constant 0 : index
    %34 = vector.load %arg9[%c0_21, %c0_22, %c0_23] : memref<2x128x64xf32, #tpu.memory_space<vmem>>, vector<1x128x64xf32>
    %35 = vector.shape_cast %34 : vector<1x128x64xf32> to vector<128x64xf32>
    %36 = vector.broadcast %21 : vector<128x1xf32> to vector<128x64xf32>
    %37 = arith.mulf %36, %35 : vector<128x64xf32>
    %38 = arith.truncf %24 : vector<128x512xf32> to vector<128x512xbf16>
    %cst_24 = arith.constant dense<0.000000e+00> : vector<128x64xf32>
    %39 = tpu.matmul %38, %13, %cst_24 {dimension_numbers = #tpu.dot_dimension_numbers<[1], [0], [0], [1], [0, 0, 1, 1], [], []>} : vector<128x512xbf16>, vector<512x64xbf16>, vector<128x64xf32> -> vector<128x64xf32>
    %40 = arith.addf %37, %39 : vector<128x64xf32>
    %c0_25 = arith.constant 0 : index
    %c0_26 = arith.constant 0 : index
    %c0_27 = arith.constant 0 : index
    %41 = vector.load %arg9[%c0_25, %c0_26, %c0_27] : memref<2x128x64xf32, #tpu.memory_space<vmem>>, vector<1x128x64xf32>
    %42 = vector.shape_cast %41 : vector<1x128x64xf32> to vector<128x64xf32>
    %43 = vector.shape_cast %40 : vector<128x64xf32> to vector<1x128x64xf32>
    tpu.vector_store %arg9[%c0_25, %c0_26, %c0_27], %43 {strides = array<i32>} : memref<2x128x64xf32, #tpu.memory_space<vmem>>, vector<1x128x64xf32>,
    %c0_28 = arith.constant 0 : index
    %c0_29 = arith.constant 0 : index
    %c0_30 = arith.constant 0 : index
    %44 = vector.load %arg7[%c0_28, %c0_29, %c0_30] : memref<2x128x1xf32, #tpu.memory_space<vmem>>, vector<1x128x1xf32>
    %45 = vector.shape_cast %44 : vector<1x128x1xf32> to vector<128x1xf32>
    %46 = vector.shape_cast %19 : vector<128x1xf32> to vector<1x128x1xf32>
    tpu.vector_store %arg7[%c0_28, %c0_29, %c0_30], %46 {strides = array<i32>} : memref<2x128x1xf32, #tpu.memory_space<vmem>>, vector<1x128x1xf32>,
    %47 = vector.extract_strided_slice %6 {offsets = [0, 64], sizes = [128, 64], strides = [1, 1]} : vector<128x128xbf16> to vector<128x64xbf16>
    %48 = vector.extract_strided_slice %8 {offsets = [0, 64], sizes = [512, 64], strides = [1, 1]} : vector<512x128xbf16> to vector<512x64xbf16>
    %49 = vector.extract_strided_slice %10 {offsets = [0, 64], sizes = [512, 64], strides = [1, 1]} : vector<512x128xbf16> to vector<512x64xbf16>
    %cst_31 = arith.constant dense<0.000000e+00> : vector<128x512xf32>
    %50 = tpu.matmul %47, %48, %cst_31 {dimension_numbers = #tpu.dot_dimension_numbers<[1], [1], [0], [0], [0, 0, 1, 0], [], []>} : vector<128x64xbf16>, vector<512x64xbf16>, vector<128x512xf32> -> vector<128x512xf32>
    %c1 = arith.constant 1 : index
    %c0_32 = arith.constant 0 : index
    %c0_33 = arith.constant 0 : index
    %51 = vector.load %arg7[%c1, %c0_32, %c0_33] : memref<2x128x1xf32, #tpu.memory_space<vmem>>, vector<1x128x1xf32>
    %52 = vector.shape_cast %51 : vector<1x128x1xf32> to vector<128x1xf32>
    %cst_34 = arith.constant dense<0xFF800000> : vector<128xf32>
    %53 = vector.multi_reduction <maximumf>, %50, %cst_34 [1] : vector<128x512xf32> to vector<128xf32>
    %54 = vector.shape_cast %53 : vector<128xf32> to vector<128x1xf32>
    %55 = arith.maximumf %52, %54 : vector<128x1xf32>
    %56 = arith.subf %52, %55 : vector<128x1xf32>
    %57 = math.exp2 %56 : vector<128x1xf32>
    %58 = vector.broadcast %55 : vector<128x1xf32> to vector<128x512xf32>
    %59 = arith.subf %50, %58 : vector<128x512xf32>
    %60 = math.exp2 %59 : vector<128x512xf32>
    %c1_35 = arith.constant 1 : index
    %c0_36 = arith.constant 0 : index
    %c0_37 = arith.constant 0 : index
    %61 = vector.load %arg8[%c1_35, %c0_36, %c0_37] : memref<2x128x1xf32, #tpu.memory_space<vmem>>, vector<1x128x1xf32>
    %62 = vector.shape_cast %61 : vector<1x128x1xf32> to vector<128x1xf32>
    %63 = arith.mulf %57, %62 : vector<128x1xf32>
    %cst_38 = arith.constant dense<0.000000e+00> : vector<128xf32>
    %64 = vector.multi_reduction <add>, %60, %cst_38 [1] : vector<128x512xf32> to vector<128xf32>
    %65 = vector.shape_cast %64 : vector<128xf32> to vector<128x1xf32>
    %66 = arith.addf %63, %65 : vector<128x1xf32>
    %c1_39 = arith.constant 1 : index
    %c0_40 = arith.constant 0 : index
    %c0_41 = arith.constant 0 : index
    %67 = vector.load %arg8[%c1_39, %c0_40, %c0_41] : memref<2x128x1xf32, #tpu.memory_space<vmem>>, vector<1x128x1xf32>
    %68 = vector.shape_cast %67 : vector<1x128x1xf32> to vector<128x1xf32>
    %69 = vector.shape_cast %66 : vector<128x1xf32> to vector<1x128x1xf32>
    tpu.vector_store %arg8[%c1_39, %c0_40, %c0_41], %69 {strides = array<i32>} : memref<2x128x1xf32, #tpu.memory_space<vmem>>, vector<1x128x1xf32>,
    %c1_42 = arith.constant 1 : index
    %c0_43 = arith.constant 0 : index
    %c0_44 = arith.constant 0 : index
    %70 = vector.load %arg9[%c1_42, %c0_43, %c0_44] : memref<2x128x64xf32, #tpu.memory_space<vmem>>, vector<1x128x64xf32>
    %71 = vector.shape_cast %70 : vector<1x128x64xf32> to vector<128x64xf32>
    %72 = vector.broadcast %57 : vector<128x1xf32> to vector<128x64xf32>
    %73 = arith.mulf %72, %71 : vector<128x64xf32>
    %74 = arith.truncf %60 : vector<128x512xf32> to vector<128x512xbf16>
    %cst_45 = arith.constant dense<0.000000e+00> : vector<128x64xf32>
    %75 = tpu.matmul %74, %49, %cst_45 {dimension_numbers = #tpu.dot_dimension_numbers<[1], [0], [0], [1], [0, 0, 1, 1], [], []>} : vector<128x512xbf16>, vector<512x64xbf16>, vector<128x64xf32> -> vector<128x64xf32>
    %76 = arith.addf %73, %75 : vector<128x64xf32>
    %c1_46 = arith.constant 1 : index
    %c0_47 = arith.constant 0 : index
    %c0_48 = arith.constant 0 : index
    %77 = vector.load %arg9[%c1_46, %c0_47, %c0_48] : memref<2x128x64xf32, #tpu.memory_space<vmem>>, vector<1x128x64xf32>
    %78 = vector.shape_cast %77 : vector<1x128x64xf32> to vector<128x64xf32>
    %79 = vector.shape_cast %76 : vector<128x64xf32> to vector<1x128x64xf32>
    tpu.vector_store %arg9[%c1_46, %c0_47, %c0_48], %79 {strides = array<i32>} : memref<2x128x64xf32, #tpu.memory_space<vmem>>, vector<1x128x64xf32>,
    %c1_49 = arith.constant 1 : index
    %c0_50 = arith.constant 0 : index
    %c0_51 = arith.constant 0 : index
    %80 = vector.load %arg7[%c1_49, %c0_50, %c0_51] : memref<2x128x1xf32, #tpu.memory_space<vmem>>, vector<1x128x1xf32>
    %81 = vector.shape_cast %80 : vector<1x128x1xf32> to vector<128x1xf32>
    %82 = vector.shape_cast %55 : vector<128x1xf32> to vector<1x128x1xf32>
    tpu.vector_store %arg7[%c1_49, %c0_50, %c0_51], %82 {strides = array<i32>} : memref<2x128x1xf32, #tpu.memory_space<vmem>>, vector<1x128x1xf32>,
    %c0_i32_52 = arith.constant 0 : i32
    %83 = arith.cmpi eq, %arg2, %c0_i32_52 : i32
    %84 = arith.extui %83 : i1 to i32
    %c0_i32_53 = arith.constant 0 : i32
    %85 = arith.cmpi ne, %84, %c0_i32_53 : i32
    scf.if %85 {
      %c0_54 = arith.constant 0 : index
      %c0_55 = arith.constant 0 : index
      %c0_56 = arith.constant 0 : index
      %86 = vector.load %arg8[%c0_54, %c0_55, %c0_56] : memref<2x128x1xf32, #tpu.memory_space<vmem>>, vector<1x128x1xf32>
      %87 = vector.shape_cast %86 : vector<1x128x1xf32> to vector<128x1xf32>
      %88 = tpu.reciprocal %87 : vector<128x1xf32> -> vector<128x1xf32>
      %c0_57 = arith.constant 0 : index
      %c0_58 = arith.constant 0 : index
      %c0_59 = arith.constant 0 : index
      %89 = vector.load %arg9[%c0_57, %c0_58, %c0_59] : memref<2x128x64xf32, #tpu.memory_space<vmem>>, vector<1x128x64xf32>
      %90 = vector.shape_cast %89 : vector<1x128x64xf32> to vector<128x64xf32>
      %91 = vector.broadcast %88 : vector<128x1xf32> to vector<128x64xf32>
      %92 = arith.mulf %90, %91 : vector<128x64xf32>
      %93 = arith.truncf %92 : vector<128x64xf32> to vector<128x64xbf16>
      %c1_60 = arith.constant 1 : index
      %c0_61 = arith.constant 0 : index
      %c0_62 = arith.constant 0 : index
      %94 = vector.load %arg8[%c1_60, %c0_61, %c0_62] : memref<2x128x1xf32, #tpu.memory_space<vmem>>, vector<1x128x1xf32>
      %95 = vector.shape_cast %94 : vector<1x128x1xf32> to vector<128x1xf32>
      %96 = tpu.reciprocal %95 : vector<128x1xf32> -> vector<128x1xf32>
      %c1_63 = arith.constant 1 : index
      %c0_64 = arith.constant 0 : index
      %c0_65 = arith.constant 0 : index
      %97 = vector.load %arg9[%c1_63, %c0_64, %c0_65] : memref<2x128x64xf32, #tpu.memory_space<vmem>>, vector<1x128x64xf32>
      %98 = vector.shape_cast %97 : vector<1x128x64xf32> to vector<128x64xf32>
      %99 = vector.broadcast %96 : vector<128x1xf32> to vector<128x64xf32>
      %100 = arith.mulf %98, %99 : vector<128x64xf32>
      %101 = arith.truncf %100 : vector<128x64xf32> to vector<128x64xbf16>
      %102 = tpu.concatenate %93, %101 in 1 : vector<128x64xbf16>, vector<128x64xbf16> -> vector<128x128xbf16>
      %c0_66 = arith.constant 0 : index
      %c0_67 = arith.constant 0 : index
      %c0_68 = arith.constant 0 : index
      %103 = vector.load %arg6[%c0_66, %c0_67, %c0_68] : memref<1x128x128xbf16, #tpu.memory_space<vmem>>, vector<1x128x128xbf16>
      %104 = vector.shape_cast %103 : vector<1x128x128xbf16> to vector<128x128xbf16>
      %105 = vector.shape_cast %102 : vector<128x128xbf16> to vector<1x128x128xbf16>
      tpu.vector_store %arg6[%c0_66, %c0_67, %c0_68], %105 {strides = array<i32>} : memref<1x128x128xbf16, #tpu.memory_space<vmem>>, vector<1x128x128xbf16>,
    } else {
    }
    return
  }
  func.func @transform_0(%arg0: i32, %arg1: i32, %arg2: i32) -> (i32, i32, i32) {
    %c0_i32 = arith.constant 0 : i32
    %c0_i32_0 = arith.constant 0 : i32
    return %arg0, %arg1, %c0_i32 : i32, i32, i32
  }
  func.func @transform_1(%arg0: i32, %arg1: i32, %arg2: i32) -> (i32, i32, i32) {
    %c0_i32 = arith.constant 0 : i32
    %c0_i32_0 = arith.constant 0 : i32
    return %arg0, %arg2, %c0_i32 : i32, i32, i32
  }
  func.func @transform_2(%arg0: i32, %arg1: i32, %arg2: i32) -> (i32, i32, i32) {
    %c0_i32 = arith.constant 0 : i32
    %c0_i32_0 = arith.constant 0 : i32
    return %arg0, %arg2, %c0_i32 : i32, i32, i32
  }
  func.func @transform_3(%arg0: i32, %arg1: i32, %arg2: i32) -> (i32, i32, i32) {
    %c0_i32 = arith.constant 0 : i32
    %c0_i32_0 = arith.constant 0 : i32
    return %arg0, %arg1, %c0_i32 : i32, i32, i32
  }
}

</mosaic_0001>

<bundles_post_ra>
// kernel: tpu_custom_call.1
= control target key start
LH: loop header
LB: loop body
LE: loop exit
PB: predicated region body
PF: predicated region fallthrough
CT: control target
= control target key end

     0   :  { %s8027_s0 = inlined_call_operand.hbm [shape: bf16[2,512,128], index: 0, kind: input, shape index: {}]   ;;  %s8028_s1 = inlined_call_operand.hbm [shape: bf16[2,512,128], index: 1, kind: input, shape index: {}]   ;;  %s8029_s2 = inlined_call_operand.hbm [shape: bf16[2,512,128], index: 2, kind: input, shape index: {}]   ;;  %s8030_s3 = inlined_call_operand.hbm [shape: bf16[2,512,128], index: 3, kind: output, shape index: {}]  }
   0x1   :  { %8165 = sst [smem:[#allocation97_spill]] %s8028_s1 }
   0x2   :  { %8166 = sst [smem:[#allocation98_spill]] %s8029_s2 }
   0x3   :  { %8167 = sst [smem:[#allocation99_spill]] %s8030_s3 }
   0x4   :  { %8 = vsyncpa [#allocation6], 0 }
   0x5   :  { %10 = vsyncpa [#allocation6 + $0x1], 0 }
   0x6   :  { %11 = vsyncpa [#allocation9], 0 }
   0x7   :  { %13 = vsyncpa [#allocation9 + $0x1], 0 }
   0x8   :  { %14 = vsyncpa [#allocation7], 0 }
   0x9   :  { %16 = vsyncpa [#allocation7 + $0x1], 0  ;;  %s5588_s12 = smov 0   ;;  %s5590_s13 = smov 0  }
   0xa   :  { %s5592_s14 = smov 0   ;;  %s5594_s15 = smov 0  }
   0xb   :  { %s5596_s16 = smov 0   ;;  %s5598_s17 = smov 0  }
   0xc   :  { %s5600_s18 = smov 0   ;;  %s5602_s19 = smov 0  }
   0xd   :  { %s5604_s20 = smov 0   ;;  %s5606_s21 = smov 0  }
   0xe   :  { %s5608_s22 = smov 0  }
   0xf LB: > { %8168 = sst [smem:[#allocation15_spill]] %s5519_s13  ;;  %s5642_s23 = sadd.s32 4294967295, %s5555_s22   ;;  %s5555_s22 = sphi %s5608_s22, %s22_s22   ;;  %s5551_s21 = sphi %s5606_s21, %s8490_s21   ;;  %s5547_s20 = sphi %s5604_s20, %s8489_s20   ;;  %s5543_s19 = sphi %s5602_s19, %s8488_s19   ;;  %s5539_s18 = sphi %s5600_s18, %s8487_s18   ;;  %s5535_s17 = sphi %s5598_s17, %s8486_s17   ;;  %s5531_s16 = sphi %s5596_s16, %s8485_s16   ;;  %s5527_s15 = sphi %s5594_s15, %s8484_s15   ;;  %s5523_s14 = sphi %s5592_s14, %s8483_s14   ;;  %s5519_s13 = sphi %s5590_s13, %s8482_s13   ;;  %s5515_s12 = sphi %s5588_s12, %s8479_s12  }
  0x10   : > { %8169 = sst [smem:[#allocation16_spill]] %s5527_s15  ;;  %p58_p0 = scmp.eq.s32.totalorder %s5555_s22, 0 }
  0x11   : > { %8170 = sst [smem:[#allocation17_spill]] %s5539_s18  ;;  %p64_p1 = scmp.eq.s32.totalorder %s5642_s23, 0 }
  0x12   : > { %8171 = sst [smem:[#allocation18_spill]] %s5543_s19  ;;  %p85_p2 = scmp.ne.s32.totalorder %s5523_s14, %s5519_s13 }
  0x13   : > { %p91_p3 = scmp.ne.s32.totalorder %s5519_s13, %s5515_s12  ;;  %p8032_p5 = scmp.lt.s32.totalorder %s5555_s22, 8 }
  0x14   : > { %p87_p4 = por %p85_p2, %p58_p0  ;;  %s194_s26 = sand.u32 1, %s5555_s22  }
  0x15   : > { %p5655_p6 = por %p91_p3, %p64_p1  ;;  %s196_s27 = sand.u32 1, %s5523_s14  }
  0x16   : > { %s5661_s28 = sshll.u32 %s196_s27, 8  ;;  %s4326_s29 = sshll.u32 %s5551_s21, 12 }
  0x17   : > { %s8172_s25 = scalar_select %p5655_p6, 1, 0 }
  0x18   : > { %s8174_s1 = sld [smem:[#allocation97_spill]]  ;;  %s198_s6 = scalar_lea.vmem [#allocation8], %s5661_s28 }
  0x19   : > { %8173 = sst [smem:[#allocation19_spill]] %s8172_s25  ;;  %s207_s7 = sshll.u32 %s198_s6, 4  ;;  %s208_s7 = int_to_ptr.vmem [resolvable:$true] %s207_s7 }
  0x1a   : > { %p5672_p7 = pnand %p8032_p5, %p87_p4  ;;  %s5677_s10 = scalar_lea.sflag [#allocation9], %s194_s26 }
  0x1b   : > { %s5360_s11 = scalar_lea.vmem %s208_s7, 4096  ;;  %s5557_s12 = smov [#allocation8]  }
  0x1c   : > { %p8031_p8 = pneg %p5672_p7  ;;  %p5361_p9 = scmp.ne.s32.totalorder %s208_s7, %s5360_s11 }
  0x1d   : > { %s5365_s27 = sshll.u32 %s5557_s12, 4  ;;  %s5366_s27 = int_to_ptr.vmem [resolvable:$false] %s5365_s27 }
  0x1e   : > { %s206_s5 = scalar_lea.hbm %s8174_s1, %s4326_s29  ;;  %p5363_p10 = pnand %p5361_p9, %p8031_p8 }
  0x1f   : > { %s5367_s30 = scalar_lea.vmem %s5366_s27, 8192  ;;  %p5368_p12 = scmp.lt.s32.totalorder %s208_s7, %s5366_s27 }
  0x20   : > { %p5364_p11 = pneg %p5363_p10  ;;  %p5369_p13 = scmp.lt.s32.totalorder %s5367_s30, %s5360_s11 }
  0x22   : > { %p5370_p2 = por %p5369_p13, %p5368_p12 }
  0x24   : > { %p5371_p3 = pnand %p5370_p2, %p5364_p11 }
  0x26   : > { %5374 = shalt.err (!%p5371_p3)
}
  0x27   : > { %s8033_s4 = smov 64   ;;  %s8035_s26 = smov 4  }
  0x28   : > { %4758 = dma.hbm_to_vmem [thread:$0]  (!%p5672_p7), %s206_s5, 4096, %s208_s7, %s5677_s10, %s8033_s4, %s8033_s4, %s8035_s26  }
  0x29   : > { %s8176_s2 = sld [smem:[#allocation98_spill]]  ;;  %p4195_p4 = scmp.ge.s32.totalorder %s5555_s22, 1 }
  0x2a   : > { %s221_s27 = scalar_lea.vmem [#allocation10], %s5661_s28  ;;  %p238_p9 = scmp.lt.s32.totalorder %s5555_s22, 9 }
  0x2b   : > { %s5699_s30 = sshll.u32 %s221_s27, 4  ;;  %s4182_s24 = sadd.s32 4294967294, %s5555_s22   ;;  %s5765_s30 = int_to_ptr.vmem [resolvable:$true] %s5699_s30 }
  0x2c   : > { %p5702_p10 = pnand %p4195_p4, %p238_p9  ;;  %s37_s5 = sadd.s32 1, %s5547_s20 }
  0x2d   : > { %s50_s7 = sadd.s32 1, %s5535_s17  ;;  %p39_p11 = scmp.ge.s32.totalorder %s37_s5, 4 }
  0x2e   : > { %p57_p12 = scmp.ne.s32.totalorder %s5535_s17, %s5531_s16  ;;  %p63_p13 = scmp.ne.s32.totalorder %s5531_s16, %s5527_s15 }
  0x2f   : > { %s5695_s12 = scalar_lea.hbm %s8176_s2, %s4326_s29  ;;  %p145_p2 = scmp.eq.s32.totalorder %s5642_s23, 7 }
  0x30   : > { %s8492_s5 = smov (%p39_p11, %s37_s5), 0  ;;  %s8179_s28 = sadd.s32 1, %s5551_s21 }
  0x31   : > { %8178 = sst [smem:[#allocation20_spill]] %s8492_s5  ;;  %s8494_s28 = smov (!%p39_p11, %s8179_s28), %s5551_s21 }
  0x32   : > { %s46_s29 = ssub.s32 %s5547_s20, %s8492_s5  ;;  %p5723_p3 = por %p58_p0, %p57_p12 }
  0x33   : > { %p43_p4 = scmp.ge.s32.totalorder %s8494_s28, 2  ;;  %p5729_p9 = por %p64_p1, %p63_p13 }
  0x34   : > { %p5733_p8 = por %p145_p2, %p57_p12  ;;  %p151_p11 = scmp.eq.s32.totalorder %s4182_s24, 7 }
  0x35   : > { %s8496_s28 = smov (%p43_p4, %s8494_s28), 0  ;;  %s171_s26 = sand.u32 1, %s5535_s17  }
  0x36   : > { %s8182_s27 = scalar_select %p5733_p8, 1, 0 }
  0x37   : > { %8184 = sst [smem:[#allocation22_spill]] %s8496_s28  ;;  %p5739_p5 = por %p151_p11, %p63_p13 }
  0x38   : > { %8183 = sst [smem:[#allocation21_spill]] %s8182_s27  ;;  %s45_s1 = ssub.s32 %s5551_s21, %s8496_s28 }
  0x39   : > { %s8185_s4 = scalar_select %p5739_p5, 1, 0 }
  0x3a   : > { %s47_s2 = sor.u32 %s46_s29, %s45_s1  ;;  %p76_p0 = scmp.eq.s32.totalorder %s45_s1, 0 }
  0x3b   : > { %8186 = sst [smem:[#allocation23_spill]] %s8185_s4  ;;  %p48_p1 = scmp.eq.s32.totalorder %s47_s2, 0 }
  0x3c   : > { %s4185_s5 = sshll.u32 %s171_s26, 6  ;;  %s8187_s15 = sadd.s32 1, %s5523_s14 }
  0x3d   : > { %s5749_s3 = scalar_select %p76_p0, %s5523_s14, %s8187_s15  }
  0x3e   : > { %s5752_s24 = scalar_select %p48_p1, %s5535_s17, %s50_s7  }
  0x3f   : > { %s4186_s27 = sshll.u32 %s5547_s20, 4  ;;  %s4187_s19 = sshll.u32 %s5551_s21, 6 }
  0x40   : > { %s175_s18 = scalar_lea.vmem [#allocation5], %s4185_s5  ;;  %s181_s13 = sadd.s32 %s4187_s19, %s4186_s27 }
  0x41   : > { %s184_s25 = sshll.u32 %s175_s18, 4  ;;  %s4188_s4 = sshll.u32 %s181_s13, 6  ;;  %s185_s25 = int_to_ptr.vmem [resolvable:$true] %s184_s25 }
  0x42   : > { %p8188_p12 = scmp.lt.s32.totalorder %s5555_s22, 8  ;;  %s183_s15 = scalar_lea.hbm %s8027_s0, %s4188_s4 }
  0x43   : > { %s172_s7 = scalar_lea.sflag [#allocation6], %s171_s26  ;;  %s5388_s18 = scalar_lea.vmem %s185_s25, 1024 }
  0x44   : > { %p5760_p13 = pnand %p8188_p12, %p5723_p3  ;;  %p5389_p4 = scmp.ne.s32.totalorder %s185_s25, %s5388_s18 }
  0x45   : > { %s5560_s13 = smov [#allocation5]  }
  0x46   : > { %p5377_p2 = pneg %p5760_p13  ;;  %s5393_s19 = sshll.u32 %s5560_s13, 4  ;;  %s5394_s19 = int_to_ptr.vmem [resolvable:$false] %s5393_s19 }
  0x47   : > { %s5395_s5 = scalar_lea.vmem %s5394_s19, 2048  ;;  %p5396_p3 = scmp.lt.s32.totalorder %s185_s25, %s5394_s19 }
  0x48   : > { %p5391_p11 = pnand %p5389_p4, %p5377_p2  ;;  %p5397_p1 = scmp.lt.s32.totalorder %s5395_s5, %s5388_s18 }
  0x4a   : > { %p5392_p0 = pneg %p5391_p11  ;;  %p5398_p12 = por %p5397_p1, %p5396_p3 }
  0x4c   : > { %p5399_p5 = pnand %p5398_p12, %p5392_p0 }
  0x4e   : > { %5402 = shalt.err (!%p5399_p5)
}
  0x4f   : > { %s8190_s29 = smov 4   ;;  %s8191_s4 = smov 64  }
  0x50   : > { %4755 = dma.hbm_to_vmem [thread:$0]  (!%p5760_p13), %s183_s15, 1024, %s185_s25, %s172_s7, %s8191_s4, %s8191_s4, %s8190_s29  }
  0x51   : > { %s5416_s26 = scalar_lea.vmem %s5765_s30, 4096  ;;  %p8192_p4 = pneg %p5672_p7 }
  0x52   : > { %p5417_p2 = scmp.ne.s32.totalorder %s5765_s30, %s5416_s26  ;;  %s5561_s6 = smov [#allocation10]  }
  0x53   : > { %s5421_s27 = sshll.u32 %s5561_s6, 4  ;;  %s5422_s27 = int_to_ptr.vmem [resolvable:$false] %s5421_s27 }
  0x54   : > { %p5419_p11 = pnand %p5417_p2, %p8192_p4  ;;  %s5423_s1 = scalar_lea.vmem %s5422_s27, 8192 }
  0x55   : > { %p5424_p5 = scmp.lt.s32.totalorder %s5765_s30, %s5422_s27  ;;  %p5425_p0 = scmp.lt.s32.totalorder %s5423_s1, %s5416_s26 }
  0x56   : > { %p5420_p8 = pneg %p5419_p11 }
  0x57   : > { %p5426_p3 = por %p5425_p0, %p5424_p5 }
  0x59   : > { %p5427_p1 = pnand %p5426_p3, %p5420_p8 }
  0x5b   : > { %5430 = shalt.err (!%p5427_p1)
}
  0x5c   : > { %4761 = dma.hbm_to_vmem [thread:$0]  (!%p5672_p7), %s5695_s12, 4096, %s5765_s30, %s5677_s10, %s8191_s4, %s8191_s4, %s8190_s29  }
  0x5d   : > { %242 = sbr.rel (%p5702_p10) target bundleno = 1745 (0x6d1), region = 32 }
  0x62   : > { %s5794_s25 = sand.u32 1, %s5531_s16  }
  0x63   : > { %s4196_s28 = sshll.u32 %s5794_s25, 6  ;;  %s245_s2 = scalar_lea.sflag [#allocation6], %s5794_s25 }
  0x64   : > { %s5800_s8 = scalar_lea.vmem [#allocation5], %s4196_s28 }
  0x65   : > { %5502 = dma.done.wait (%p5729_p9), %s245_s2, 1024  }
  0x66   : > { %5504 = vsyncadd (%p5729_p9), %s245_s2, 4294966272  ;;  %s8193_s9 = sld [smem:[#allocation15_spill]]  ;;  %s253_s12 = sand.u32 1, %s5642_s23  }
  0x67   : > { %s254_s7 = scalar_lea.sflag [#allocation9], %s253_s12 }
  0x6c   : > { %s255_s30 = sand.u32 1, %s8193_s9  }
  0x6d   : > { %s5808_s15 = sshll.u32 %s255_s30, 8 }
  0x6e   : > { %s5811_s18 = scalar_lea.vmem [#allocation8], %s5808_s15 }
  0x6f   : > { %5506 = dma.done.wait (%p5655_p6), %s254_s7, 8192  }
  0x70   : > { %5508 = vsyncadd (%p5655_p6), %s254_s7, 4294959104  ;;  %vm374_vm0 = vcmask 523264   ;;  %v4865_v0 = vld [vmem:[%s5811_s18 + $0x78] sm:$0xff]   ;;  %v4869_v5 = vld [vmem:[%s5811_s18 + $0x70] sm:$0xff]   ;;  %vm309_vm1 = vcmask 7168   ;;  %s5565_s23 = smov 64  }
  0x71   : > { %v4866_v1 = vld [vmem:[%s5811_s18 + $0xf8] sm:$0xff]   ;;  %4712 = vmatprep.subr.msk.bf16.mxu0 %vm374_vm0, %v4865_v0  ;;  %v4870_v7 = vld [vmem:[%s5811_s18 + $0xf0] sm:$0xff]   ;;  %v4873_v11 = vld [vmem:[%s5811_s18 + $0x68] sm:$0xff]   ;;  %s6364_s11 = scalar_lea.vmem [#allocation10], %s5808_s15  ;;  %s7921_s13 = scalar_lea.vmem [#allocation11], %s4196_s28 }
  0x72   : > { %v5821_v2 = vld [vmem:[%s5811_s18 + $0x38] sm:$0xff]   ;;  %4720 = vmatprep.subr.msk.bf16.mxu1 %vm374_vm0, %v4866_v1  ;;  %v5835_v8 = vld [vmem:[%s5811_s18 + $0x30] sm:$0xff]   ;;  %v4874_v13 = vld [vmem:[%s5811_s18 + $0xe8] sm:$0xff]   ;;  %s8471_s19 = sld [smem:[#allocation17_spill]]  ;;  %s4039_s27 = sshll.u32 %s7921_s13, 4  ;;  %s7956_s27 = int_to_ptr.vmem [resolvable:$true] %s4039_s27 }
  0x73   : > { %v5825_v3 = vld [vmem:[%s5811_s18 + $0xb8] sm:$0xff]   ;;  %v814_v4 = vsel %vm374_vm0, %v5821_v2, 0  ;;  %v5839_v9 = vld [vmem:[%s5811_s18 + $0xb0] sm:$0xff]   ;;  %v811_v10 = vsel %vm374_vm0, %v5835_v8, 0  ;;  %v5849_v14 = vld [vmem:[%s5811_s18 + $0x28] sm:$0xff]   ;;  %s8472_s5 = sld [smem:[#allocation18_spill]] }
  0x74   : > { %4329 = vmatpush3.bf16.xpose.msra.mxu0 %v814_v4  ;;  %v862_v6 = vsel %vm374_vm0, %v5825_v3, 0  ;;  %v859_v12 = vsel %vm374_vm0, %v5839_v9, 0  ;;  %v4876_v15 = vld [vmem:[%s5811_s18 + $0xa8] sm:$0xff]   ;;  %v808_v16 = vsel %vm374_vm0, %v5849_v14, 0  ;;  %v4877_v17 = vld [vmem:[%s5811_s18 + $0x60] sm:$0xff]   ;;  %v4881_v23 = vld [vmem:[%s5811_s18 + $0x58] sm:$0xff]  }
  0x75   : > { %4361 = vmatpush3.bf16.xpose.msra.mxu1 %v862_v6  ;;  %4713 = vmatprep.subr.msk.bf16.mxu0 %vm374_vm0, %v4869_v5  ;;  %v856_v18 = vsel %vm374_vm0, %v4876_v15, 0  ;;  %v4878_v19 = vld [vmem:[%s5811_s18 + $0xe0] sm:$0xff]   ;;  %v4882_v25 = vld [vmem:[%s5811_s18 + $0xd8] sm:$0xff]   ;;  %v4885_v33 = vld [vmem:[%s5811_s18 + $0x50] sm:$0xff]   ;;  %s8473_s6 = sld [smem:[#allocation21_spill]]  ;;  %s4024_s10 = scalar_lea.sflag [#allocation7], %s5794_s25 }
  0x76   : > { %4721 = vmatprep.subr.msk.bf16.mxu1 %vm374_vm0, %v4870_v7  ;;  %v4879_v20 = vld [vmem:[%s5811_s18 + $0x20] sm:$0xff]   ;;  %v4883_v26 = vld [vmem:[%s5811_s18 + $0x18] sm:$0xff]   ;;  %v4886_v35 = vld [vmem:[%s5811_s18 + $0xd0] sm:$0xff]   ;;  %s5431_s12 = scalar_lea.vmem %s7956_s27, 1024  ;;  %s5566_s30 = smov [#allocation11]  }
  0x77   : > { %v4880_v21 = vld [vmem:[%s5811_s18 + $0xa0] sm:$0xff]   ;;  %v805_v22 = vsel %vm374_vm0, %v4879_v20, 0  ;;  %v4884_v27 = vld [vmem:[%s5811_s18 + $0x98] sm:$0xff]   ;;  %v802_v32 = vsel %vm374_vm0, %v4883_v26, 0  ;;  %v4887_v37 = vld [vmem:[%s5811_s18 + $0x10] sm:$0xff]   ;;  %p5432_p6 = scmp.ne.s32.totalorder %s7956_s27, %s5431_s12  ;;  %s5435_s15 = sshll.u32 %s5566_s30, 4  ;;  %s5436_s15 = int_to_ptr.vmem [resolvable:$false] %s5435_s15 }
  0x78   : > { %v853_v24 = vsel %vm374_vm0, %v4880_v21, 0  ;;  %v407_v28 = vld [vmem:[%s5800_s8] sm:$0xf]  ;;  %v408_v29 = vld [vmem:[%s5800_s8 + $0x4] sm:$0xf]  ;;  %v850_v34 = vsel %vm374_vm0, %v4884_v27, 0  ;;  %p5438_p9 = scmp.lt.s32.totalorder %s7956_s27, %s5436_s15 }
  0x79   : > { %v423_v30 = vmul.bf16 1043938873, %v407_v28  ;;  %v424_v31 = vmul.bf16 1043938873, %v408_v29  ;;  %v4888_v38 = vld [vmem:[%s5811_s18 + $0x90] sm:$0xff]   ;;  %v799_v39 = vsel %vm374_vm0, %v4887_v37, 0 }
  0x7a   : > { %v4889_v40 = vld [vmem:[%s5811_s18 + $0x48] sm:$0xff]   ;;  %v847_v41 = vsel %vm374_vm0, %v4888_v38, 0  ;;  %v4893_v46 = vld [vmem:[%s5811_s18 + $0x40] sm:$0xff]   ;;  %v411_v58 = vld [vmem:[%s5800_s8 + $0x10] sm:$0xf]  ;;  %v5562_v29 = vmov -inf  }
  0x7b   : > { %v5876_v36 = vcombine.low %v423_v30, %v424_v31  ;;  %v4890_v42 = vld [vmem:[%s5811_s18 + $0xc8] sm:$0xff]   ;;  %v4894_v48 = vld [vmem:[%s5811_s18 + $0xc0] sm:$0xff]   ;;  %v412_v59 = vld [vmem:[%s5800_s8 + $0x14] sm:$0xf]  ;;  %v427_v60 = vmul.bf16 1043938873, %v411_v58 }
  0x7c   : > { %4331 = vmatpush3.bf16.xpose.msra.mxu0 %v811_v10  ;;  %v4891_v43 = vld [vmem:[%s5811_s18 + $0x8] sm:$0xff]   ;;  %v4895_v49 = vld [vmem:[%s5811_s18] sm:$0xff]   ;;  %v428_v61 = vmul.bf16 1043938873, %v412_v59  ;;  %v413_v63 = vld [vmem:[%s5800_s8 + $0x18] sm:$0xf] }
  0x7d   : > { %4363 = vmatpush3.bf16.xpose.msra.mxu1 %v859_v12  ;;  %4714 = vmatprep.subr.msk.bf16.mxu0 %vm374_vm0, %v4873_v11  ;;  %v4892_v44 = vld [vmem:[%s5811_s18 + $0x88] sm:$0xff]   ;;  %v796_v45 = vsel %vm374_vm0, %v4891_v43, 0  ;;  %v4896_v50 = vld [vmem:[%s5811_s18 + $0x80] sm:$0xff]   ;;  %v793_v51 = vsel %vm374_vm0, %v4895_v49, 0  ;;  %v414_v0 = vld [vmem:[%s5800_s8 + $0x1c] sm:$0xf] }
  0x7e   : > { %4722 = vmatprep.subr.msk.bf16.mxu1 %vm374_vm0, %v4874_v13  ;;  %4344 = vmatprep.mubr.msk.bf16.mxu0 %vm374_vm0, %v5876_v36  ;;  %v844_v47 = vsel %vm374_vm0, %v4892_v44, 0  ;;  %v409_v52 = vld [vmem:[%s5800_s8 + $0x8] sm:$0xf]  ;;  %v410_v53 = vld [vmem:[%s5800_s8 + $0xc] sm:$0xf]  ;;  %v841_v54 = vsel %vm374_vm0, %v4896_v50, 0  ;;  %v5918_v62 = vcombine.low %v427_v60, %v428_v61 }
  0x7f   : > { %4376 = vmatprep.mubr.msk.bf16.mxu1 %vm374_vm0, %v5876_v36  ;;  %v425_v55 = vmul.bf16 1043938873, %v409_v52  ;;  %v426_v56 = vmul.bf16 1043938873, %v410_v53  ;;  %v429_v1 = vmul.bf16 1043938873, %v413_v63 }
  0x80   : > { %v430_v4 = vmul.bf16 1043938873, %v414_v0  ;;  %v415_v6 = vld [vmem:[%s5800_s8 + $0x20] sm:$0xf]  ;;  %v416_v7 = vld [vmem:[%s5800_s8 + $0x24] sm:$0xf] }
  0x81   : > { %v5906_v57 = vcombine.low %v425_v55, %v426_v56  ;;  %v431_v10 = vmul.bf16 1043938873, %v415_v6  ;;  %v432_v11 = vmul.bf16 1043938873, %v416_v7  ;;  %v417_v13 = vld [vmem:[%s5800_s8 + $0x28] sm:$0xf] }
  0x82   : > { %v5930_v5 = vcombine.low %v429_v1, %v430_v4  ;;  %v418_v15 = vld [vmem:[%s5800_s8 + $0x2c] sm:$0xf]  ;;  %v420_v20 = vld [vmem:[%s5800_s8 + $0x34] sm:$0xf]  ;;  %310 = vst.msk [vmem:[#allocation2] sm:$0xff] %vm309_vm1, %v5562_v29  ;;  %311 = vst.msk [vmem:[#allocation2 + $0x8] sm:$0xff] %vm309_vm1, %v5562_v29 }
  0x83   : > { %v5942_v12 = vcombine.low %v431_v10, %v432_v11  ;;  %312 = vst.msk [vmem:[#allocation2 + $0x10] sm:$0xff] %vm309_vm1, %v5562_v29  ;;  %313 = vst.msk [vmem:[#allocation2 + $0x18] sm:$0xff] %vm309_vm1, %v5562_v29  ;;  %v5563_v10 = vmov 0   ;;  %s4321_s29 = sshll.u32 %s8471_s19, 4  ;;  %s4322_s4 = sshll.u32 %s8472_s5, 6 }
  0x84   : > { %4333 = vmatpush3.bf16.xpose.msra.mxu0 %v808_v16  ;;  %v433_v16 = vmul.bf16 1043938873, %v417_v13  ;;  %314 = vst.msk [vmem:[#allocation2 + $0x20] sm:$0xff] %vm309_vm1, %v5562_v29  ;;  %315 = vst.msk [vmem:[#allocation2 + $0x28] sm:$0xff] %vm309_vm1, %v5562_v29  ;;  %4863 = vset.pattern.permute.xlu0 %v5563_v10  ;;  %s4036_s26 = sadd.s32 %s4322_s4, %s4321_s29  ;;  %p8475_p7 = scmp.ne.s32.totalorder %s8473_s6, 0 }
  0x85   : > { %4365 = vmatpush3.bf16.xpose.msra.mxu1 %v856_v18  ;;  %4715 = vmatprep.subr.msk.bf16.mxu0 %vm374_vm0, %v4877_v17  ;;  %v434_v17 = vmul.bf16 1043938873, %v418_v15  ;;  %316 = vst.msk [vmem:[#allocation2 + $0x30] sm:$0xff] %vm309_vm1, %v5562_v29  ;;  %317 = vst.msk [vmem:[#allocation2 + $0x38] sm:$0xff] %vm309_vm1, %v5562_v29  ;;  %s4323_s1 = sshll.u32 %s4036_s26, 6  ;;  %s5437_s7 = scalar_lea.vmem %s5436_s15, 2048 }
  0x86   : > { %4723 = vmatprep.subr.msk.bf16.mxu1 %vm374_vm0, %v4878_v19  ;;  %v419_v19 = vld [vmem:[%s5800_s8 + $0x30] sm:$0xf]  ;;  %318 = vst.msk [vmem:[#allocation2 + $0x40] sm:$0xff] %vm309_vm1, %v5562_v29  ;;  %319 = vst.msk [vmem:[#allocation2 + $0x48] sm:$0xff] %vm309_vm1, %v5562_v29  ;;  %4864 = vset.pattern.permute.xlu1 %v5563_v10  ;;  %p5433_p8 = pnand %p5432_p6, %p8475_p7  ;;  %p5439_p13 = scmp.lt.s32.totalorder %s5437_s7, %s5431_s12 }
  0x87   : > { %v5954_v18 = vcombine.low %v433_v16, %v434_v17  ;;  %v435_v21 = vmul.bf16 1043938873, %v419_v19  ;;  %320 = vst.msk [vmem:[#allocation2 + $0x50] sm:$0xff] %vm309_vm1, %v5562_v29  ;;  %321 = vst.msk [vmem:[#allocation2 + $0x58] sm:$0xff] %vm309_vm1, %v5562_v29 }
  0x88   : > { %322 = vst.msk [vmem:[#allocation2 + $0x60] sm:$0xff] %vm309_vm1, %v5562_v29  ;;  %323 = vst.msk [vmem:[#allocation2 + $0x68] sm:$0xff] %vm309_vm1, %v5562_v29  ;;  %p5434_p10 = pneg %p5433_p8  ;;  %p5440_p12 = por %p5439_p13, %p5438_p9 }
  0x89   : > { %324 = vst.msk [vmem:[#allocation2 + $0x70] sm:$0xff] %vm309_vm1, %v5562_v29  ;;  %325 = vst.msk [vmem:[#allocation2 + $0x78] sm:$0xff] %vm309_vm1, %v5562_v29 }
  0x8a   : > { %326 = vst.msk [vmem:[#allocation2 + $0x80] sm:$0xff] %vm309_vm1, %v5562_v29  ;;  %327 = vst.msk [vmem:[#allocation2 + $0x88] sm:$0xff] %vm309_vm1, %v5562_v29  ;;  %p5441_p2 = pnand %p5440_p12, %p5434_p10 }
  0x8b   : > { %328 = vst.msk [vmem:[#allocation2 + $0x90] sm:$0xff] %vm309_vm1, %v5562_v29  ;;  %329 = vst.msk [vmem:[#allocation2 + $0x98] sm:$0xff] %vm309_vm1, %v5562_v29 }
  0x8c   : > { %4335 = vmatpush3.bf16.xpose.msra.mxu0 %v805_v22  ;;  %v436_v22 = vmul.bf16 1043938873, %v420_v20  ;;  %330 = vst.msk [vmem:[#allocation2 + $0xa0] sm:$0xff] %vm309_vm1, %v5562_v29  ;;  %331 = vst.msk [vmem:[#allocation2 + $0xa8] sm:$0xff] %vm309_vm1, %v5562_v29 }
  0x8d   : > { %4367 = vmatpush3.bf16.xpose.msra.mxu1 %v853_v24  ;;  %4716 = vmatprep.subr.msk.bf16.mxu0 %vm374_vm0, %v4881_v23  ;;  %v421_v24 = vld [vmem:[%s5800_s8 + $0x38] sm:$0xf]  ;;  %332 = vst.msk [vmem:[#allocation2 + $0xb0] sm:$0xff] %vm309_vm1, %v5562_v29  ;;  %333 = vst.msk [vmem:[#allocation2 + $0xb8] sm:$0xff] %vm309_vm1, %v5562_v29 }
  0x8e   : > { %4724 = vmatprep.subr.msk.bf16.mxu1 %vm374_vm0, %v4882_v25  ;;  %v5966_v23 = vcombine.low %v435_v21, %v436_v22  ;;  %v422_v25 = vld [vmem:[%s5800_s8 + $0x3c] sm:$0xf]  ;;  %v437_v26 = vmul.bf16 1043938873, %v421_v24  ;;  %334 = vst.msk [vmem:[#allocation2 + $0xc0] sm:$0xff] %vm309_vm1, %v5562_v29  ;;  %335 = vst.msk [vmem:[#allocation2 + $0xc8] sm:$0xff] %vm309_vm1, %v5562_v29 }
  0x8f   : > { %v438_v27 = vmul.bf16 1043938873, %v422_v25  ;;  %336 = vst.msk [vmem:[#allocation2 + $0xd0] sm:$0xff] %vm309_vm1, %v5562_v29  ;;  %337 = vst.msk [vmem:[#allocation2 + $0xd8] sm:$0xff] %vm309_vm1, %v5562_v29  ;;  %s8474_s8 = sld [smem:[#allocation99_spill]] }
  0x90   : > { %338 = vst.msk [vmem:[#allocation2 + $0xe0] sm:$0xff] %vm309_vm1, %v5562_v29  ;;  %339 = vst.msk [vmem:[#allocation2 + $0xe8] sm:$0xff] %vm309_vm1, %v5562_v29 }
  0x91   : > { %v5978_v28 = vcombine.low %v437_v26, %v438_v27  ;;  %340 = vst.msk [vmem:[#allocation2 + $0xf0] sm:$0xff] %vm309_vm1, %v5562_v29  ;;  %341 = vst.msk [vmem:[#allocation2 + $0xf8] sm:$0xff] %vm309_vm1, %v5562_v29 }
  0x94   : > { %4337 = vmatpush3.bf16.xpose.msra.mxu0 %v802_v32 }
  0x95   : > { %4369 = vmatpush3.bf16.xpose.msra.mxu1 %v850_v34  ;;  %4717 = vmatprep.subr.msk.bf16.mxu0 %vm374_vm0, %v4885_v33  ;;  %s7961_s9 = scalar_lea.hbm %s8474_s8, %s4323_s1 }
  0x96   : > { %4725 = vmatprep.subr.msk.bf16.mxu1 %vm374_vm0, %v4886_v35 }
  0x9c   : > { %4339 = vmatpush3.bf16.xpose.msra.mxu0 %v799_v39 }
  0x9d   : > { %4371 = vmatpush3.bf16.xpose.msra.mxu1 %v847_v41  ;;  %4718 = vmatprep.subr.msk.bf16.mxu0 %vm374_vm0, %v4889_v40 }
  0x9e   : > { %4726 = vmatprep.subr.msk.bf16.mxu1 %vm374_vm0, %v4890_v42 }
  0xa4   : > { %4341 = vmatpush3.bf16.xpose.msra.mxu0 %v796_v45 }
  0xa5   : > { %4373 = vmatpush3.bf16.xpose.msra.mxu1 %v844_v47  ;;  %4719 = vmatprep.subr.msk.bf16.mxu0 %vm374_vm0, %v4893_v46 }
  0xa6   : > { %4727 = vmatprep.subr.msk.bf16.mxu1 %vm374_vm0, %v4894_v48 }
  0xac   : > { %4343 = vmatpush3.bf16.xpose.msra.mxu0 %v793_v51 }
  0xad   : > { %4375 = vmatpush3.bf16.xpose.msra.mxu1 %v841_v54 }
  0xb3   : > { %4345 = vmatmul.mubr.msk.bf16.vlgmr.msra.gmra.mxu0 %vm374_vm0, %v5876_v36 }
  0xb4   : > { %4377 = vmatmul.mubr.msk.bf16.vlgmr.msra.gmra.mxu1 %vm374_vm0, %v5876_v36  ;;  %4346 = vmatprep.mubr.msk.bf16.mxu0 %vm374_vm0, %v5906_v57 }
  0xb5   : > { %4378 = vmatprep.mubr.msk.bf16.mxu1 %vm374_vm0, %v5906_v57 }
  0xbb   : > { %4347 = vmatmul.mubr.msk.bf16.gmra.mxu0 %vm374_vm0, %v5906_v57 }
  0xbc   : > { %4379 = vmatmul.mubr.msk.bf16.gmra.mxu1 %vm374_vm0, %v5906_v57  ;;  %4348 = vmatprep.mubr.msk.bf16.mxu0 %vm374_vm0, %v5918_v62 }
  0xbd   : > { %4380 = vmatprep.mubr.msk.bf16.mxu1 %vm374_vm0, %v5918_v62 }
  0xc3   : > { %4349 = vmatmul.mubr.msk.bf16.gmra.mxu0 %vm374_vm0, %v5918_v62 }
  0xc4   : > { %4381 = vmatmul.mubr.msk.bf16.gmra.mxu1 %vm374_vm0, %v5918_v62  ;;  %4350 = vmatprep.mubr.msk.bf16.mxu0 %vm374_vm0, %v5930_v5 }
  0xc5   : > { %4382 = vmatprep.mubr.msk.bf16.mxu1 %vm374_vm0, %v5930_v5 }
  0xcb   : > { %4351 = vmatmul.mubr.msk.bf16.gmra.mxu0 %vm374_vm0, %v5930_v5 }
  0xcc   : > { %4383 = vmatmul.mubr.msk.bf16.gmra.mxu1 %vm374_vm0, %v5930_v5  ;;  %4352 = vmatprep.mubr.msk.bf16.mxu0 %vm374_vm0, %v5942_v12 }
  0xcd   : > { %4384 = vmatprep.mubr.msk.bf16.mxu1 %vm374_vm0, %v5942_v12 }
  0xd3   : > { %4353 = vmatmul.mubr.msk.bf16.gmra.mxu0 %vm374_vm0, %v5942_v12 }
  0xd4   : > { %4385 = vmatmul.mubr.msk.bf16.gmra.mxu1 %vm374_vm0, %v5942_v12  ;;  %4354 = vmatprep.mubr.msk.bf16.mxu0 %vm374_vm0, %v5954_v18 }
  0xd5   : > { %4386 = vmatprep.mubr.msk.bf16.mxu1 %vm374_vm0, %v5954_v18 }
  0xdb   : > { %4355 = vmatmul.mubr.msk.bf16.gmra.mxu0 %vm374_vm0, %v5954_v18 }
  0xdc   : > { %4387 = vmatmul.mubr.msk.bf16.gmra.mxu1 %vm374_vm0, %v5954_v18  ;;  %4356 = vmatprep.mubr.msk.bf16.mxu0 %vm374_vm0, %v5966_v23 }
  0xdd   : > { %4388 = vmatprep.mubr.msk.bf16.mxu1 %vm374_vm0, %v5966_v23 }
  0xe3   : > { %4357 = vmatmul.mubr.msk.bf16.gmra.mxu0 %vm374_vm0, %v5966_v23 }
  0xe4   : > { %4389 = vmatmul.mubr.msk.bf16.gmra.mxu1 %vm374_vm0, %v5966_v23  ;;  %4358 = vmatprep.mubr.msk.bf16.mxu0 %vm374_vm0, %v5978_v28 }
  0xe5   : > { %4390 = vmatprep.mubr.msk.bf16.mxu1 %vm374_vm0, %v5978_v28 }
  0xeb   : > { %4359 = vmatmul.mubr.msk.bf16.gmra.mxu0 %vm374_vm0, %v5978_v28 }
  0xec   : > { %4391 = vmatmul.mubr.msk.bf16.gmra.mxu1 %vm374_vm0, %v5978_v28 }
 0x173   : > { %v6024_v30 = vpop.f32.mrf.mxu0 }
 0x174   : > { %v6026_v31 = vpop.f32.mrf.mxu1 }
 0x175   : > { %v6028_v32 = vpop.f32.mrf.mxu0 }
 0x176   : > { %v1130_v33 = vmax.f32 %v6024_v30, %v6028_v32  ;;  %v6032_v34 = vpop.f32.mrf.mxu1 }
 0x177   : > { %v6034_v35 = vpop.f32.mrf.mxu0 }
 0x178   : > { %v6036_v37 = vpop.f32.mrf.mxu1  ;;  %v1131_v38 = vmax.f32 %v1130_v33, %v6026_v31 }
 0x179   : > { %v6039_v39 = vpop.f32.mrf.mxu0 }
 0x17a   : > { %v1135_v40 = vmax.f32 %v6034_v35, %v6039_v39  ;;  %v6043_v41 = vpop.f32.mrf.mxu1  ;;  %v1132_v42 = vmax.f32 %v1131_v38, %v6032_v34 }
 0x17b   : > { %v6046_v43 = vpop.f32.mrf.mxu0 }
 0x17c   : > { %v6048_v44 = vpop.f32.mrf.mxu1  ;;  %1133 = vmax.xlane.f32.xlu0 %v1132_v42  ;;  %v1136_v45 = vmax.f32 %v1135_v40, %v6036_v37 }
 0x17d   : > { %v6051_v46 = vpop.f32.mrf.mxu0 }
 0x17e   : > { %v1140_v47 = vmax.f32 %v6046_v43, %v6051_v46  ;;  %v6055_v48 = vpop.f32.mrf.mxu1  ;;  %v1137_v49 = vmax.f32 %v1136_v45, %v6043_v41 }
 0x17f   : > { %v6058_v50 = vpop.f32.mrf.mxu0 }
 0x180   : > { %v6060_v51 = vpop.f32.mrf.mxu1  ;;  %1138 = vmax.xlane.f32.xlu0 %v1137_v49  ;;  %v1141_v52 = vmax.f32 %v1140_v47, %v6048_v44 }
 0x181   : > { %v6063_v53 = vpop.f32.mrf.mxu0 }
 0x182   : > { %v1145_v54 = vmax.f32 %v6058_v50, %v6063_v53  ;;  %v6067_v55 = vpop.f32.mrf.mxu1  ;;  %v1142_v56 = vmax.f32 %v1141_v52, %v6055_v48 }
 0x183   : > { %v6070_v58 = vpop.f32.mrf.mxu0 }
 0x184   : > { %v6072_v59 = vpop.f32.mrf.mxu1  ;;  %1143 = vmax.xlane.f32.xlu1 %v1142_v56  ;;  %v1146_v60 = vmax.f32 %v1145_v54, %v6060_v51 }
 0x185   : > { %v6075_v61 = vpop.f32.mrf.mxu0 }
 0x186   : > { %v1150_v63 = vmax.f32 %v6070_v58, %v6075_v61  ;;  %v6079_v0 = vpop.f32.mrf.mxu1  ;;  %v1147_v1 = vmax.f32 %v1146_v60, %v6067_v55 }
 0x187   : > { %8195 = vst [vmem:[#allocation24_spill] sm:$0xff] %v6079_v0  ;;  %v6082_v4 = vpop.f32.mrf.mxu0 }
 0x188   : > { %8196 = vst [vmem:[#allocation25_spill] sm:$0xff] %v6082_v4  ;;  %v6084_v6 = vpop.f32.mrf.mxu1  ;;  %1148 = vmax.xlane.f32.xlu1 %v1147_v1  ;;  %v1151_v7 = vmax.f32 %v1150_v63, %v6072_v59  ;;  %v5564_v1 = vmov 0.0  }
 0x189   : > { %8197 = vst [vmem:[#allocation26_spill] sm:$0xff] %v6084_v6  ;;  %v6087_v11 = vpop.f32.mrf.mxu0  ;;  %376 = vst.msk [vmem:[#allocation4 + $0x8] sm:$0xff] %vm374_vm0, %v5564_v1 }
 0x18a   : > { %8198 = vst [vmem:[#allocation27_spill] sm:$0xff] %v6087_v11  ;;  %v1155_v13 = vmax.f32 %v6082_v4, %v6087_v11  ;;  %v6091_v15 = vpop.f32.mrf.mxu1  ;;  %v1152_v16 = vmax.f32 %v1151_v7, %v6079_v0  ;;  %342 = vst.msk [vmem:[#allocation3] sm:$0xff] %vm309_vm1, %v5564_v1  ;;  %v6605_v4 = vld [vmem:[#allocation2 + $0x60] sm:$0xff]  ;;  %v6629_v0 = vld [vmem:[#allocation2 + $0x70] sm:$0xff] }
 0x18b   : > { %8199 = vst [vmem:[#allocation28_spill] sm:$0xff] %v6091_v15  ;;  %v6094_v17 = vpop.f32.mrf.mxu0  ;;  %343 = vst.msk [vmem:[#allocation3 + $0x8] sm:$0xff] %vm309_vm1, %v5564_v1 }
 0x18c   : > { %8200 = vst [vmem:[#allocation29_spill] sm:$0xff] %v6094_v17  ;;  %v6096_v19 = vpop.f32.mrf.mxu1  ;;  %1153 = vmax.xlane.f32.xlu0 %v1152_v16  ;;  %v1156_v20 = vmax.f32 %v1155_v13, %v6084_v6  ;;  %344 = vst.msk [vmem:[#allocation3 + $0x10] sm:$0xff] %vm309_vm1, %v5564_v1  ;;  %v5321_v6 = vld [vmem:[%s5811_s18 + $0x60] sm:$0xff]  }
 0x18d   : > { %8201 = vst [vmem:[#allocation30_spill] sm:$0xff] %v6096_v19  ;;  %v6099_v21 = vpop.f32.mrf.mxu0  ;;  %345 = vst.msk [vmem:[#allocation3 + $0x18] sm:$0xff] %vm309_vm1, %v5564_v1 }
 0x18e   : > { %8202 = vst [vmem:[#allocation31_spill] sm:$0xff] %v6099_v21  ;;  %v1160_v22 = vmax.f32 %v6094_v17, %v6099_v21  ;;  %v6103_v24 = vpop.f32.mrf.mxu1  ;;  %v1157_v25 = vmax.f32 %v1156_v20, %v6091_v15  ;;  %346 = vst.msk [vmem:[#allocation3 + $0x20] sm:$0xff] %vm309_vm1, %v5564_v1  ;;  %v6570_v17 = vld [vmem:[#allocation2 + $0x48] sm:$0xff]  ;;  %v6581_v15 = vld [vmem:[#allocation2 + $0x50] sm:$0xff] }
 0x18f   : > { %8203 = vst [vmem:[#allocation32_spill] sm:$0xff] %v6103_v24  ;;  %v6106_v26 = vpop.f32.mrf.mxu0  ;;  %347 = vst.msk [vmem:[#allocation3 + $0x28] sm:$0xff] %vm309_vm1, %v5564_v1 }
 0x190   : > { %8204 = vst [vmem:[#allocation33_spill] sm:$0xff] %v6106_v26  ;;  %v6108_v27 = vpop.f32.mrf.mxu1  ;;  %1158 = vmax.xlane.f32.xlu1 %v1157_v25  ;;  %v1161_v29 = vmax.f32 %v1160_v22, %v6096_v19  ;;  %348 = vst.msk [vmem:[#allocation3 + $0x30] sm:$0xff] %vm309_vm1, %v5564_v1 }
 0x191   : > { %8205 = vst [vmem:[#allocation34_spill] sm:$0xff] %v6108_v27  ;;  %v6111_v33 = vpop.f32.mrf.mxu0  ;;  %349 = vst.msk [vmem:[#allocation3 + $0x38] sm:$0xff] %vm309_vm1, %v5564_v1 }
 0x192   : > { %8206 = vst [vmem:[#allocation35_spill] sm:$0xff] %v6111_v33  ;;  %v1165_v38 = vmax.f32 %v6106_v26, %v6111_v33  ;;  %v6115_v40 = vpop.f32.mrf.mxu1  ;;  %v1162_v42 = vmax.f32 %v1161_v29, %v6103_v24  ;;  %350 = vst.msk [vmem:[#allocation3 + $0x40] sm:$0xff] %vm309_vm1, %v5564_v1  ;;  %v6548_v24 = vld [vmem:[#allocation2 + $0x38] sm:$0xff]  ;;  %v5318_v26 = vld [vmem:[%s5811_s18 + $0xe8] sm:$0xff]  }
 0x193   : > { %8207 = vst [vmem:[#allocation36_spill] sm:$0xff] %v6115_v40  ;;  %v6118_v45 = vpop.f32.mrf.mxu0  ;;  %351 = vst.msk [vmem:[#allocation3 + $0x48] sm:$0xff] %vm309_vm1, %v5564_v1 }
 0x194   : > { %8208 = vst [vmem:[#allocation37_spill] sm:$0xff] %v6118_v45  ;;  %v6120_v47 = vpop.f32.mrf.mxu1  ;;  %1163 = vmax.xlane.f32.xlu0 %v1162_v42  ;;  %v6123_v49 = vmax.f32 %v1165_v38, %v6108_v27  ;;  %352 = vst.msk [vmem:[#allocation3 + $0x50] sm:$0xff] %vm309_vm1, %v5564_v1  ;;  %v5317_v27 = vld [vmem:[%s5811_s18 + $0x68] sm:$0xff]  }
 0x195   : > { %8209 = vst [vmem:[#allocation38_spill] sm:$0xff] %v6120_v47  ;;  %v6125_v52 = vpop.f32.mrf.mxu0  ;;  %353 = vst.msk [vmem:[#allocation3 + $0x58] sm:$0xff] %vm309_vm1, %v5564_v1 }
 0x196   : > { %8210 = vst [vmem:[#allocation39_spill] sm:$0xff] %v6125_v52  ;;  %v1170_v54 = vmax.f32 %v6118_v45, %v6125_v52  ;;  %v6129_v56 = vpop.f32.mrf.mxu1  ;;  %v1167_v60 = vmax.f32 %v6123_v49, %v6115_v40  ;;  %354 = vst.msk [vmem:[#allocation3 + $0x60] sm:$0xff] %vm309_vm1, %v5564_v1  ;;  %v6472_v52 = vld [vmem:[#allocation2 + $0x8] sm:$0xff]  ;;  %v4923_v45 = vld [vmem:[%s6364_s11 + $0x40] sm:$0xff]  }
 0x197   : > { %8211 = vst [vmem:[#allocation40_spill] sm:$0xff] %v6129_v56  ;;  %v6133_v63 = vpop.f32.mrf.mxu0  ;;  %355 = vst.msk [vmem:[#allocation3 + $0x68] sm:$0xff] %vm309_vm1, %v5564_v1  ;;  %v5313_v40 = vld [vmem:[%s5811_s18 + $0x78] sm:$0xff]  }
 0x198   : > { %8212 = vst [vmem:[#allocation41_spill] sm:$0xff] %v6133_v63  ;;  %356 = vst.msk [vmem:[#allocation3 + $0x70] sm:$0xff] %vm309_vm1, %v5564_v1  ;;  %v6263_v7 = vpop.f32.mrf.mxu1  ;;  %1168 = vmax.xlane.f32.xlu1 %v1167_v60  ;;  %v1171_v10 = vmax.f32 %v1170_v54, %v6120_v47 }
 0x199   : > { %357 = vst.msk [vmem:[#allocation3 + $0x78] sm:$0xff] %vm309_vm1, %v5564_v1  ;;  %358 = vst.msk [vmem:[#allocation3 + $0x80] sm:$0xff] %vm309_vm1, %v5564_v1  ;;  %v6272_v13 = vpop.f32.mrf.mxu0 }
 0x19a   : > { %359 = vst.msk [vmem:[#allocation3 + $0x88] sm:$0xff] %vm309_vm1, %v5564_v1  ;;  %360 = vst.msk [vmem:[#allocation3 + $0x90] sm:$0xff] %vm309_vm1, %v5564_v1  ;;  %v1175_v16 = vmax.f32 %v6133_v63, %v6272_v13  ;;  %v6276_v20 = vpop.f32.mrf.mxu1  ;;  %v1172_v22 = vmax.f32 %v1171_v10, %v6129_v56  ;;  %v6462_v56 = vld [vmem:[%s6364_s11 + $0x90] sm:$0xff]  }
 0x19b   : > { %361 = vst.msk [vmem:[#allocation3 + $0x98] sm:$0xff] %vm309_vm1, %v5564_v1  ;;  %362 = vst.msk [vmem:[#allocation3 + $0xa0] sm:$0xff] %vm309_vm1, %v5564_v1  ;;  %v6279_v25 = vpop.f32.mrf.mxu0 }
 0x19c   : > { %363 = vst.msk [vmem:[#allocation3 + $0xa8] sm:$0xff] %vm309_vm1, %v5564_v1  ;;  %364 = vst.msk [vmem:[#allocation3 + $0xb0] sm:$0xff] %vm309_vm1, %v5564_v1  ;;  %v6281_v29 = vpop.f32.mrf.mxu1  ;;  %1173 = vmax.xlane.f32.xlu0 %v1172_v22  ;;  %v1176_v38 = vmax.f32 %v1175_v16, %v6263_v7 }
 0x19d   : > { %365 = vst.msk [vmem:[#allocation3 + $0xb8] sm:$0xff] %vm309_vm1, %v5564_v1  ;;  %366 = vst.msk [vmem:[#allocation3 + $0xc0] sm:$0xff] %vm309_vm1, %v5564_v1  ;;  %v6284_v42 = vpop.f32.mrf.mxu0 }
 0x19e   : > { %367 = vst.msk [vmem:[#allocation3 + $0xc8] sm:$0xff] %vm309_vm1, %v5564_v1  ;;  %368 = vst.msk [vmem:[#allocation3 + $0xd0] sm:$0xff] %vm309_vm1, %v5564_v1  ;;  %v1180_v49 = vmax.f32 %v6279_v25, %v6284_v42  ;;  %v6288_v54 = vpop.f32.mrf.mxu1  ;;  %v1177_v60 = vmax.f32 %v1176_v38, %v6276_v20 }
 0x19f   : > { %369 = vst.msk [vmem:[#allocation3 + $0xd8] sm:$0xff] %vm309_vm1, %v5564_v1  ;;  %370 = vst.msk [vmem:[#allocation3 + $0xe0] sm:$0xff] %vm309_vm1, %v5564_v1 }
 0x1a0   : > { %371 = vst.msk [vmem:[#allocation3 + $0xe8] sm:$0xff] %vm309_vm1, %v5564_v1  ;;  %372 = vst.msk [vmem:[#allocation3 + $0xf0] sm:$0xff] %vm309_vm1, %v5564_v1  ;;  %1178 = vmax.xlane.f32.xlu1 %v1177_v60  ;;  %v1181_v10 = vmax.f32 %v1180_v49, %v6281_v29 }
 0x1a1   : > { %373 = vst.msk [vmem:[#allocation3 + $0xf8] sm:$0xff] %vm309_vm1, %v5564_v1  ;;  %8213 = vst [vmem:[#allocation42_spill] sm:$0xff] %v6263_v7 }
 0x1a2   : > { %375 = vst.msk [vmem:[#allocation4] sm:$0xff] %vm374_vm0, %v5564_v1  ;;  %377 = vst.msk [vmem:[#allocation4 + $0x10] sm:$0xff] %vm374_vm0, %v5564_v1 }
 0x1a3   : > { %378 = vst.msk [vmem:[#allocation4 + $0x18] sm:$0xff] %vm374_vm0, %v5564_v1  ;;  %379 = vst.msk [vmem:[#allocation4 + $0x20] sm:$0xff] %vm374_vm0, %v5564_v1 }
 0x1a4   : > { %380 = vst.msk [vmem:[#allocation4 + $0x28] sm:$0xff] %vm374_vm0, %v5564_v1  ;;  %381 = vst.msk [vmem:[#allocation4 + $0x30] sm:$0xff] %vm374_vm0, %v5564_v1 }
 0x1a5   : > { %382 = vst.msk [vmem:[#allocation4 + $0x38] sm:$0xff] %vm374_vm0, %v5564_v1  ;;  %383 = vst.msk [vmem:[#allocation4 + $0x40] sm:$0xff] %vm374_vm0, %v5564_v1 }
 0x1a6   : > { %384 = vst.msk [vmem:[#allocation4 + $0x48] sm:$0xff] %vm374_vm0, %v5564_v1  ;;  %385 = vst.msk [vmem:[#allocation4 + $0x50] sm:$0xff] %vm374_vm0, %v5564_v1 }
 0x1a7   : > { %386 = vst.msk [vmem:[#allocation4 + $0x58] sm:$0xff] %vm374_vm0, %v5564_v1  ;;  %387 = vst.msk [vmem:[#allocation4 + $0x60] sm:$0xff] %vm374_vm0, %v5564_v1 }
 0x1a8   : > { %388 = vst.msk [vmem:[#allocation4 + $0x68] sm:$0xff] %vm374_vm0, %v5564_v1  ;;  %389 = vst.msk [vmem:[#allocation4 + $0x70] sm:$0xff] %vm374_vm0, %v5564_v1 }
 0x1a9   : > { %390 = vst.msk [vmem:[#allocation4 + $0x78] sm:$0xff] %vm374_vm0, %v5564_v1  ;;  %391 = vst.msk [vmem:[#allocation4 + $0x80] sm:$0xff] %vm374_vm0, %v5564_v1 }
 0x1aa   : > { %392 = vst.msk [vmem:[#allocation4 + $0x88] sm:$0xff] %vm374_vm0, %v5564_v1  ;;  %393 = vst.msk [vmem:[#allocation4 + $0x90] sm:$0xff] %vm374_vm0, %v5564_v1 }
 0x1ab   : > { %394 = vst.msk [vmem:[#allocation4 + $0x98] sm:$0xff] %vm374_vm0, %v5564_v1  ;;  %395 = vst.msk [vmem:[#allocation4 + $0xa0] sm:$0xff] %vm374_vm0, %v5564_v1 }
 0x1ac   : > { %396 = vst.msk [vmem:[#allocation4 + $0xa8] sm:$0xff] %vm374_vm0, %v5564_v1  ;;  %397 = vst.msk [vmem:[#allocation4 + $0xb0] sm:$0xff] %vm374_vm0, %v5564_v1 }
 0x1ad   : > { %398 = vst.msk [vmem:[#allocation4 + $0xb8] sm:$0xff] %vm374_vm0, %v5564_v1  ;;  %399 = vst.msk [vmem:[#allocation4 + $0xc0] sm:$0xff] %vm374_vm0, %v5564_v1 }
 0x1ae   : > { %400 = vst.msk [vmem:[#allocation4 + $0xc8] sm:$0xff] %vm374_vm0, %v5564_v1  ;;  %401 = vst.msk [vmem:[#allocation4 + $0xd0] sm:$0xff] %vm374_vm0, %v5564_v1 }
 0x1af   : > { %402 = vst.msk [vmem:[#allocation4 + $0xd8] sm:$0xff] %vm374_vm0, %v5564_v1  ;;  %403 = vst.msk [vmem:[#allocation4 + $0xe0] sm:$0xff] %vm374_vm0, %v5564_v1 }
 0x1b0   : > { %404 = vst.msk [vmem:[#allocation4 + $0xe8] sm:$0xff] %vm374_vm0, %v5564_v1  ;;  %405 = vst.msk [vmem:[#allocation4 + $0xf0] sm:$0xff] %vm374_vm0, %v5564_v1 }
 0x1b1   : > { %406 = vst.msk [vmem:[#allocation4 + $0xf8] sm:$0xff] %vm374_vm0, %v5564_v1  ;;  %8214 = vst [vmem:[#allocation43_spill] sm:$0xff] %v6272_v13  ;;  %v6291_v1 = vpop.f32.mrf.mxu0  ;;  %v6293_v13 = vpop.f32.mrf.mxu1 }
 0x1b2   : > { %8215 = vst [vmem:[#allocation44_spill] sm:$0xff] %v6276_v20  ;;  %8216 = vst [vmem:[#allocation45_spill] sm:$0xff] %v6279_v25 }
 0x1b3   : > { %8217 = vst [vmem:[#allocation46_spill] sm:$0xff] %v6281_v29  ;;  %8218 = vst [vmem:[#allocation47_spill] sm:$0xff] %v6284_v42  ;;  %v6296_v63 = vpop.f32.mrf.mxu0  ;;  %v6300_v22 = vpop.f32.mrf.mxu1  ;;  %v1182_v42 = vmax.f32 %v1181_v10, %v6288_v54 }
 0x1b4   : > { %8219 = vst [vmem:[#allocation48_spill] sm:$0xff] %v6288_v54  ;;  %8220 = vst [vmem:[#allocation49_spill] sm:$0xff] %v6291_v1  ;;  %v1185_v16 = vmax.f32 %v6291_v1, %v6296_v63 }
 0x1b5   : > { %8221 = vst [vmem:[#allocation50_spill] sm:$0xff] %v6293_v13  ;;  %8222 = vst [vmem:[#allocation51_spill] sm:$0xff] %v6296_v63  ;;  %v6303_v25 = vpop.f32.mrf.mxu0  ;;  %v6305_v7 = vpop.f32.mrf.mxu1  ;;  %1183 = vmax.xlane.f32.xlu0 %v1182_v42 }
 0x1b6   : > { %8223 = vst [vmem:[#allocation52_spill] sm:$0xff] %v6300_v22  ;;  %8224 = vst [vmem:[#allocation53_spill] sm:$0xff] %v6303_v25  ;;  %v1186_v38 = vmax.f32 %v1185_v16, %v6293_v13 }
 0x1b7   : > { %8225 = vst [vmem:[#allocation54_spill] sm:$0xff] %v6305_v7  ;;  %v6308_v20 = vpop.f32.mrf.mxu0  ;;  %v6312_v60 = vpop.f32.mrf.mxu1  ;;  %8258 = vst [vmem:[#allocation87_spill] sm:$0xff] %v6462_v56 }
 0x1b8   : > { %8226 = vst [vmem:[#allocation55_spill] sm:$0xff] %v6308_v20  ;;  %v1190_v49 = vmax.f32 %v6303_v25, %v6308_v20  ;;  %8227 = vst [vmem:[#allocation56_spill] sm:$0xff] %v6312_v60  ;;  %v1187_v63 = vmax.f32 %v1186_v38, %v6300_v22 }
 0x1b9   : > { %v6315_v1 = vpop.f32.mrf.mxu0  ;;  %v6317_v29 = vpop.f32.mrf.mxu1  ;;  %8261 = vst [vmem:[#allocation90_spill] sm:$0xff] %v6605_v4  ;;  %8264 = vst [vmem:[#allocation93_spill] sm:$0xff] %v6629_v0 }
 0x1ba   : > { %8228 = vst [vmem:[#allocation57_spill] sm:$0xff] %v6315_v1  ;;  %8229 = vst [vmem:[#allocation58_spill] sm:$0xff] %v6317_v29  ;;  %1188 = vmax.xlane.f32.xlu1 %v1187_v63  ;;  %v1191_v10 = vmax.f32 %v1190_v49, %v6305_v7  ;;  %v6442_v7 = vld [vmem:[%s6364_s11 + $0xd8] sm:$0xff]  }
 0x1bb   : > { %v6320_v54 = vpop.f32.mrf.mxu0  ;;  %v6324_v16 = vpop.f32.mrf.mxu1  ;;  %8253 = vst [vmem:[#allocation82_spill] sm:$0xff] %v6442_v7 }
 0x1bc   : > { %8230 = vst [vmem:[#allocation59_spill] sm:$0xff] %v6320_v54  ;;  %v1195_v42 = vmax.f32 %v6315_v1, %v6320_v54  ;;  %8231 = vst [vmem:[#allocation60_spill] sm:$0xff] %v6324_v16  ;;  %v1192_v20 = vmax.f32 %v1191_v10, %v6312_v60 }
 0x1bd   : > { %v6327_v25 = vpop.f32.mrf.mxu0  ;;  %v6329_v13 = vpop.f32.mrf.mxu1 }
 0x1be   : > { %8232 = vst [vmem:[#allocation61_spill] sm:$0xff] %v6327_v25  ;;  %8233 = vst [vmem:[#allocation62_spill] sm:$0xff] %v6329_v13  ;;  %1193 = vmax.xlane.f32.xlu0 %v1192_v20  ;;  %v1196_v38 = vmax.f32 %v1195_v42, %v6317_v29 }
 0x1bf   : > { %v6332_v22 = vpop.f32.mrf.mxu0  ;;  %v6336_v49 = vpop.f32.mrf.mxu1 }
 0x1c0   : > { %8234 = vst [vmem:[#allocation63_spill] sm:$0xff] %v6332_v22  ;;  %v1200_v63 = vmax.f32 %v6327_v25, %v6332_v22  ;;  %8235 = vst [vmem:[#allocation64_spill] sm:$0xff] %v6336_v49  ;;  %v1197_v54 = vmax.f32 %v1196_v38, %v6324_v16  ;;  %v6439_v16 = vld [vmem:[%s6364_s11 + $0x50] sm:$0xff]  }
 0x1c1   : > { %v6339_v1 = vpop.f32.mrf.mxu0  ;;  %v6342_v60 = vpop.f32.mrf.mxu1  ;;  %8252 = vst [vmem:[#allocation81_spill] sm:$0xff] %v6439_v16 }
 0x1c2   : > { %8236 = vst [vmem:[#allocation65_spill] sm:$0xff] %v6339_v1  ;;  %1198 = vmax.xlane.f32.xlu1 %v1197_v54  ;;  %v1201_v10 = vmax.f32 %v1200_v63, %v6329_v13  ;;  %8237 = vst [vmem:[#allocation66_spill] sm:$0xff] %v6342_v60  ;;  %v6390_v54 = vld [vmem:[%s6364_s11 + $0xf0] sm:$0xff]   ;;  %v6398_v63 = vld [vmem:[%s6364_s11 + $0x68] sm:$0xff]  }
 0x1c3   : > { %v6344_v20 = vpop.f32.mrf.mxu0  ;;  %v6350_v25 = vpop.f32.mrf.mxu1  ;;  %8241 = vst [vmem:[#allocation70_spill] sm:$0xff] %v6390_v54  ;;  %8243 = vst [vmem:[#allocation72_spill] sm:$0xff] %v6398_v63  ;;  %v6432_v13 = vld [vmem:[%s6364_s11 + $0xa0] sm:$0xff]  }
 0x1c4   : > { %8238 = vst [vmem:[#allocation67_spill] sm:$0xff] %v6344_v20  ;;  %v1205_v42 = vmax.f32 %v6339_v1, %v6344_v20  ;;  %v1202_v29 = vmax.f32 %v1201_v10, %v6336_v49  ;;  %8239 = vst [vmem:[#allocation68_spill] sm:$0xff] %v6350_v25  ;;  %v6403_v10 = vld [vmem:[%s6364_s11 + $0x28] sm:$0xff]   ;;  %v6423_v20 = vld [vmem:[%s6364_s11 + $0x58] sm:$0xff]  }
 0x1c5   : > { %8244 = vst [vmem:[#allocation73_spill] sm:$0xff] %v6403_v10  ;;  %8248 = vst [vmem:[#allocation77_spill] sm:$0xff] %v6423_v20  ;;  %v6426_v1 = vld [vmem:[%s6364_s11 + $0xe0] sm:$0xff]   ;;  %v6429_v49 = vld [vmem:[%s6364_s11 + $0x18] sm:$0xff]  }
 0x1c6   : > { %1203 = vmax.xlane.f32.xlu0 %v1202_v29  ;;  %v1206_v22 = vmax.f32 %v1205_v42, %v6342_v60  ;;  %v6387_v29 = vld [vmem:[%s6364_s11 + $0x30] sm:$0xff]   ;;  %v6406_v42 = vld [vmem:[%s6364_s11 + $0xe8] sm:$0xff]   ;;  %v6417_v60 = vld [vmem:[%s6364_s11 + $0x20] sm:$0xff]   ;;  %8249 = vst [vmem:[#allocation78_spill] sm:$0xff] %v6426_v1 }
 0x1c7   : > { %8240 = vst [vmem:[#allocation69_spill] sm:$0xff] %v6387_v29  ;;  %8247 = vst [vmem:[#allocation76_spill] sm:$0xff] %v6417_v60 }
 0x1c8   : > { %v1207_v38 = vmax.f32 %v1206_v22, %v6350_v25  ;;  %v6395_v22 = vld [vmem:[%s6364_s11 + $0xb0] sm:$0xff]   ;;  %v6414_v25 = vld [vmem:[%s6364_s11 + $0x60] sm:$0xff]   ;;  %8250 = vst [vmem:[#allocation79_spill] sm:$0xff] %v6429_v49  ;;  %8251 = vst [vmem:[#allocation80_spill] sm:$0xff] %v6432_v13 }
 0x1c9   : > { %8242 = vst [vmem:[#allocation71_spill] sm:$0xff] %v6395_v22  ;;  %8246 = vst [vmem:[#allocation75_spill] sm:$0xff] %v6414_v25 }
 0x1ca   : > { %1208 = vmax.xlane.f32.xlu1 %v1207_v38  ;;  %v6411_v38 = vld [vmem:[%s6364_s11 + $0xa8] sm:$0xff]  }
 0x1cb   : > { %8245 = vst [vmem:[#allocation74_spill] sm:$0xff] %v6411_v38 }
 0x1db   : > { %2219 = vrot.lane.b32.xlu1 %v5821_v2, %s5565_s23  ;;  %v6367_v2 = vld [vmem:[%s6364_s11 + $0x78] sm:$0xff]  }
 0x1dc   : > { %4392 = vmatprep.subr.bf16.mxu0 %v6367_v2 }
 0x1df   : > { %2251 = vrot.lane.b32.xlu1 %v5825_v3, %s5565_s23  ;;  %v6371_v3 = vld [vmem:[%s6364_s11 + $0x38] sm:$0xff]  }
 0x1e0   : > { %4393 = vmatpush3.bf16.msra.mxu0 %v6371_v3 }
 0x1e3   : > { %2217 = vrot.lane.b32.xlu1 %v5835_v8, %s5565_s23  ;;  %v6374_v8 = vld [vmem:[%s6364_s11 + $0xf8] sm:$0xff]  }
 0x1e4   : > { %4456 = vmatprep.subr.bf16.mxu1 %v6374_v8 }
 0x1e7   : > { %2249 = vrot.lane.b32.xlu1 %v5839_v9, %s5565_s23  ;;  %v6379_v9 = vld [vmem:[%s6364_s11 + $0xb8] sm:$0xff]  }
 0x1e8   : > { %4457 = vmatpush3.bf16.msra.mxu1 %v6379_v9 }
 0x1e9   : > { %4458 = vmatprep.subr.bf16.mxu1 %v6390_v54 }
 0x1eb   : > { %2215 = vrot.lane.b32.xlu1 %v5849_v14, %s5565_s23  ;;  %v6382_v14 = vld [vmem:[%s6364_s11 + $0x70] sm:$0xff]  }
 0x1ec   : > { %4394 = vmatprep.subr.bf16.mxu0 %v6382_v14  ;;  %4459 = vmatpush3.bf16.msra.mxu1 %v6395_v22 }
 0x1ed   : > { %4395 = vmatpush3.bf16.msra.mxu0 %v6387_v29  ;;  %4460 = vmatprep.subr.bf16.mxu1 %v6406_v42 }
 0x1ee   : > { %4396 = vmatprep.subr.bf16.mxu0 %v6398_v63  ;;  %v4927_v63 = vld [vmem:[%s6364_s11 + $0xc0] sm:$0xff]  }
 0x1f0   : > { %4461 = vmatpush3.bf16.msra.mxu1 %v6411_v38 }
 0x1f1   : > { %4397 = vmatpush3.bf16.msra.mxu0 %v6403_v10  ;;  %4462 = vmatprep.subr.bf16.mxu1 %v6426_v1  ;;  %v4921_v10 = vld [vmem:[%s6364_s11 + $0x8] sm:$0xff]  }
 0x1f2   : > { %4398 = vmatprep.subr.bf16.mxu0 %v6414_v25  ;;  %v6448_v25 = vld [vmem:[%s6364_s11 + $0x98] sm:$0xff]  }
 0x1f3   : > { %8255 = vst [vmem:[#allocation84_spill] sm:$0xff] %v6448_v25 }
 0x1f4   : > { %4463 = vmatpush3.bf16.msra.mxu1 %v6432_v13 }
 0x1f5   : > { %4399 = vmatpush3.bf16.msra.mxu0 %v6417_v60  ;;  %v6445_v60 = vld [vmem:[%s6364_s11 + $0x10] sm:$0xff]   ;;  %4464 = vmatprep.subr.bf16.mxu1 %v6442_v7  ;;  %v5314_v7 = vld [vmem:[%s5811_s18 + $0xf8] sm:$0xff]  }
 0x1f6   : > { %4400 = vmatprep.subr.bf16.mxu0 %v6423_v20  ;;  %8254 = vst [vmem:[#allocation83_spill] sm:$0xff] %v6445_v60  ;;  %v6458_v20 = vld [vmem:[%s6364_s11 + $0xd0] sm:$0xff]  }
 0x1f7   : > { %8257 = vst [vmem:[#allocation86_spill] sm:$0xff] %v6458_v20 }
 0x1f8   : > { %4465 = vmatpush3.bf16.msra.mxu1 %v6448_v25  ;;  %v4924_v25 = vld [vmem:[%s6364_s11 + $0xc8] sm:$0xff]  }
 0x1f9   : > { %4401 = vmatpush3.bf16.msra.mxu0 %v6429_v49  ;;  %v6455_v49 = vld [vmem:[%s6364_s11 + $0x48] sm:$0xff]   ;;  %4466 = vmatprep.subr.bf16.mxu1 %v6458_v20  ;;  %v6486_v20 = vld [vmem:[#allocation2 + $0x10] sm:$0xff] }
 0x1fa   : > { %4402 = vmatprep.subr.bf16.mxu0 %v6439_v16  ;;  %8256 = vst [vmem:[#allocation85_spill] sm:$0xff] %v6455_v49  ;;  %v6466_v16 = vld [vmem:[#allocation2] sm:$0xff] }
 0x1fc   : > { %4467 = vmatpush3.bf16.msra.mxu1 %v6462_v56 }
 0x1fd   : > { %4403 = vmatpush3.bf16.msra.mxu0 %v6445_v60  ;;  %4468 = vmatprep.subr.bf16.mxu1 %v4924_v25 }
 0x1fe   : > { %4404 = vmatprep.subr.bf16.mxu0 %v6455_v49  ;;  %v4926_v49 = vld [vmem:[%s6364_s11 + $0x88] sm:$0xff]  }
 0x200   : > { %4469 = vmatpush3.bf16.msra.mxu1 %v4926_v49  ;;  %v6500_v49 = vld [vmem:[#allocation2 + $0x18] sm:$0xff] }
 0x201   : > { %4405 = vmatpush3.bf16.msra.mxu0 %v4921_v10  ;;  %v4925_v10 = vld [vmem:[%s6364_s11] sm:$0xff]   ;;  %4470 = vmatprep.subr.bf16.mxu1 %v4927_v63 }
 0x202   : > { %4406 = vmatprep.subr.bf16.mxu0 %v4923_v45  ;;  %v4928_v45 = vld [vmem:[%s6364_s11 + $0x80] sm:$0xff]  }
 0x204   : > { %4471 = vmatpush3.bf16.msra.mxu1 %v4928_v45  ;;  %v5316_v45 = vld [vmem:[%s5811_s18 + $0xf0] sm:$0xff]  }
 0x205   : > { %v1134_v60 = vpop.xlane.xlu0 %1133  ;;  %4407 = vmatpush3.bf16.msra.mxu0 %v4925_v10  ;;  %v5315_v10 = vld [vmem:[%s5811_s18 + $0x70] sm:$0xff]  }
 0x206   : > { %v6470_v47 = vmax.f32 %v6466_v16, %v1134_v60 }
 0x208   : > { %2173 = vst.msk [vmem:[#allocation2] sm:$0xff] %vm309_vm1, %v6470_v47  ;;  %1260 = vperm.xlu0 %4863, %v6470_v47  }
 0x209   : > { %v1139_v56 = vpop.xlane.xlu0 %1138 }
 0x20a   : > { %v6484_v60 = vmax.f32 %v6472_v52, %v1139_v56 }
 0x20c   : > { %2174 = vst.msk [vmem:[#allocation2 + $0x8] sm:$0xff] %vm309_vm1, %v6484_v60  ;;  %1265 = vperm.xlu1 %4864, %v6484_v60   ;;  %2235 = vrot.lane.b32.xlu0 %v5313_v40, %s5565_s23 }
 0x20d   : > { %v1144_v56 = vpop.xlane.xlu1 %1143 }
 0x20e   : > { %v6498_v25 = vmax.f32 %v6486_v20, %v1144_v56  ;;  %v6512_v56 = vld [vmem:[#allocation2 + $0x20] sm:$0xff] }
 0x210   : > { %2175 = vst.msk [vmem:[#allocation2 + $0x10] sm:$0xff] %vm309_vm1, %v6498_v25  ;;  %1270 = vperm.xlu1 %4864, %v6498_v25   ;;  %2267 = vrot.lane.b32.xlu0 %v5314_v7, %s5565_s23 }
 0x211   : > { %v1149_v40 = vpop.xlane.xlu1 %1148 }
 0x212   : > { %v6510_v63 = vmax.f32 %v6500_v49, %v1149_v40  ;;  %v6524_v40 = vld [vmem:[#allocation2 + $0x28] sm:$0xff] }
 0x214   : > { %2176 = vst.msk [vmem:[#allocation2 + $0x18] sm:$0xff] %vm309_vm1, %v6510_v63  ;;  %1275 = vperm.xlu1 %4864, %v6510_v63   ;;  %2233 = vrot.lane.b32.xlu0 %v5315_v10, %s5565_s23 }
 0x215   : > { %v1154_v22 = vpop.xlane.xlu0 %1153 }
 0x216   : > { %v6522_v7 = vmax.f32 %v6512_v56, %v1154_v22  ;;  %v6536_v22 = vld [vmem:[#allocation2 + $0x30] sm:$0xff] }
 0x218   : > { %2177 = vst.msk [vmem:[#allocation2 + $0x20] sm:$0xff] %vm309_vm1, %v6522_v7  ;;  %1280 = vperm.xlu1 %4864, %v6522_v7   ;;  %2265 = vrot.lane.b32.xlu0 %v5316_v45, %s5565_s23 }
 0x219   : > { %v1159_v33 = vpop.xlane.xlu1 %1158 }
 0x21a   : > { %v6534_v10 = vmax.f32 %v6524_v40, %v1159_v33 }
 0x21c   : > { %2178 = vst.msk [vmem:[#allocation2 + $0x28] sm:$0xff] %vm309_vm1, %v6534_v10  ;;  %1285 = vperm.xlu1 %4864, %v6534_v10   ;;  %2231 = vrot.lane.b32.xlu0 %v5317_v27, %s5565_s23 }
 0x21d   : > { %v1164_v13 = vpop.xlane.xlu0 %1163 }
 0x21e   : > { %v6546_v45 = vmax.f32 %v6536_v22, %v1164_v13  ;;  %v6560_v13 = vld [vmem:[#allocation2 + $0x40] sm:$0xff] }
 0x220   : > { %2179 = vst.msk [vmem:[#allocation2 + $0x30] sm:$0xff] %vm309_vm1, %v6546_v45  ;;  %1290 = vperm.xlu1 %4864, %v6546_v45   ;;  %2263 = vrot.lane.b32.xlu0 %v5318_v26, %s5565_s23 }
 0x221   : > { %v1169_v29 = vpop.xlane.xlu1 %1168 }
 0x222   : > { %v6558_v27 = vmax.f32 %v6548_v24, %v1169_v29  ;;  %v5319_v29 = vld [vmem:[%s5811_s18 + $0xa8] sm:$0xff]  }
 0x224   : > { %2180 = vst.msk [vmem:[#allocation2 + $0x38] sm:$0xff] %vm309_vm1, %v6558_v27  ;;  %1295 = vperm.xlu1 %4864, %v6558_v27  }
 0x225   : > { %v1174_v33 = vpop.xlane.xlu0 %1173 }
 0x226   : > { %v6568_v21 = vmax.f32 %v6560_v13, %v1174_v33  ;;  %v5320_v33 = vld [vmem:[%s5811_s18 + $0x20] sm:$0xff]  }
 0x228   : > { %2181 = vst.msk [vmem:[#allocation2 + $0x40] sm:$0xff] %vm309_vm1, %v6568_v21  ;;  %2247 = vrot.lane.b32.xlu1 %v5319_v29, %s5565_s23  ;;  %v6592_v29 = vld [vmem:[#allocation2 + $0x58] sm:$0xff] }
 0x229   : > { %v1179_v19 = vpop.xlane.xlu1 %1178  ;;  %8259 = vst [vmem:[#allocation88_spill] sm:$0xff] %v6592_v29 }
 0x22a   : > { %v6579_v1 = vmax.f32 %v6570_v17, %v1179_v19  ;;  %v5322_v19 = vld [vmem:[%s5811_s18 + $0xa0] sm:$0xff]  }
 0x22c   : > { %2182 = vst.msk [vmem:[#allocation2 + $0x48] sm:$0xff] %vm309_vm1, %v6579_v1  ;;  %1300 = vperm.xlu1 %4864, %v6568_v21   ;;  %1305 = vperm.xlu0 %4863, %v6579_v1  }
 0x230   : > { %2213 = vrot.lane.b32.xlu1 %v5320_v33, %s5565_s23  ;;  %2229 = vrot.lane.b32.xlu0 %v5321_v6, %s5565_s23  ;;  %v6616_v6 = vld [vmem:[#allocation2 + $0x68] sm:$0xff] }
 0x231   : > { %8262 = vst [vmem:[#allocation91_spill] sm:$0xff] %v6616_v6 }
 0x23e   : > { %v1184_v26 = vpop.xlane.xlu0 %1183 }
 0x23f   : > { %v6590_v54 = vmax.f32 %v6581_v15, %v1184_v26 }
 0x241   : > { %2183 = vst.msk [vmem:[#allocation2 + $0x50] sm:$0xff] %vm309_vm1, %v6590_v54  ;;  %1310 = vperm.xlu1 %4864, %v6590_v54  }
 0x243   : > { %v1189_v11 = vpop.xlane.xlu1 %1188 }
 0x244   : > { %v6603_v26 = vmax.f32 %v6592_v29, %v1189_v11  ;;  %v5323_v29 = vld [vmem:[%s5811_s18 + $0xe0] sm:$0xff]   ;;  %v5324_v11 = vld [vmem:[%s5811_s18 + $0x18] sm:$0xff]  }
 0x245   : > { %2245 = vrot.lane.b32.xlu1 %v5322_v19, %s5565_s23 }
 0x246   : > { %8260 = vst [vmem:[#allocation89_spill] sm:$0xff] %v6603_v26  ;;  %2184 = vst.msk [vmem:[#allocation2 + $0x58] sm:$0xff] %vm309_vm1, %v6603_v26  ;;  %1315 = vperm.xlu0 %4863, %v6603_v26  }
 0x247   : > { %v1194_v33 = vpop.xlane.xlu0 %1193 }
 0x248   : > { %v6614_v38 = vmax.f32 %v6605_v4, %v1194_v33  ;;  %v5329_v4 = vld [vmem:[%s5811_s18 + $0x50] sm:$0xff]  }
 0x24a   : > { %2185 = vst.msk [vmem:[#allocation2 + $0x60] sm:$0xff] %vm309_vm1, %v6614_v38  ;;  %2261 = vrot.lane.b32.xlu0 %v5323_v29, %s5565_s23  ;;  %1320 = vperm.xlu1 %4864, %v6614_v38  }
 0x24b   : > { %v1199_v26 = vpop.xlane.xlu1 %1198 }
 0x24c   : > { %v6627_v33 = vmax.f32 %v6616_v6, %v1199_v26  ;;  %v6640_v26 = vld [vmem:[#allocation2 + $0x78] sm:$0xff] }
 0x24d   : > { %8266 = vst [vmem:[#allocation95_spill] sm:$0xff] %v6640_v26 }
 0x24e   : > { %8263 = vst [vmem:[#allocation92_spill] sm:$0xff] %v6627_v33  ;;  %2186 = vst.msk [vmem:[#allocation2 + $0x68] sm:$0xff] %vm309_vm1, %v6627_v33  ;;  %1325 = vperm.xlu0 %4863, %v6627_v33   ;;  %2211 = vrot.lane.b32.xlu1 %v5324_v11, %s5565_s23  ;;  %v5325_v33 = vld [vmem:[%s5811_s18 + $0x58] sm:$0xff]  }
 0x24f   : > { %v1204_v19 = vpop.xlane.xlu0 %1203  ;;  %v5326_v11 = vld [vmem:[%s5811_s18 + $0x98] sm:$0xff]  }
 0x250   : > { %v6638_v29 = vmax.f32 %v6629_v0, %v1204_v19  ;;  %v5338_v0 = vld [vmem:[%s5811_s18 + $0x80] sm:$0xff]  }
 0x252   : > { %8265 = vst [vmem:[#allocation94_spill] sm:$0xff] %v6638_v29  ;;  %2187 = vst.msk [vmem:[#allocation2 + $0x70] sm:$0xff] %vm309_vm1, %v6638_v29  ;;  %2227 = vrot.lane.b32.xlu0 %v5325_v33, %s5565_s23  ;;  %1330 = vperm.xlu1 %4864, %v6638_v29   ;;  %v5327_v33 = vld [vmem:[%s5811_s18 + $0xd8] sm:$0xff]   ;;  %v5334_v29 = vld [vmem:[%s5811_s18 + $0x88] sm:$0xff]  }
 0x253   : > { %v1209_v19 = vpop.xlane.xlu1 %1208 }
 0x254   : > { %v6651_v6 = vmax.f32 %v6640_v26, %v1209_v19  ;;  %v5328_v19 = vld [vmem:[%s5811_s18 + $0x10] sm:$0xff]  }
 0x255   : > { %v5330_v26 = vld [vmem:[%s5811_s18 + $0x90] sm:$0xff]  }
 0x256   : > { %8267 = vst [vmem:[#allocation96_spill] sm:$0xff] %v6651_v6  ;;  %2188 = vst.msk [vmem:[#allocation2 + $0x78] sm:$0xff] %vm309_vm1, %v6651_v6  ;;  %1335 = vperm.xlu0 %4863, %v6651_v6   ;;  %2243 = vrot.lane.b32.xlu1 %v5326_v11, %s5565_s23  ;;  %v5331_v6 = vld [vmem:[%s5811_s18 + $0xd0] sm:$0xff]   ;;  %v5332_v11 = vld [vmem:[%s5811_s18 + $0x8] sm:$0xff]  }
 0x25a   : > { %2259 = vrot.lane.b32.xlu0 %v5327_v33, %s5565_s23  ;;  %2209 = vrot.lane.b32.xlu1 %v5328_v19, %s5565_s23  ;;  %v5333_v33 = vld [vmem:[%s5811_s18 + $0x48] sm:$0xff]  }
 0x25b   : > { %v5335_v19 = vld [vmem:[%s5811_s18 + $0xc8] sm:$0xff]  }
 0x25e   : > { %2225 = vrot.lane.b32.xlu0 %v5329_v4, %s5565_s23  ;;  %2241 = vrot.lane.b32.xlu1 %v5330_v26, %s5565_s23  ;;  %v5336_v4 = vld [vmem:[%s5811_s18] sm:$0xff]  }
 0x25f   : > { %v5337_v26 = vld [vmem:[%s5811_s18 + $0x40] sm:$0xff]  }
 0x262   : > { %2257 = vrot.lane.b32.xlu0 %v5331_v6, %s5565_s23  ;;  %2207 = vrot.lane.b32.xlu1 %v5332_v11, %s5565_s23  ;;  %v5339_v6 = vld [vmem:[%s5811_s18 + $0xc0] sm:$0xff]   ;;  %v8269_v11 = vsub.f32 %v6472_v52, %v6484_v60  ;;  %v8275_v52 = vsub.f32 %v6548_v24, %v6558_v27  ;;  %v8277_v60 = vsub.f32 %v6570_v17, %v6579_v1 }
 0x266   : > { %2223 = vrot.lane.b32.xlu0 %v5333_v33, %s5565_s23  ;;  %2239 = vrot.lane.b32.xlu1 %v5334_v29, %s5565_s23  ;;  %v8268_v29 = vsub.f32 %v6466_v16, %v6470_v47 }
 0x268   : > { %4929 = vpow2.f32 %v8268_v29 }
 0x269   : > { %4931 = vpow2.f32 %v8269_v11 }
 0x26a   : > { %2255 = vrot.lane.b32.xlu0 %v5335_v19, %s5565_s23  ;;  %2205 = vrot.lane.b32.xlu1 %v5336_v4, %s5565_s23 }
 0x26e   : > { %2221 = vrot.lane.b32.xlu0 %v5337_v26, %s5565_s23  ;;  %2237 = vrot.lane.b32.xlu1 %v5338_v0, %s5565_s23  ;;  %v6707_v0 = vpop.permute.xlu1 %2219 }
 0x272   : > { %2253 = vrot.lane.b32.xlu0 %v5339_v6, %s5565_s23  ;;  %2189 = vrot.lane.b32.xlu1 %v5876_v36, %s5565_s23  ;;  %v8270_v36 = vsub.f32 %v6486_v20, %v6498_v25  ;;  %v6726_v47 = vpop.permute.xlu1 %2251  ;;  %v8279_v6 = vld [vmem:[#allocation24_spill] sm:$0xff] }
 0x274   : > { %4933 = vpow2.f32 %v8270_v36 }
 0x276   : > { %2191 = vrot.lane.b32.xlu0 %v5906_v57, %s5565_s23  ;;  %2193 = vrot.lane.b32.xlu1 %v5918_v62, %s5565_s23  ;;  %v8271_v57 = vsub.f32 %v6500_v49, %v6510_v63  ;;  %v8272_v62 = vsub.f32 %v6512_v56, %v6522_v7  ;;  %v6747_v24 = vpop.permute.xlu1 %2217 }
 0x278   : > { %4935 = vpow2.f32 %v8271_v57 }
 0x279   : > { %4937 = vpow2.f32 %v8272_v62 }
 0x27a   : > { %2195 = vrot.lane.b32.xlu0 %v5930_v5, %s5565_s23  ;;  %2197 = vrot.lane.b32.xlu1 %v5942_v12, %s5565_s23  ;;  %v8273_v5 = vsub.f32 %v6524_v40, %v6534_v10  ;;  %v8274_v12 = vsub.f32 %v6536_v22, %v6546_v45  ;;  %v6760_v17 = vpop.permute.xlu1 %2249 }
 0x27c   : > { %4939 = vpow2.f32 %v8273_v5 }
 0x27d   : > { %4941 = vpow2.f32 %v8274_v12  ;;  %v8282_v12 = vld [vmem:[#allocation27_spill] sm:$0xff] }
 0x27e   : > { %2199 = vrot.lane.b32.xlu0 %v5954_v18, %s5565_s23  ;;  %2201 = vrot.lane.b32.xlu1 %v5966_v23, %s5565_s23  ;;  %v6728_v18 = vpop.eup %4929  ;;  %4943 = vpow2.f32 %v8275_v52  ;;  %v6770_v7 = vpop.permute.xlu1 %2215 }
 0x27f   : > { %v6733_v16 = vpop.eup %4931 }
 0x281   : > { %v6737_v23 = vpop.eup %4933 }
 0x282   : > { %2203 = vrot.lane.b32.xlu0 %v5978_v28, %s5565_s23  ;;  %1634 = vperm.xlu1 %4864, %v6733_v16   ;;  %v8276_v28 = vsub.f32 %v6560_v13, %v6568_v21  ;;  %v8278_v21 = vsub.f32 %v6581_v15, %v6590_v54 }
 0x283   : > { %v1261_v15 = vpop.permute.xlu0 %1260 }
 0x284   : > { %4945 = vpow2.f32 %v8276_v28  ;;  %v1338_v40 = vsub.f32 %v6024_v30, %v1261_v15  ;;  %v1339_v10 = vsub.f32 %v6028_v32, %v1261_v15  ;;  %v1340_v22 = vsub.f32 %v6026_v31, %v1261_v15  ;;  %v8283_v28 = vld [vmem:[#allocation26_spill] sm:$0xff] }
 0x285   : > { %v6742_v20 = vpop.eup %4935  ;;  %4947 = vpow2.f32 %v8277_v60  ;;  %v1341_v45 = vsub.f32 %v6032_v34, %v1261_v15 }
 0x286   : > { %1629 = vperm.xlu0 %4863, %v6728_v18   ;;  %1639 = vperm.xlu1 %4864, %v6737_v23   ;;  %v6751_v25 = vpop.eup %4937  ;;  %4949 = vpow2.f32 %v8278_v21  ;;  %v8284_v21 = vld [vmem:[#allocation70_spill] sm:$0xff] }
 0x287   : > { %4951 = vpow2.f32 %v1338_v40  ;;  %v1266_v27 = vpop.permute.xlu1 %1265  ;;  %v2236_v13 = vpop.permute.xlu0 %2235  ;;  %v8285_v40 = vld [vmem:[#allocation28_spill] sm:$0xff] }
 0x288   : > { %4953 = vpow2.f32 %v1339_v10  ;;  %v1342_v19 = vsub.f32 %v6034_v35, %v1266_v27  ;;  %v1343_v30 = vsub.f32 %v6039_v39, %v1266_v27  ;;  %v1344_v32 = vsub.f32 %v6036_v37, %v1266_v27  ;;  %4728 = vmatprep.subr.msk.bf16.mxu0 %vm374_vm0, %v2236_v13 }
 0x289   : > { %v6753_v49 = vpop.eup %4939  ;;  %4955 = vpow2.f32 %v1340_v22  ;;  %v1345_v31 = vsub.f32 %v6043_v41, %v1266_v27  ;;  %v8286_v22 = vld [vmem:[#allocation78_spill] sm:$0xff] }
 0x28a   : > { %1644 = vperm.xlu0 %4863, %v6742_v20   ;;  %1649 = vperm.xlu1 %4864, %v6751_v25   ;;  %v6762_v1 = vpop.eup %4941  ;;  %4957 = vpow2.f32 %v1341_v45 }
 0x28b   : > { %v6764_v63 = vpop.eup %4943  ;;  %4959 = vpow2.f32 %v1342_v19  ;;  %v1271_v34 = vpop.permute.xlu1 %1270 }
 0x28c   : > { %4961 = vpow2.f32 %v1343_v30  ;;  %v2268_v4 = vpop.permute.xlu0 %2267  ;;  %v1346_v35 = vsub.f32 %v6046_v43, %v1271_v34  ;;  %v1347_v39 = vsub.f32 %v6051_v46, %v1271_v34  ;;  %v1348_v37 = vsub.f32 %v6048_v44, %v1271_v34 }
 0x28d   : > { %4963 = vpow2.f32 %v1344_v32  ;;  %4736 = vmatprep.subr.msk.bf16.mxu1 %vm374_vm0, %v2268_v4  ;;  %v1349_v41 = vsub.f32 %v6055_v48, %v1271_v34 }
 0x28e   : > { %1654 = vperm.xlu0 %4863, %v6753_v49   ;;  %1659 = vperm.xlu1 %4864, %v6762_v1   ;;  %4965 = vpow2.f32 %v1345_v31  ;;  %v2315_v31 = vsel %vm374_vm0, %v6707_v0, 0 }
 0x28f   : > { %4967 = vpow2.f32 %v1346_v35 }
 0x290   : > { %4969 = vpow2.f32 %v1347_v39  ;;  %v6805_v48 = vpop.permute.xlu0 %2233  ;;  %v8287_v39 = vld [vmem:[#allocation29_spill] sm:$0xff] }
 0x291   : > { %v6768_v56 = vpop.eup %4945  ;;  %4971 = vpow2.f32 %v1348_v37 }
 0x292   : > { %1664 = vperm.xlu0 %4863, %v6764_v63   ;;  %v6772_v54 = vpop.eup %4947  ;;  %1669 = vperm.xlu1 %4864, %v6768_v56   ;;  %4973 = vpow2.f32 %v1349_v41  ;;  %v8288_v41 = vld [vmem:[#allocation31_spill] sm:$0xff] }
 0x293   : > { %v6780_v33 = vpop.eup %4949 }
 0x296   : > { %1674 = vperm.xlu0 %4863, %v6772_v54   ;;  %3288 = vrot.lane.b32.xlu1 %v6367_v2, %s5565_s23  ;;  %v1276_v2 = vpop.permute.xlu1 %1275 }
 0x297   : > { %v1350_v43 = vsub.f32 %v6058_v50, %v1276_v2  ;;  %v1351_v46 = vsub.f32 %v6063_v53, %v1276_v2  ;;  %v1352_v44 = vsub.f32 %v6060_v51, %v1276_v2 }
 0x299   : > { %4975 = vpow2.f32 %v1350_v43  ;;  %v8289_v43 = vld [vmem:[#allocation30_spill] sm:$0xff] }
 0x29a   : > { %1679 = vperm.xlu0 %4863, %v6780_v33   ;;  %3320 = vrot.lane.b32.xlu1 %v6374_v8, %s5565_s23  ;;  %v1353_v8 = vsub.f32 %v6067_v55, %v1276_v2  ;;  %4977 = vpow2.f32 %v1351_v46  ;;  %v1281_v26 = vpop.permute.xlu1 %1280 }
 0x29b   : > { %4979 = vpow2.f32 %v1352_v44  ;;  %v1354_v53 = vsub.f32 %v6070_v58, %v1281_v26  ;;  %v1355_v51 = vsub.f32 %v6075_v61, %v1281_v26  ;;  %v1357_v29 = vsub.f32 %v8279_v6, %v1281_v26  ;;  %v2266_v58 = vpop.permute.xlu0 %2265  ;;  %v8290_v44 = vld [vmem:[#allocation69_spill] sm:$0xff] }
 0x29c   : > { %4981 = vpow2.f32 %v1353_v8 }
 0x29e   : > { %3304 = vrot.lane.b32.xlu0 %v6379_v9, %s5565_s23  ;;  %3272 = vrot.lane.b32.xlu1 %v6371_v3, %s5565_s23  ;;  %v4952_v9 = vpop.eup %4951  ;;  %v1356_v3 = vsub.f32 %v6072_v59, %v1281_v26  ;;  %4983 = vpow2.f32 %v1354_v53  ;;  %v1286_v61 = vpop.permute.xlu1 %1285  ;;  %v2363_v53 = vsel %vm374_vm0, %v6726_v47, 0 }
 0x29f   : > { %v4954_v50 = vpop.eup %4953  ;;  %4985 = vpow2.f32 %v1355_v51  ;;  %v1359_v52 = vsub.f32 %v8282_v12, %v1286_v61  ;;  %v1360_v60 = vsub.f32 %v8283_v28, %v1286_v61  ;;  %v1361_v10 = vsub.f32 %v8285_v40, %v1286_v61  ;;  %v2232_v0 = vpop.permute.xlu0 %2231 }
 0x2a0   : > { %v4956_v55 = vpop.eup %4955  ;;  %v1498_v11 = vadd.f32 %v4954_v50, %v4952_v9  ;;  %4987 = vpow2.f32 %v1356_v3  ;;  %v8292_v3 = vld [vmem:[#allocation80_spill] sm:$0xff] }
 0x2a1   : > { %v4958_v36 = vpop.eup %4957  ;;  %4989 = vpow2.f32 %v1357_v29  ;;  %v8293_v29 = vld [vmem:[#allocation33_spill] sm:$0xff] }
 0x2a2   : > { %3316 = vrot.lane.b32.xlu0 %v6406_v42, %s5565_s23  ;;  %3286 = vrot.lane.b32.xlu1 %v6382_v14, %s5565_s23  ;;  %v8280_v42 = vld [vmem:[#allocation74_spill] sm:$0xff]  ;;  %v6817_v57 = vpop.eup %4959  ;;  %v1499_v62 = vadd.f32 %v4956_v55, %v1498_v11  ;;  %v8281_v14 = vld [vmem:[#allocation25_spill] sm:$0xff]  ;;  %v1291_v4 = vpop.permute.xlu1 %1290  ;;  %v8294_v11 = vld [vmem:[#allocation35_spill] sm:$0xff] }
 0x2a3   : > { %v6819_v59 = vpop.eup %4961  ;;  %v1358_v5 = vsub.f32 %v8281_v14, %v1286_v61  ;;  %v1723_v27 = vpack.c.bf16 %v6817_v57, %v4952_v9  ;;  %v1362_v37 = vsub.f32 %v8287_v39, %v1291_v4  ;;  %v1363_v2 = vsub.f32 %v8288_v41, %v1291_v4  ;;  %v8291_v9 = vld [vmem:[#allocation32_spill] sm:$0xff]  ;;  %v2264_v40 = vpop.permute.xlu0 %2263 }
 0x2a4   : > { %v6826_v15 = vpop.eup %4963  ;;  %v1724_v45 = vpack.c.bf16 %v6819_v59, %v4954_v50  ;;  %v6836_v30 = vadd.f32 %v4958_v36, %v1499_v62  ;;  %v1364_v46 = vsub.f32 %v8289_v43, %v1291_v4  ;;  %v1365_v26 = vsub.f32 %v8291_v9, %v1291_v4  ;;  %v8296_v62 = vld [vmem:[#allocation71_spill] sm:$0xff]  ;;  %v8297_v14 = vld [vmem:[#allocation36_spill] sm:$0xff]  ;;  %v8301_v9 = vld [vmem:[#allocation37_spill] sm:$0xff] }
 0x2a5   : > { %v6833_v13 = vpop.eup %4965  ;;  %4991 = vpow2.f32 %v1358_v5  ;;  %v1725_v19 = vpack.c.bf16 %v6826_v15, %v4956_v55 }
 0x2a6   : > { %3300 = vrot.lane.b32.xlu0 %v8280_v42, %s5565_s23  ;;  %3318 = vrot.lane.b32.xlu1 %v8284_v21, %s5565_s23  ;;  %v6838_v32 = vpop.eup %4967  ;;  %4993 = vpow2.f32 %v1359_v52  ;;  %v1726_v34 = vpack.c.bf16 %v6833_v13, %v4958_v36  ;;  %v1296_v55 = vpop.permute.xlu1 %1295  ;;  %v8295_v36 = vld [vmem:[#allocation34_spill] sm:$0xff] }
 0x2a7   : > { %1979 = vmatprep.mubr.bf16.mxu0 %v1724_v45  ;;  %v6843_v35 = vpop.eup %4969  ;;  %4995 = vpow2.f32 %v1360_v60  ;;  %v1366_v42 = vsub.f32 %v8293_v29, %v1296_v55  ;;  %v1367_v47 = vsub.f32 %v8294_v11, %v1296_v55  ;;  %v1368_v61 = vsub.f32 %v8295_v36, %v1296_v55  ;;  %v8305_v29 = vld [vmem:[#allocation41_spill] sm:$0xff] }
 0x2a8   : > { %1980 = vmatmul.mubr.bf16.vlgmr.msra.gmra.mxu0 %v1723_v27  ;;  %v6850_v8 = vpop.eup %4971  ;;  %4997 = vpow2.f32 %v1361_v10  ;;  %2076 = vmatprep.mubr.bf16.mxu1 %v1726_v34  ;;  %v1369_v5 = vsub.f32 %v8297_v14, %v1296_v55  ;;  %v8298_v10 = vld [vmem:[#allocation82_spill] sm:$0xff]  ;;  %v8306_v11 = vld [vmem:[#allocation73_spill] sm:$0xff]  ;;  %v8307_v14 = vld [vmem:[#allocation43_spill] sm:$0xff] }
 0x2a9   : > { %4521 = vmatpush3.bf16.xpose.msra.mxu0 %v2315_v31  ;;  %v6853_v50 = vpop.eup %4973  ;;  %4999 = vpow2.f32 %v1362_v37  ;;  %2077 = vmatmul.mubr.bf16.vlgmr.msra.gmra.mxu1 %v1725_v19  ;;  %v2312_v19 = vsel %vm374_vm0, %v6747_v24, 0  ;;  %v8299_v31 = vld [vmem:[#allocation72_spill] sm:$0xff]  ;;  %v2360_v37 = vsel %vm374_vm0, %v6760_v17, 0  ;;  %v8303_v17 = vld [vmem:[#allocation38_spill] sm:$0xff] }
 0x2aa   : > { %3314 = vrot.lane.b32.xlu0 %v8286_v22, %s5565_s23  ;;  %3270 = vrot.lane.b32.xlu1 %v8290_v44, %s5565_s23  ;;  %v4976_v51 = vpop.eup %4975  ;;  %5001 = vpow2.f32 %v1363_v2  ;;  %v2248_v45 = vpop.permute.xlu1 %2247  ;;  %v8300_v2 = vld [vmem:[#allocation84_spill] sm:$0xff] }
 0x2ab   : > { %4729 = vmatprep.subr.msk.bf16.mxu0 %vm374_vm0, %v6805_v48  ;;  %4553 = vmatpush3.bf16.xpose.msra.mxu1 %v2363_v53  ;;  %v4978_v6 = vpop.eup %4977  ;;  %5003 = vpow2.f32 %v1364_v46  ;;  %v1727_v52 = vpack.c.bf16 %v4976_v51, %v6838_v32  ;;  %v1306_v46 = vpop.permute.xlu0 %1305  ;;  %v8302_v53 = vld [vmem:[#allocation39_spill] sm:$0xff] }
 0x2ac   : > { %4737 = vmatprep.subr.msk.bf16.mxu1 %vm374_vm0, %v2266_v58  ;;  %v4980_v48 = vpop.eup %4979  ;;  %5005 = vpow2.f32 %v1365_v26  ;;  %v1728_v12 = vpack.c.bf16 %v4978_v6, %v6843_v35  ;;  %v1513_v60 = vadd.f32 %v4978_v6, %v4976_v51 }
 0x2ad   : > { %v4982_v28 = vpop.eup %4981  ;;  %5007 = vpow2.f32 %v1366_v42  ;;  %v1729_v58 = vpack.c.bf16 %v4980_v48, %v6850_v8  ;;  %v1374_v42 = vsub.f32 %v8305_v29, %v1306_v46 }
 0x2ae   : > { %3298 = vrot.lane.b32.xlu0 %v8292_v3, %s5565_s23  ;;  %3302 = vrot.lane.b32.xlu1 %v8296_v62, %s5565_s23  ;;  %v6871_v21 = vpop.eup %4983  ;;  %5009 = vpow2.f32 %v1367_v47  ;;  %v1730_v22 = vpack.c.bf16 %v4982_v28, %v6853_v50  ;;  %v1514_v34 = vadd.f32 %v4980_v48, %v1513_v60  ;;  %v1301_v43 = vpop.permute.xlu1 %1300 }
 0x2af   : > { %1987 = vmatprep.mubr.bf16.mxu0 %v1728_v12  ;;  %v6876_v27 = vpop.eup %4985  ;;  %5011 = vpow2.f32 %v1368_v61  ;;  %v1370_v26 = vsub.f32 %v8301_v9, %v1301_v43  ;;  %v1371_v51 = vsub.f32 %v8302_v53, %v1301_v43  ;;  %v1372_v3 = vsub.f32 %v8303_v17, %v1301_v43  ;;  %v8308_v12 = vld [vmem:[#allocation86_spill] sm:$0xff]  ;;  %v8311_v9 = vld [vmem:[#allocation75_spill] sm:$0xff] }
 0x2b0   : > { %1988 = vmatmul.mubr.bf16.gmra.mxu0 %v1727_v52  ;;  %v6882_v4 = vpop.eup %4987  ;;  %5013 = vpow2.f32 %v1369_v5  ;;  %2084 = vmatprep.mubr.bf16.mxu1 %v1730_v22  ;;  %v6889_v24 = vadd.f32 %v4982_v28, %v1514_v34  ;;  %v1375_v5 = vsub.f32 %v8307_v14, %v1306_v46  ;;  %v8310_v34 = vld [vmem:[#allocation44_spill] sm:$0xff] }
 0x2b1   : > { %4523 = vmatpush3.bf16.xpose.msra.mxu0 %v2312_v19  ;;  %v6884_v39 = vpop.eup %4989  ;;  %2085 = vmatmul.mubr.bf16.gmra.mxu1 %v1729_v58  ;;  %5015 = vpow2.f32 %v1370_v26  ;;  %v2230_v58 = vpop.permute.xlu0 %2229 }
 0x2b2   : > { %3312 = vrot.lane.b32.xlu0 %v8298_v10, %s5565_s23  ;;  %3284 = vrot.lane.b32.xlu1 %v8299_v31, %s5565_s23  ;;  %v4992_v41 = vpop.eup %4991  ;;  %5017 = vpow2.f32 %v1371_v51  ;;  %v2214_v28 = vpop.permute.xlu1 %2213  ;;  %v8309_v10 = vld [vmem:[#allocation42_spill] sm:$0xff]  ;;  %v2309_v31 = vsel %vm374_vm0, %v6770_v7, 0  ;;  %v8312_v51 = vld [vmem:[#allocation87_spill] sm:$0xff] }
 0x2b3   : > { %4730 = vmatprep.subr.msk.bf16.mxu0 %vm374_vm0, %v2232_v0  ;;  %4555 = vmatpush3.bf16.xpose.msra.mxu1 %v2360_v37  ;;  %v4994_v44 = vpop.eup %4993  ;;  %v8304_v0 = vld [vmem:[#allocation40_spill] sm:$0xff]  ;;  %v1731_v61 = vpack.c.bf16 %v4992_v41, %v6871_v21  ;;  %5019 = vpow2.f32 %v1372_v3  ;;  %v1376_v22 = vsub.f32 %v8309_v10, %v1306_v46  ;;  %v1377_v37 = vsub.f32 %v8310_v34, %v1306_v46  ;;  %v8314_v3 = vld [vmem:[#allocation47_spill] sm:$0xff] }
 0x2b4   : > { %4738 = vmatprep.subr.msk.bf16.mxu1 %vm374_vm0, %v2264_v40  ;;  %v4996_v55 = vpop.eup %4995  ;;  %v1373_v6 = vsub.f32 %v8304_v0, %v1301_v43  ;;  %v1732_v36 = vpack.c.bf16 %v4994_v44, %v6876_v27  ;;  %v1523_v60 = vadd.f32 %v4994_v44, %v4992_v41  ;;  %v2357_v41 = vsel %vm374_vm0, %v2248_v45, 0  ;;  %v8313_v45 = vld [vmem:[#allocation45_spill] sm:$0xff]  ;;  %v8315_v0 = vld [vmem:[#allocation46_spill] sm:$0xff] }
 0x2b5   : > { %v4998_v47 = vpop.eup %4997  ;;  %v1733_v62 = vpack.c.bf16 %v4996_v55, %v6882_v4 }
 0x2b6   : > { %3296 = vrot.lane.b32.xlu0 %v8300_v2, %s5565_s23  ;;  %3268 = vrot.lane.b32.xlu1 %v8306_v11, %s5565_s23  ;;  %v6904_v48 = vpop.eup %4999  ;;  %v1734_v52 = vpack.c.bf16 %v4998_v47, %v6884_v39  ;;  %5021 = vpow2.f32 %v1373_v6  ;;  %v1524_v2 = vadd.f32 %v4996_v55, %v1523_v60 }
 0x2b7   : > { %v6910_v40 = vpop.eup %5001  ;;  %1995 = vmatprep.mubr.bf16.mxu0 %v1732_v36  ;;  %5023 = vpow2.f32 %v1374_v42  ;;  %v8316_v42 = vld [vmem:[#allocation48_spill] sm:$0xff] }
 0x2b8   : > { %v6913_v19 = vpop.eup %5003  ;;  %2092 = vmatprep.mubr.bf16.mxu1 %v1734_v52  ;;  %1996 = vmatmul.mubr.bf16.gmra.mxu0 %v1731_v61  ;;  %5025 = vpow2.f32 %v1375_v5  ;;  %v6923_v53 = vadd.f32 %v4998_v47, %v1524_v2  ;;  %v8317_v47 = vld [vmem:[#allocation49_spill] sm:$0xff] }
 0x2b9   : > { %v6918_v43 = vpop.eup %5005  ;;  %2093 = vmatmul.mubr.bf16.gmra.mxu1 %v1733_v62  ;;  %4525 = vmatpush3.bf16.xpose.msra.mxu0 %v2309_v31  ;;  %5027 = vpow2.f32 %v1376_v22  ;;  %v8318_v62 = vld [vmem:[#allocation51_spill] sm:$0xff]  ;;  %v8320_v31 = vld [vmem:[#allocation50_spill] sm:$0xff] }
 0x2ba   : > { %3310 = vrot.lane.b32.xlu0 %v8308_v12, %s5565_s23  ;;  %v5008_v44 = vpop.eup %5007  ;;  %3282 = vrot.lane.b32.xlu1 %v8311_v9, %s5565_s23  ;;  %5029 = vpow2.f32 %v1377_v37  ;;  %v8319_v12 = vld [vmem:[#allocation76_spill] sm:$0xff] }
 0x2bb   : > { %4557 = vmatpush3.bf16.xpose.msra.mxu1 %v2357_v41  ;;  %v5010_v46 = vpop.eup %5009  ;;  %4731 = vmatprep.subr.msk.bf16.mxu0 %vm374_vm0, %v2230_v58  ;;  %v1735_v60 = vpack.c.bf16 %v5008_v44, %v6904_v48  ;;  %v2306_v41 = vsel %vm374_vm0, %v2214_v28, 0  ;;  %v8321_v9 = vld [vmem:[#allocation52_spill] sm:$0xff]  ;;  %v8323_v28 = vld [vmem:[#allocation53_spill] sm:$0xff] }
 0x2bc   : > { %v1311_v7 = vpop.permute.xlu1 %1310  ;;  %v5012_v29 = vpop.eup %5011  ;;  %v1736_v5 = vpack.c.bf16 %v5010_v46, %v6910_v40  ;;  %v1533_v2 = vadd.f32 %v5010_v46, %v5008_v44 }
 0x2bd   : > { %v1378_v17 = vsub.f32 %v8313_v45, %v1311_v7  ;;  %v1379_v55 = vsub.f32 %v8314_v3, %v1311_v7  ;;  %v1380_v6 = vsub.f32 %v8315_v0, %v1311_v7  ;;  %v1381_v11 = vsub.f32 %v8316_v42, %v1311_v7  ;;  %v5014_v36 = vpop.eup %5013 }
 0x2be   : > { %3294 = vrot.lane.b32.xlu0 %v8312_v51, %s5565_s23  ;;  %3266 = vrot.lane.b32.xlu1 %v8319_v12, %s5565_s23  ;;  %v1738_v52 = vpack.c.bf16 %v5014_v36, %v6918_v43  ;;  %v1737_v10 = vpack.c.bf16 %v5012_v29, %v6913_v19  ;;  %v1534_v51 = vadd.f32 %v5012_v29, %v1533_v2  ;;  %v6945_v45 = vpop.eup %5015  ;;  %v8326_v29 = vld [vmem:[#allocation56_spill] sm:$0xff]  ;;  %v8328_v12 = vld [vmem:[#allocation59_spill] sm:$0xff] }
 0x2bf   : > { %5031 = vpow2.f32 %v1378_v17  ;;  %2003 = vmatprep.mubr.bf16.mxu0 %v1736_v5  ;;  %v8322_v17 = vld [vmem:[#allocation77_spill] sm:$0xff]  ;;  %v6949_v46 = vpop.eup %5017 }
 0x2c0   : > { %5033 = vpow2.f32 %v1379_v55  ;;  %v2246_v58 = vpop.permute.xlu1 %2245  ;;  %2100 = vmatprep.mubr.bf16.mxu1 %v1738_v52  ;;  %2004 = vmatmul.mubr.bf16.gmra.mxu0 %v1735_v60  ;;  %v8324_v55 = vld [vmem:[#allocation55_spill] sm:$0xff] }
 0x2c1   : > { %v1316_v26 = vpop.permute.xlu0 %1315  ;;  %5035 = vpow2.f32 %v1380_v6  ;;  %v2354_v37 = vsel %vm374_vm0, %v2246_v58, 0  ;;  %2101 = vmatmul.mubr.bf16.gmra.mxu1 %v1737_v10  ;;  %4527 = vmatpush3.bf16.xpose.msra.mxu0 %v2306_v41  ;;  %v8325_v6 = vld [vmem:[#allocation54_spill] sm:$0xff]  ;;  %v8329_v58 = vld [vmem:[#allocation79_spill] sm:$0xff] }
 0x2c2   : > { %v1382_v61 = vsub.f32 %v8317_v47, %v1316_v26  ;;  %v1383_v14 = vsub.f32 %v8318_v62, %v1316_v26  ;;  %v1384_v34 = vsub.f32 %v8320_v31, %v1316_v26  ;;  %5037 = vpow2.f32 %v1381_v11  ;;  %3280 = vrot.lane.b32.xlu1 %v8322_v17, %s5565_s23  ;;  %v6954_v11 = vpop.eup %5019  ;;  %v8327_v62 = vld [vmem:[#allocation57_spill] sm:$0xff] }
 0x2c3   : > { %v1385_v7 = vsub.f32 %v8321_v9, %v1316_v26 }
 0x2c4   : > { %5039 = vpow2.f32 %v1382_v61  ;;  %v6957_v61 = vpop.eup %5021 }
 0x2c5   : > { %v2262_v22 = vpop.permute.xlu0 %2261  ;;  %5041 = vpow2.f32 %v1383_v14  ;;  %v1321_v3 = vpop.permute.xlu1 %1320 }
 0x2c6   : > { %4739 = vmatprep.subr.msk.bf16.mxu1 %vm374_vm0, %v2262_v22  ;;  %5043 = vpow2.f32 %v1384_v34  ;;  %v1386_v26 = vsub.f32 %v8323_v28, %v1321_v3  ;;  %v1387_v0 = vsub.f32 %v8324_v55, %v1321_v3  ;;  %v1388_v42 = vsub.f32 %v8325_v6, %v1321_v3  ;;  %v5024_v5 = vpop.eup %5023  ;;  %3264 = vrot.lane.b32.xlu1 %v8329_v58, %s5565_s23  ;;  %v8330_v34 = vld [vmem:[#allocation58_spill] sm:$0xff] }
 0x2c7   : > { %4559 = vmatpush3.bf16.xpose.msra.mxu1 %v2354_v37  ;;  %5045 = vpow2.f32 %v1385_v7  ;;  %v1389_v47 = vsub.f32 %v8326_v29, %v1321_v3  ;;  %v6963_v22 = vadd.f32 %v5014_v36, %v1534_v51  ;;  %v5026_v31 = vpop.eup %5025  ;;  %v1739_v41 = vpack.c.bf16 %v5024_v5, %v6945_v45  ;;  %v8331_v7 = vld [vmem:[#allocation60_spill] sm:$0xff] }
 0x2c8   : > { %5047 = vpow2.f32 %v1386_v26  ;;  %v5028_v9 = vpop.eup %5027  ;;  %v1740_v3 = vpack.c.bf16 %v5026_v31, %v6949_v46  ;;  %v1543_v28 = vadd.f32 %v5026_v31, %v5024_v5 }
 0x2c9   : > { %v1326_v44 = vpop.permute.xlu0 %1325  ;;  %5049 = vpow2.f32 %v1387_v0  ;;  %v2212_v60 = vpop.permute.xlu1 %2211  ;;  %v1741_v36 = vpack.c.bf16 %v5028_v9, %v6954_v11  ;;  %v8332_v0 = vld [vmem:[#allocation81_spill] sm:$0xff] }
 0x2ca   : > { %v1390_v14 = vsub.f32 %v8327_v62, %v1326_v44  ;;  %v1391_v52 = vsub.f32 %v8328_v12, %v1326_v44  ;;  %5051 = vpow2.f32 %v1388_v42  ;;  %v1392_v37 = vsub.f32 %v8330_v34, %v1326_v44  ;;  %v5030_v26 = vpop.eup %5029  ;;  %2011 = vmatprep.mubr.bf16.mxu0 %v1740_v3  ;;  %3278 = vrot.lane.b32.xlu1 %v8332_v0, %s5565_s23  ;;  %v8335_v12 = vld [vmem:[#allocation62_spill] sm:$0xff]  ;;  %v8337_v34 = vld [vmem:[#allocation65_spill] sm:$0xff] }
 0x2cb   : > { %v2303_v2 = vsel %vm374_vm0, %v2212_v60, 0  ;;  %5053 = vpow2.f32 %v1389_v47  ;;  %v1393_v17 = vsub.f32 %v8331_v7, %v1326_v44  ;;  %v1742_v55 = vpack.c.bf16 %v5030_v26, %v6957_v61  ;;  %2012 = vmatmul.mubr.bf16.gmra.mxu0 %v1739_v41  ;;  %v8333_v47 = vld [vmem:[#allocation61_spill] sm:$0xff]  ;;  %v8336_v60 = vld [vmem:[#allocation64_spill] sm:$0xff]  ;;  %v8338_v41 = vld [vmem:[#allocation67_spill] sm:$0xff] }
 0x2cc   : > { %5055 = vpow2.f32 %v1390_v14  ;;  %v6972_v51 = vpop.eup %5031  ;;  %v1544_v44 = vadd.f32 %v5028_v9, %v1543_v28  ;;  %v8334_v14 = vld [vmem:[#allocation63_spill] sm:$0xff] }
 0x2cd   : > { %v2228_v10 = vpop.permute.xlu0 %2227  ;;  %5057 = vpow2.f32 %v1391_v52  ;;  %v1331_v6 = vpop.permute.xlu1 %1330  ;;  %2108 = vmatprep.mubr.bf16.mxu1 %v1742_v55  ;;  %v8339_v7 = vld [vmem:[#allocation83_spill] sm:$0xff] }
 0x2ce   : > { %4732 = vmatprep.subr.msk.bf16.mxu0 %vm374_vm0, %v2228_v10  ;;  %v6977_v29 = vpop.eup %5033  ;;  %5059 = vpow2.f32 %v1392_v37  ;;  %v1394_v62 = vsub.f32 %v8333_v47, %v1331_v6  ;;  %v1395_v5 = vsub.f32 %v8334_v14, %v1331_v6  ;;  %v1396_v58 = vsub.f32 %v8335_v12, %v1331_v6  ;;  %2109 = vmatmul.mubr.bf16.gmra.mxu1 %v1741_v36  ;;  %v8340_v36 = vld [vmem:[#allocation66_spill] sm:$0xff] }
 0x2cf   : > { %4529 = vmatpush3.bf16.xpose.msra.mxu0 %v2303_v2  ;;  %v6982_v52 = vpop.eup %5035  ;;  %5061 = vpow2.f32 %v1393_v17  ;;  %v1397_v10 = vsub.f32 %v8336_v60, %v1331_v6  ;;  %3262 = vrot.lane.b32.xlu1 %v8339_v7, %s5565_s23  ;;  %v1503_v17 = vadd.f32 %v6819_v59, %v6817_v57  ;;  %v6993_v55 = vadd.f32 %v5030_v26, %v1544_v44 }
 0x2d0   : > { %v6985_v31 = vpop.eup %5037  ;;  %5063 = vpow2.f32 %v1394_v62 }
 0x2d1   : > { %v1336_v42 = vpop.permute.xlu0 %1335  ;;  %v5040_v37 = vpop.eup %5039  ;;  %5065 = vpow2.f32 %v1395_v5  ;;  %v8341_v5 = vld [vmem:[#allocation68_spill] sm:$0xff] }
 0x2d2   : > { %v1398_v2 = vsub.f32 %v8337_v34, %v1336_v42  ;;  %v1399_v9 = vsub.f32 %v8338_v41, %v1336_v42  ;;  %v2244_v3 = vpop.permute.xlu1 %2243  ;;  %v5042_v0 = vpop.eup %5041  ;;  %5067 = vpow2.f32 %v1396_v58  ;;  %v1400_v6 = vsub.f32 %v8340_v36, %v1336_v42  ;;  %v8342_v34 = vld [vmem:[#allocation85_spill] sm:$0xff] }
 0x2d3   : > { %v2351_v47 = vsel %vm374_vm0, %v2244_v3, 0  ;;  %v1743_v62 = vpack.c.bf16 %v5040_v37, %v6972_v51  ;;  %v5044_v14 = vpop.eup %5043  ;;  %5069 = vpow2.f32 %v1397_v10  ;;  %v1401_v12 = vsub.f32 %v8341_v5, %v1336_v42  ;;  %3276 = vrot.lane.b32.xlu1 %v8342_v34, %s5565_s23 }
 0x2d4   : > { %v1744_v60 = vpack.c.bf16 %v5042_v0, %v6977_v29  ;;  %v1553_v57 = vadd.f32 %v5042_v0, %v5040_v37  ;;  %v5046_v59 = vpop.eup %5045  ;;  %5071 = vpow2.f32 %v1398_v2  ;;  %v1745_v26 = vpack.c.bf16 %v5044_v14, %v6982_v52 }
 0x2d5   : > { %v2260_v28 = vpop.permute.xlu0 %2259  ;;  %v7002_v44 = vpop.eup %5047  ;;  %5073 = vpow2.f32 %v1399_v9  ;;  %v1746_v58 = vpack.c.bf16 %v5046_v59, %v6985_v31  ;;  %v1504_v9 = vadd.f32 %v6826_v15, %v1503_v17  ;;  %v1508_v3 = vadd.f32 %v6843_v35, %v6838_v32 }
 0x2d6   : > { %4740 = vmatprep.subr.msk.bf16.mxu1 %vm374_vm0, %v2260_v28  ;;  %2019 = vmatprep.mubr.bf16.mxu0 %v1744_v60  ;;  %v2210_v10 = vpop.permute.xlu1 %2209  ;;  %v1554_v42 = vadd.f32 %v5044_v14, %v1553_v57  ;;  %v7007_v7 = vpop.eup %5049  ;;  %5075 = vpow2.f32 %v1400_v6 }
 0x2d7   : > { %4561 = vmatpush3.bf16.xpose.msra.mxu1 %v2351_v47  ;;  %2020 = vmatmul.mubr.bf16.gmra.mxu0 %v1743_v62  ;;  %v2300_v2 = vsel %vm374_vm0, %v2210_v10, 0  ;;  %v7011_v37 = vpop.eup %5051  ;;  %5077 = vpow2.f32 %v1401_v12  ;;  %v1505_v35 = vadd.f32 %v6833_v13, %v1504_v9  ;;  %v1509_v17 = vadd.f32 %v6850_v8, %v1508_v3 }
 0x2d8   : > { %2116 = vmatprep.mubr.bf16.mxu1 %v1746_v58  ;;  %v7016_v28 = vadd.f32 %v5046_v59, %v1554_v42  ;;  %v7018_v0 = vpop.eup %5053  ;;  %v1518_v12 = vadd.f32 %v6876_v27, %v6871_v21 }
 0x2d9   : > { %v2226_v41 = vpop.permute.xlu0 %2225  ;;  %2117 = vmatmul.mubr.bf16.gmra.mxu1 %v1745_v26  ;;  %v7020_v36 = vpop.eup %5055  ;;  %v1510_v27 = vadd.f32 %v6853_v50, %v1509_v17 }
 0x2da   : > { %4733 = vmatprep.subr.msk.bf16.mxu0 %vm374_vm0, %v2226_v41  ;;  %v2242_v6 = vpop.permute.xlu1 %2241  ;;  %v7022_v62 = vpop.eup %5057  ;;  %v1747_v5 = vpack.c.bf16 %v7020_v36, %v7002_v44  ;;  %v1519_v10 = vadd.f32 %v6882_v4, %v1518_v12  ;;  %v1528_v41 = vadd.f32 %v6910_v40, %v6904_v48 }
 0x2db   : > { %4531 = vmatpush3.bf16.xpose.msra.mxu0 %v2300_v2  ;;  %v2348_v14 = vsel %vm374_vm0, %v2242_v6, 0  ;;  %v7028_v15 = vpop.eup %5059  ;;  %v1748_v32 = vpack.c.bf16 %v7022_v62, %v7007_v7 }
 0x2dc   : > { %v7036_v60 = vpop.eup %5061  ;;  %v1749_v57 = vpack.c.bf16 %v7028_v15, %v7011_v37  ;;  %v1520_v40 = vadd.f32 %v6884_v39, %v1519_v10 }
 0x2dd   : > { %v2258_v47 = vpop.permute.xlu0 %2257  ;;  %v7040_v59 = vpop.eup %5063  ;;  %2027 = vmatprep.mubr.bf16.mxu0 %v1748_v32  ;;  %v1750_v26 = vpack.c.bf16 %v7036_v60, %v7018_v0  ;;  %1506 = vadd.xlane.f32.xlu0 %v1505_v35 }
 0x2de   : > { %4741 = vmatprep.subr.msk.bf16.mxu1 %vm374_vm0, %v2258_v47  ;;  %v2208_v58 = vpop.permute.xlu1 %2207  ;;  %v5066_v34 = vpop.eup %5065 }
 0x2df   : > { %4563 = vmatpush3.bf16.xpose.msra.mxu1 %v2348_v14  ;;  %2028 = vmatmul.mubr.bf16.gmra.mxu0 %v1747_v5  ;;  %v2297_v8 = vsel %vm374_vm0, %v2208_v58, 0  ;;  %v5068_v21 = vpop.eup %5067  ;;  %v1529_v14 = vadd.f32 %v6913_v19, %v1528_v41  ;;  %v1538_v5 = vadd.f32 %v6949_v46, %v6945_v45  ;;  %v1548_v45 = vadd.f32 %v6977_v29, %v6972_v51 }
 0x2e0   : > { %2124 = vmatprep.mubr.bf16.mxu1 %v1750_v26  ;;  %v5070_v42 = vpop.eup %5069 }
 0x2e1   : > { %v2224_v13 = vpop.permute.xlu0 %2223  ;;  %2125 = vmatmul.mubr.bf16.gmra.mxu1 %v1749_v57  ;;  %v7050_v2 = vpop.eup %5071  ;;  %1511 = vadd.xlane.f32.xlu0 %v1510_v27  ;;  %v1530_v39 = vadd.f32 %v6918_v43, %v1529_v14  ;;  %v1539_v19 = vadd.f32 %v6954_v11, %v1538_v5  ;;  %v1549_v27 = vadd.f32 %v6982_v52, %v1548_v45 }
 0x2e2   : > { %4734 = vmatprep.subr.msk.bf16.mxu0 %vm374_vm0, %v2224_v13  ;;  %v2240_v9 = vpop.permute.xlu1 %2239  ;;  %v7052_v6 = vpop.eup %5073  ;;  %v1751_v50 = vpack.c.bf16 %v7050_v2, %v7040_v59  ;;  %v1558_v43 = vadd.f32 %v7007_v7, %v7002_v44 }
 0x2e3   : > { %4533 = vmatpush3.bf16.xpose.msra.mxu0 %v2297_v8  ;;  %v2345_v47 = vsel %vm374_vm0, %v2240_v9, 0  ;;  %v7058_v4 = vpop.eup %5075  ;;  %v1752_v48 = vpack.c.bf16 %v7052_v6, %v5066_v34  ;;  %v1540_v8 = vadd.f32 %v6957_v61, %v1539_v19  ;;  %v1550_v51 = vadd.f32 %v6985_v31, %v1549_v27 }
 0x2e4   : > { %v7065_v32 = vpop.eup %5077  ;;  %v1753_v35 = vpack.c.bf16 %v7058_v4, %v5068_v21  ;;  %v1559_v29 = vadd.f32 %v7011_v37, %v1558_v43  ;;  %v1568_v61 = vadd.f32 %v5066_v34, %v7040_v59 }
 0x2e5   : > { %v2256_v3 = vpop.permute.xlu0 %2255  ;;  %2035 = vmatprep.mubr.bf16.mxu0 %v1752_v48  ;;  %v1754_v17 = vpack.c.bf16 %v7065_v32, %v5070_v42  ;;  %1521 = vadd.xlane.f32.xlu0 %v1520_v40  ;;  %v1573_v48 = vadd.f32 %v7052_v6, %v7050_v2 }
 0x2e6   : > { %4742 = vmatprep.subr.msk.bf16.mxu1 %vm374_vm0, %v2256_v3  ;;  %v2206_v12 = vpop.permute.xlu1 %2205  ;;  %v1560_v7 = vadd.f32 %v7018_v0, %v1559_v29  ;;  %v1569_v41 = vadd.f32 %v5068_v21, %v1568_v61  ;;  %v1467_v61 = vld [vmem:[#allocation3 + $0x8] sm:$0xff] }
 0x2e7   : > { %4565 = vmatpush3.bf16.xpose.msra.mxu1 %v2345_v47  ;;  %2036 = vmatmul.mubr.bf16.gmra.mxu0 %v1751_v50  ;;  %v2294_v26 = vsel %vm374_vm0, %v2206_v12, 0  ;;  %v1563_v47 = vadd.f32 %v7022_v62, %v7020_v36  ;;  %v1574_v40 = vadd.f32 %v7058_v4, %v1573_v48  ;;  %v8343_v48 = vld [vmem:[#allocation90_spill] sm:$0xff] }
 0x2e8   : > { %2132 = vmatprep.mubr.bf16.mxu1 %v1754_v17  ;;  %v1570_v3 = vadd.f32 %v5070_v42, %v1569_v41 }
 0x2e9   : > { %v2222_v57 = vpop.permute.xlu0 %2221  ;;  %2133 = vmatmul.mubr.bf16.gmra.mxu1 %v1753_v35  ;;  %1531 = vadd.xlane.f32.xlu0 %v1530_v39 }
 0x2ea   : > { %4735 = vmatprep.subr.msk.bf16.mxu0 %vm374_vm0, %v2222_v57  ;;  %v2238_v46 = vpop.permute.xlu1 %2237 }
 0x2eb   : > { %4535 = vmatpush3.bf16.xpose.msra.mxu0 %v2294_v26  ;;  %v2342_v13 = vsel %vm374_vm0, %v2238_v46, 0 }
 0x2ed   : > { %v2254_v58 = vpop.permute.xlu0 %2253  ;;  %1541 = vadd.xlane.f32.xlu0 %v1540_v8 }
 0x2ee   : > { %4743 = vmatprep.subr.msk.bf16.mxu1 %vm374_vm0, %v2254_v58  ;;  %v2190_v11 = vpop.permute.xlu1 %2189 }
 0x2ef   : > { %4567 = vmatpush3.bf16.xpose.msra.mxu1 %v2342_v13  ;;  %4536 = vmatprep.mubr.msk.bf16.mxu0 %vm374_vm0, %v2190_v11 }
 0x2f0   : > { %4568 = vmatprep.mubr.msk.bf16.mxu1 %vm374_vm0, %v2190_v11 }
 0x2f1   : > { %v2192_v10 = vpop.permute.xlu0 %2191  ;;  %1551 = vadd.xlane.f32.xlu0 %v1550_v51 }
 0x2f2   : > { %4537 = vmatmul.mubr.msk.bf16.vlgmr.msra.gmra.mxu0 %vm374_vm0, %v2190_v11  ;;  %v2194_v52 = vpop.permute.xlu1 %2193 }
 0x2f3   : > { %4538 = vmatprep.mubr.msk.bf16.mxu0 %vm374_vm0, %v2192_v10 }
 0x2f5   : > { %v2196_v44 = vpop.permute.xlu0 %2195  ;;  %1561 = vadd.xlane.f32.xlu0 %v1560_v7  ;;  %v1468_v7 = vld [vmem:[#allocation3 + $0x10] sm:$0xff] }
 0x2f6   : > { %4569 = vmatmul.mubr.msk.bf16.vlgmr.msra.gmra.mxu1 %vm374_vm0, %v2190_v11  ;;  %v2198_v31 = vpop.permute.xlu1 %2197 }
 0x2f7   : > { %4570 = vmatprep.mubr.msk.bf16.mxu1 %vm374_vm0, %v2192_v10  ;;  %1501 = vadd.xlane.f32.xlu1 %v6836_v30 }
 0x2f9   : > { %v2200_v9 = vpop.permute.xlu0 %2199  ;;  %1571 = vadd.xlane.f32.xlu0 %v1570_v3 }
 0x2fa   : > { %4539 = vmatmul.mubr.msk.bf16.gmra.mxu0 %vm374_vm0, %v2192_v10  ;;  %v2202_v37 = vpop.permute.xlu1 %2201 }
 0x2fb   : > { %4540 = vmatprep.mubr.msk.bf16.mxu0 %vm374_vm0, %v2194_v52  ;;  %1516 = vadd.xlane.f32.xlu1 %v6889_v24 }
 0x2fd   : > { %v7094_v59 = vpop.permute.xlu0 %2203 }
 0x2fe   : > { %4571 = vmatmul.mubr.msk.bf16.gmra.mxu1 %vm374_vm0, %v2192_v10  ;;  %v7099_v0 = vpop.permute.xlu1 %1634 }
 0x2ff   : > { %4572 = vmatprep.mubr.msk.bf16.mxu1 %vm374_vm0, %v2194_v52  ;;  %1526 = vadd.xlane.f32.xlu1 %v6923_v53 }
 0x301   : > { %v7101_v34 = vpop.permute.xlu0 %1629 }
 0x302   : > { %4541 = vmatmul.mubr.msk.bf16.gmra.mxu0 %vm374_vm0, %v2194_v52  ;;  %v7106_v30 = vpop.permute.xlu1 %1639 }
 0x303   : > { %4542 = vmatprep.mubr.msk.bf16.mxu0 %vm374_vm0, %v2196_v44  ;;  %1536 = vadd.xlane.f32.xlu1 %v6963_v22  ;;  %v1564_v22 = vadd.f32 %v7028_v15, %v1563_v47 }
 0x305   : > { %v7108_v21 = vpop.permute.xlu0 %1644 }
 0x306   : > { %4573 = vmatmul.mubr.msk.bf16.gmra.mxu1 %vm374_vm0, %v2194_v52  ;;  %v7113_v24 = vpop.permute.xlu1 %1649  ;;  %v1483_v52 = vmul.f32 %v6733_v16, %v1467_v61 }
 0x307   : > { %4574 = vmatprep.mubr.msk.bf16.mxu1 %vm374_vm0, %v2196_v44  ;;  %1546 = vadd.xlane.f32.xlu1 %v6993_v55  ;;  %v1565_v55 = vadd.f32 %v7036_v60, %v1564_v22 }
 0x309   : > { %v7115_v42 = vpop.permute.xlu0 %1654 }
 0x30a   : > { %4543 = vmatmul.mubr.msk.bf16.gmra.mxu0 %vm374_vm0, %v2196_v44  ;;  %v7122_v53 = vpop.permute.xlu1 %1659 }
 0x30b   : > { %4544 = vmatprep.mubr.msk.bf16.mxu0 %vm374_vm0, %v2198_v31  ;;  %1556 = vadd.xlane.f32.xlu1 %v7016_v28  ;;  %v1575_v28 = vadd.f32 %v7065_v32, %v1574_v40 }
 0x30d   : > { %v7124_v50 = vpop.permute.xlu0 %1664 }
 0x30e   : > { %4575 = vmatmul.mubr.msk.bf16.gmra.mxu1 %vm374_vm0, %v2196_v44  ;;  %v7132_v36 = vpop.permute.xlu1 %1669 }
 0x30f   : > { %4576 = vmatprep.mubr.msk.bf16.mxu1 %vm374_vm0, %v2198_v31  ;;  %1566 = vadd.xlane.f32.xlu1 %v1565_v55  ;;  %v8344_v55 = vsub.f32 %v8343_v48, %v6614_v38 }
 0x311   : > { %v7134_v62 = vpop.permute.xlu0 %1674  ;;  %5079 = vpow2.f32 %v8344_v55 }
 0x312   : > { %4545 = vmatmul.mubr.msk.bf16.gmra.mxu0 %vm374_vm0, %v2198_v31  ;;  %v3289_v15 = vpop.permute.xlu1 %3288 }
 0x313   : > { %4546 = vmatprep.mubr.msk.bf16.mxu0 %vm374_vm0, %v2200_v9  ;;  %4584 = vmatprep.subr.bf16.mxu0 %v3289_v15  ;;  %v1611_v15 = vld [vmem:[#allocation4] sm:$0xff] }
 0x314   : > { %1576 = vadd.xlane.f32.xlu1 %v1575_v28  ;;  %v1707_v38 = vmul.f32 %v7101_v34, %v1611_v15 }
 0x315   : > { %v7140_v14 = vpop.permute.xlu0 %1679 }
 0x316   : > { %4577 = vmatmul.mubr.msk.bf16.gmra.mxu1 %vm374_vm0, %v2198_v31  ;;  %v3321_v2 = vpop.permute.xlu1 %3320  ;;  %v1484_v31 = vmul.f32 %v6737_v23, %v1468_v7 }
 0x317   : > { %4578 = vmatprep.mubr.msk.bf16.mxu1 %vm374_vm0, %v2200_v9  ;;  %4648 = vmatprep.subr.bf16.mxu1 %v3321_v2 }
 0x319   : > { %v3305_v60 = vpop.permute.xlu0 %3304 }
 0x31a   : > { %4547 = vmatmul.mubr.msk.bf16.gmra.mxu0 %vm374_vm0, %v2200_v9  ;;  %4649 = vmatpush3.bf16.msra.mxu1 %v3305_v60  ;;  %v3273_v6 = vpop.permute.xlu1 %3272  ;;  %v1472_v60 = vld [vmem:[#allocation3 + $0x30] sm:$0xff] }
 0x31b   : > { %4548 = vmatprep.mubr.msk.bf16.mxu0 %vm374_vm0, %v2202_v37  ;;  %4585 = vmatpush3.bf16.msra.mxu0 %v3273_v6 }
 0x31d   : > { %v3317_v4 = vpop.permute.xlu0 %3316 }
 0x31e   : > { %4579 = vmatmul.mubr.msk.bf16.gmra.mxu1 %vm374_vm0, %v2200_v9  ;;  %v3287_v5 = vpop.permute.xlu1 %3286 }
 0x31f   : > { %4580 = vmatprep.mubr.msk.bf16.mxu1 %vm374_vm0, %v2202_v37  ;;  %4586 = vmatprep.subr.bf16.mxu0 %v3287_v5 }
 0x321   : > { %v3301_v32 = vpop.permute.xlu0 %3300 }
 0x322   : > { %4549 = vmatmul.mubr.msk.bf16.gmra.mxu0 %vm374_vm0, %v2202_v37  ;;  %v3319_v35 = vpop.permute.xlu1 %3318 }
 0x323   : > { %4550 = vmatprep.mubr.msk.bf16.mxu0 %vm374_vm0, %v7094_v59  ;;  %4650 = vmatprep.subr.bf16.mxu1 %v3319_v35  ;;  %v8346_v35 = vld [vmem:[#allocation94_spill] sm:$0xff] }
 0x325   : > { %v3315_v17 = vpop.permute.xlu0 %3314 }
 0x326   : > { %4581 = vmatmul.mubr.msk.bf16.gmra.mxu1 %vm374_vm0, %v2202_v37  ;;  %v3271_v12 = vpop.permute.xlu1 %3270  ;;  %v1470_v37 = vld [vmem:[#allocation3 + $0x20] sm:$0xff] }
 0x327   : > { %4582 = vmatprep.mubr.msk.bf16.mxu1 %vm374_vm0, %v7094_v59  ;;  %4587 = vmatpush3.bf16.msra.mxu0 %v3271_v12  ;;  %v1486_v16 = vmul.f32 %v6751_v25, %v1470_v37  ;;  %v1488_v25 = vmul.f32 %v6762_v1, %v1472_v60 }
 0x329   : > { %v3299_v57 = vpop.permute.xlu0 %3298 }
 0x32a   : > { %4551 = vmatmul.mubr.msk.bf16.gmra.mxu0 %vm374_vm0, %v7094_v59  ;;  %v3303_v26 = vpop.permute.xlu1 %3302 }
 0x32b   : > { %4651 = vmatpush3.bf16.msra.mxu1 %v3303_v26  ;;  %v1612_v26 = vld [vmem:[#allocation4 + $0x8] sm:$0xff] }
 0x32c   : > { %4652 = vmatprep.subr.bf16.mxu1 %v3317_v4 }
 0x32d   : > { %v3313_v39 = vpop.permute.xlu0 %3312 }
 0x32e   : > { %4583 = vmatmul.mubr.msk.bf16.gmra.mxu1 %vm374_vm0, %v7094_v59  ;;  %v3285_v19 = vpop.permute.xlu1 %3284 }
 0x32f   : > { %4588 = vmatprep.subr.bf16.mxu0 %v3285_v19  ;;  %4653 = vmatpush3.bf16.msra.mxu1 %v3301_v32  ;;  %v8345_v32 = vld [vmem:[#allocation93_spill] sm:$0xff] }
 0x330   : > { %4654 = vmatprep.subr.bf16.mxu1 %v3315_v17  ;;  %v8347_v17 = vsub.f32 %v8345_v32, %v8346_v35  ;;  %v1615_v32 = vld [vmem:[#allocation4 + $0x20] sm:$0xff] }
 0x331   : > { %v3297_v45 = vpop.permute.xlu0 %3296 }
 0x332   : > { %v3269_v46 = vpop.permute.xlu1 %3268  ;;  %5081 = vpow2.f32 %v8347_v17 }
 0x333   : > { %4589 = vmatpush3.bf16.msra.mxu0 %v3269_v46  ;;  %4655 = vmatpush3.bf16.msra.mxu1 %v3299_v57  ;;  %v1474_v46 = vld [vmem:[#allocation3 + $0x40] sm:$0xff] }
 0x334   : > { %4656 = vmatprep.subr.bf16.mxu1 %v3313_v39  ;;  %v1490_v1 = vmul.f32 %v6768_v56, %v1474_v46 }
 0x335   : > { %v3311_v58 = vpop.permute.xlu0 %3310 }
 0x336   : > { %v3283_v13 = vpop.permute.xlu1 %3282 }
 0x337   : > { %4590 = vmatprep.subr.bf16.mxu0 %v3283_v13  ;;  %4657 = vmatpush3.bf16.msra.mxu1 %v3297_v45 }
 0x338   : > { %4658 = vmatprep.subr.bf16.mxu1 %v3311_v58 }
 0x339   : > { %v3295_v27 = vpop.permute.xlu0 %3294 }
 0x33a   : > { %v3267_v8 = vpop.permute.xlu1 %3266 }
 0x33b   : > { %4591 = vmatpush3.bf16.msra.mxu0 %v3267_v8  ;;  %4659 = vmatpush3.bf16.msra.mxu1 %v3295_v27 }
 0x33e   : > { %v3281_v43 = vpop.permute.xlu1 %3280 }
 0x33f   : > { %4592 = vmatprep.subr.bf16.mxu0 %v3281_v43 }
 0x342   : > { %v3265_v11 = vpop.permute.xlu1 %3264 }
 0x343   : > { %4593 = vmatpush3.bf16.msra.mxu0 %v3265_v11  ;;  %v1708_v11 = vmul.f32 %v7099_v0, %v1612_v26 }
 0x346   : > { %v3279_v10 = vpop.permute.xlu1 %3278 }
 0x347   : > { %4594 = vmatprep.subr.bf16.mxu0 %v3279_v10 }
 0x34a   : > { %v3263_v51 = vpop.permute.xlu1 %3262 }
 0x34b   : > { %4595 = vmatpush3.bf16.msra.mxu0 %v3263_v51  ;;  %v1613_v51 = vld [vmem:[#allocation4 + $0x10] sm:$0xff] }
 0x34c   : > { %v1709_v0 = vmul.f32 %v7106_v30, %v1613_v51 }
 0x34e   : > { %v3277_v29 = vpop.permute.xlu1 %3276 }
 0x34f   : > { %4596 = vmatprep.subr.bf16.mxu0 %v3277_v29 }
 0x366   : > { %v1507_v44 = vpop.xlane.xlu0 %1506 }
 0x367   : > { %v1579_v41 = vadd.f32 %v1507_v44, %v1483_v52  ;;  %v1476_v44 = vld [vmem:[#allocation3 + $0x50] sm:$0xff] }
 0x368   : > { %v4408_v3 = vpop.f32.mrf.mxu0  ;;  %v1492_v56 = vmul.f32 %v6780_v33, %v1476_v44 }
 0x369   : > { %1596 = vst.msk [vmem:[#allocation3 + $0x8] sm:$0xff] %vm309_vm1, %v1579_v41  ;;  %v4472_v47 = vpop.f32.mrf.mxu1 }
 0x36a   : > { %v1512_v9 = vpop.xlane.xlu0 %1511  ;;  %v4409_v22 = vpop.f32.mrf.mxu0 }
 0x36b   : > { %v1580_v59 = vadd.f32 %v1512_v9, %v1484_v31  ;;  %v4410_v40 = vadd.f32 %v4409_v22, %v4408_v3  ;;  %v4473_v2 = vpop.f32.mrf.mxu1  ;;  %v1614_v22 = vld [vmem:[#allocation4 + $0x18] sm:$0xff] }
 0x36c   : > { %v4474_v6 = vadd.f32 %v4473_v2, %v4472_v47  ;;  %v4411_v4 = vpop.f32.mrf.mxu0  ;;  %v7181_v47 = vpop.eup %5079 }
 0x36d   : > { %1597 = vst.msk [vmem:[#allocation3 + $0x10] sm:$0xff] %vm309_vm1, %v1580_v59  ;;  %v4475_v5 = vpop.f32.mrf.mxu1  ;;  %8348 = vst [vmem:[#allocation24_spill] sm:$0xff] %v7181_v47 }
 0x36e   : > { %v1522_v28 = vpop.xlane.xlu0 %1521  ;;  %v2079_v12 = vadd.f32 %v4474_v6, %v4410_v40  ;;  %v4412_v57 = vpop.f32.mrf.mxu0  ;;  %v1478_v40 = vld [vmem:[#allocation3 + $0x60] sm:$0xff] }
 0x36f   : > { %v1582_v23 = vadd.f32 %v1522_v28, %v1486_v16  ;;  %v4413_v19 = vadd.f32 %v4412_v57, %v4411_v4  ;;  %v4476_v45 = vpop.f32.mrf.mxu1  ;;  %v1494_v6 = vmul.f32 %v7181_v47, %v1478_v40 }
 0x370   : > { %v2141_v58 = vadd.f32 %v2079_v12, %v1707_v38  ;;  %v4477_v8 = vadd.f32 %v4476_v45, %v4475_v5  ;;  %v4414_v27 = vpop.f32.mrf.mxu0  ;;  %v7187_v5 = vpop.eup %5081  ;;  %v1480_v12 = vld [vmem:[#allocation3 + $0x70] sm:$0xff]  ;;  %v1711_v45 = vmul.f32 %v7113_v24, %v1615_v32  ;;  %v1469_v24 = vld [vmem:[#allocation3 + $0x18] sm:$0xff] }
 0x371   : > { %1599 = vst.msk [vmem:[#allocation3 + $0x20] sm:$0xff] %vm309_vm1, %v1582_v23  ;;  %v4478_v43 = vpop.f32.mrf.mxu1  ;;  %v1710_v23 = vmul.f32 %v7108_v21, %v1614_v22  ;;  %8349 = vst [vmem:[#allocation74_spill] sm:$0xff] %v7187_v5  ;;  %v1466_v21 = vld [vmem:[#allocation3] sm:$0xff] }
 0x372   : > { %v1532_v39 = vpop.xlane.xlu0 %1531  ;;  %2157 = vst.msk [vmem:[#allocation4] sm:$0xff] %vm374_vm0, %v2141_v58  ;;  %v2082_v34 = vadd.f32 %v4477_v8, %v4413_v19  ;;  %v4415_v10 = vpop.f32.mrf.mxu0  ;;  %v1496_v58 = vmul.f32 %v7187_v5, %v1480_v12  ;;  %v1616_v8 = vld [vmem:[#allocation4 + $0x28] sm:$0xff]  ;;  %v1473_v12 = vld [vmem:[#allocation3 + $0x38] sm:$0xff] }
 0x373   : > { %v1584_v13 = vadd.f32 %v1532_v39, %v1488_v25  ;;  %v4416_v61 = vadd.f32 %v4415_v10, %v4414_v27  ;;  %v4479_v52 = vpop.f32.mrf.mxu1 }
 0x374   : > { %v2142_v7 = vadd.f32 %v2082_v34, %v1708_v11  ;;  %v4480_v31 = vadd.f32 %v4479_v52, %v4478_v43  ;;  %v4417_v9 = vpop.f32.mrf.mxu0  ;;  %v1482_v34 = vmul.f32 %v6728_v18, %v1466_v21  ;;  %v1617_v18 = vld [vmem:[#allocation4 + $0x30] sm:$0xff] }
 0x375   : > { %1601 = vst.msk [vmem:[#allocation3 + $0x30] sm:$0xff] %vm309_vm1, %v1584_v13  ;;  %v4481_v3 = vpop.f32.mrf.mxu1 }
 0x376   : > { %v1542_v29 = vpop.xlane.xlu0 %1541  ;;  %2158 = vst.msk [vmem:[#allocation4 + $0x8] sm:$0xff] %vm374_vm0, %v2142_v7  ;;  %v2087_v37 = vadd.f32 %v4480_v31, %v4416_v61  ;;  %v4418_v59 = vpop.f32.mrf.mxu0  ;;  %v1712_v7 = vmul.f32 %v7115_v42, %v1616_v8 }
 0x377   : > { %v1586_v41 = vadd.f32 %v1542_v29, %v1490_v1  ;;  %v4419_v55 = vadd.f32 %v4418_v59, %v4417_v9  ;;  %v4482_v16 = vpop.f32.mrf.mxu1  ;;  %v8350_v9 = vld [vmem:[#allocation88_spill] sm:$0xff]  ;;  %v1485_v59 = vmul.f32 %v6742_v20, %v1469_v24 }
 0x378   : > { %v2143_v15 = vadd.f32 %v2087_v37, %v1709_v0  ;;  %v4483_v2 = vadd.f32 %v4482_v16, %v4481_v3  ;;  %v4420_v60 = vpop.f32.mrf.mxu0  ;;  %v8351_v3 = vld [vmem:[#allocation89_spill] sm:$0xff] }
 0x379   : > { %1603 = vst.msk [vmem:[#allocation3 + $0x40] sm:$0xff] %vm309_vm1, %v1586_v41  ;;  %v4484_v30 = vpop.f32.mrf.mxu1  ;;  %v8352_v0 = vsub.f32 %v8350_v9, %v8351_v3  ;;  %v1471_v16 = vld [vmem:[#allocation3 + $0x28] sm:$0xff] }
 0x37a   : > { %v1552_v48 = vpop.xlane.xlu0 %1551  ;;  %2159 = vst.msk [vmem:[#allocation4 + $0x10] sm:$0xff] %vm374_vm0, %v2143_v15  ;;  %v2090_v33 = vadd.f32 %v4483_v2, %v4419_v55  ;;  %v4421_v4 = vpop.f32.mrf.mxu0  ;;  %v1487_v32 = vmul.f32 %v6753_v49, %v1471_v16 }
 0x37b   : > { %v1588_v28 = vadd.f32 %v1552_v48, %v1492_v56  ;;  %v4422_v17 = vadd.f32 %v4421_v4, %v4420_v60  ;;  %v4485_v38 = vpop.f32.mrf.mxu1  ;;  %5083 = vpow2.f32 %v8352_v0 }
 0x37c   : > { %v2144_v25 = vadd.f32 %v2090_v33, %v1710_v23  ;;  %v4486_v26 = vadd.f32 %v4485_v38, %v4484_v30  ;;  %v4423_v39 = vpop.f32.mrf.mxu0  ;;  %v8353_v30 = vld [vmem:[#allocation91_spill] sm:$0xff]  ;;  %v8354_v23 = vld [vmem:[#allocation92_spill] sm:$0xff] }
 0x37d   : > { %1605 = vst.msk [vmem:[#allocation3 + $0x50] sm:$0xff] %vm309_vm1, %v1588_v28  ;;  %v4487_v19 = vpop.f32.mrf.mxu1  ;;  %v1713_v28 = vmul.f32 %v7122_v53, %v1617_v18  ;;  %v8355_v33 = vsub.f32 %v8353_v30, %v8354_v23 }
 0x37e   : > { %v1562_v35 = vpop.xlane.xlu0 %1561  ;;  %2160 = vst.msk [vmem:[#allocation4 + $0x18] sm:$0xff] %vm374_vm0, %v2144_v25  ;;  %v2095_v46 = vadd.f32 %v4486_v26, %v4422_v17  ;;  %v4424_v13 = vpop.f32.mrf.mxu0  ;;  %v8356_v26 = vld [vmem:[#allocation95_spill] sm:$0xff] }
 0x37f   : > { %v1590_v57 = vadd.f32 %v1562_v35, %v1494_v6  ;;  %v4425_v43 = vadd.f32 %v4424_v13, %v4423_v39  ;;  %v4488_v11 = vpop.f32.mrf.mxu1  ;;  %5085 = vpow2.f32 %v8355_v33  ;;  %v1618_v6 = vld [vmem:[#allocation4 + $0x38] sm:$0xff]  ;;  %v8357_v39 = vld [vmem:[#allocation96_spill] sm:$0xff] }
 0x380   : > { %v2145_v1 = vadd.f32 %v2095_v46, %v1711_v45  ;;  %v4489_v51 = vadd.f32 %v4488_v11, %v4487_v19  ;;  %v1502_v29 = vpop.xlane.xlu1 %1501  ;;  %v4426_v61 = vpop.f32.mrf.mxu0  ;;  %v1714_v25 = vmul.f32 %v7124_v50, %v1618_v6  ;;  %v8358_v21 = vsub.f32 %v8356_v26, %v8357_v39  ;;  %v1481_v6 = vld [vmem:[#allocation3 + $0x78] sm:$0xff] }
 0x381   : > { %1607 = vst.msk [vmem:[#allocation3 + $0x60] sm:$0xff] %vm309_vm1, %v1590_v57  ;;  %v1578_v52 = vadd.f32 %v1502_v29, %v1482_v34  ;;  %v4490_v44 = vpop.f32.mrf.mxu1  ;;  %v1489_v45 = vmul.f32 %v6764_v63, %v1473_v12  ;;  %v1477_v29 = vld [vmem:[#allocation3 + $0x58] sm:$0xff] }
 0x382   : > { %v1572_v27 = vpop.xlane.xlu0 %1571  ;;  %2161 = vst.msk [vmem:[#allocation4 + $0x20] sm:$0xff] %vm374_vm0, %v2145_v1  ;;  %v2098_v41 = vadd.f32 %v4489_v51, %v4425_v43  ;;  %v4427_v31 = vpop.f32.mrf.mxu0  ;;  %5087 = vpow2.f32 %v8358_v21  ;;  %v1619_v43 = vld [vmem:[#allocation4 + $0x40] sm:$0xff] }
 0x383   : > { %v1592_v10 = vadd.f32 %v1572_v27, %v1496_v58  ;;  %1595 = vst.msk [vmem:[#allocation3] sm:$0xff] %vm309_vm1, %v1578_v52  ;;  %v4428_v37 = vadd.f32 %v4427_v31, %v4426_v61  ;;  %v4491_v56 = vpop.f32.mrf.mxu1  ;;  %v1475_v58 = vld [vmem:[#allocation3 + $0x48] sm:$0xff] }
 0x384   : > { %v2146_v22 = vadd.f32 %v2098_v41, %v1712_v7  ;;  %v4492_v48 = vadd.f32 %v4491_v56, %v4490_v44  ;;  %v1517_v42 = vpop.xlane.xlu1 %1516  ;;  %v4429_v55 = vpop.f32.mrf.mxu0  ;;  %v1491_v1 = vmul.f32 %v6772_v54, %v1475_v58  ;;  %v1715_v44 = vmul.f32 %v7132_v36, %v1619_v43  ;;  %v1620_v31 = vld [vmem:[#allocation4 + $0x48] sm:$0xff] }
 0x385   : > { %1609 = vst.msk [vmem:[#allocation3 + $0x70] sm:$0xff] %vm309_vm1, %v1592_v10  ;;  %v1581_v40 = vadd.f32 %v1517_v42, %v1485_v59  ;;  %v4493_v15 = vpop.f32.mrf.mxu1  ;;  %v1479_v59 = vld [vmem:[#allocation3 + $0x68] sm:$0xff]  ;;  %v1716_v36 = vmul.f32 %v7134_v62, %v1620_v31 }
 0x386   : > { %2162 = vst.msk [vmem:[#allocation4 + $0x28] sm:$0xff] %vm374_vm0, %v2146_v22  ;;  %v2103_v2 = vadd.f32 %v4492_v48, %v4428_v37  ;;  %v4430_v60 = vpop.f32.mrf.mxu0 }
 0x387   : > { %1598 = vst.msk [vmem:[#allocation3 + $0x18] sm:$0xff] %vm309_vm1, %v1581_v40  ;;  %v4431_v20 = vadd.f32 %v4430_v60, %v4429_v55  ;;  %v4494_v4 = vpop.f32.mrf.mxu1  ;;  %v1621_v40 = vld [vmem:[#allocation4 + $0x50] sm:$0xff] }
 0x388   : > { %v2147_v35 = vadd.f32 %v2103_v2, %v1713_v28  ;;  %v4495_v17 = vadd.f32 %v4494_v4, %v4493_v15  ;;  %v1527_v38 = vpop.xlane.xlu1 %1526  ;;  %v7219_v10 = vpop.eup %5083 }
 0x389   : > { %v1583_v53 = vadd.f32 %v1527_v38, %v1487_v32  ;;  %v1493_v0 = vmul.f32 %v7219_v10, %v1477_v29  ;;  %v1717_v32 = vmul.f32 %v7140_v14, %v1621_v40 }
 0x38a   : > { %2163 = vst.msk [vmem:[#allocation4 + $0x30] sm:$0xff] %vm374_vm0, %v2147_v35  ;;  %v2106_v57 = vadd.f32 %v4495_v17, %v4431_v20 }
 0x38b   : > { %1600 = vst.msk [vmem:[#allocation3 + $0x28] sm:$0xff] %vm309_vm1, %v1583_v53  ;;  %v4432_v19 = vpop.f32.mrf.mxu0 }
 0x38c   : > { %v2148_v49 = vadd.f32 %v2106_v57, %v1714_v25  ;;  %v1537_v46 = vpop.xlane.xlu1 %1536  ;;  %v7224_v54 = vpop.eup %5085 }
 0x38d   : > { %v1585_v8 = vadd.f32 %v1537_v46, %v1489_v45  ;;  %v4433_v27 = vpop.f32.mrf.mxu0  ;;  %v1495_v2 = vmul.f32 %v7224_v54, %v1479_v59 }
 0x38e   : > { %v4496_v13 = vpop.f32.mrf.mxu1  ;;  %2164 = vst.msk [vmem:[#allocation4 + $0x38] sm:$0xff] %vm374_vm0, %v2148_v49  ;;  %v4434_v50 = vadd.f32 %v4433_v27, %v4432_v19 }
 0x38f   : > { %1602 = vst.msk [vmem:[#allocation3 + $0x38] sm:$0xff] %vm309_vm1, %v1585_v8  ;;  %v4435_v34 = vpop.f32.mrf.mxu0  ;;  %v7230_v60 = vpop.eup %5087 }
 0x390   : > { %v4497_v11 = vpop.f32.mrf.mxu1  ;;  %v1547_v63 = vpop.xlane.xlu1 %1546  ;;  %v1497_v53 = vmul.f32 %v7230_v60, %v1481_v6 }
 0x391   : > { %v4498_v51 = vadd.f32 %v4497_v11, %v4496_v13  ;;  %v4436_v24 = vpop.f32.mrf.mxu0  ;;  %v1587_v52 = vadd.f32 %v1547_v63, %v1491_v1 }
 0x392   : > { %v4499_v61 = vpop.f32.mrf.mxu1  ;;  %v4437_v41 = vadd.f32 %v4436_v24, %v4435_v34 }
 0x393   : > { %v2111_v7 = vadd.f32 %v4498_v51, %v4434_v50  ;;  %1604 = vst.msk [vmem:[#allocation3 + $0x48] sm:$0xff] %vm309_vm1, %v1587_v52 }
 0x394   : > { %v4500_v9 = vpop.f32.mrf.mxu1  ;;  %v1557_v56 = vpop.xlane.xlu1 %1556 }
 0x395   : > { %v2149_v18 = vadd.f32 %v2111_v7, %v1715_v44  ;;  %v4501_v37 = vadd.f32 %v4500_v9, %v4499_v61  ;;  %v1589_v42 = vadd.f32 %v1557_v56, %v1493_v0 }
 0x397   : > { %v4438_v3 = vpop.f32.mrf.mxu0  ;;  %2165 = vst.msk [vmem:[#allocation4 + $0x40] sm:$0xff] %vm374_vm0, %v2149_v18  ;;  %v2114_v55 = vadd.f32 %v4501_v37, %v4437_v41 }
 0x398   : > { %1606 = vst.msk [vmem:[#allocation3 + $0x58] sm:$0xff] %vm309_vm1, %v1589_v42  ;;  %v1567_v33 = vpop.xlane.xlu1 %1566 }
 0x399   : > { %v4502_v22 = vpop.f32.mrf.mxu1  ;;  %v4439_v48 = vpop.f32.mrf.mxu0  ;;  %v2150_v30 = vadd.f32 %v2114_v55, %v1716_v36  ;;  %v1591_v62 = vadd.f32 %v1567_v33, %v1495_v2 }
 0x39a   : > { %v4440_v16 = vadd.f32 %v4439_v48, %v4438_v3 }
 0x39b   : > { %v4503_v15 = vpop.f32.mrf.mxu1  ;;  %v4441_v28 = vpop.f32.mrf.mxu0  ;;  %2166 = vst.msk [vmem:[#allocation4 + $0x48] sm:$0xff] %vm374_vm0, %v2150_v30 }
 0x39c   : > { %v4504_v23 = vadd.f32 %v4503_v15, %v4502_v22  ;;  %1608 = vst.msk [vmem:[#allocation3 + $0x68] sm:$0xff] %vm309_vm1, %v1591_v62 }
 0x39d   : > { %v4505_v20 = vpop.f32.mrf.mxu1  ;;  %v4442_v4 = vpop.f32.mrf.mxu0 }
 0x39e   : > { %v2119_v35 = vadd.f32 %v4504_v23, %v4440_v16  ;;  %v4443_v17 = vadd.f32 %v4442_v4, %v4441_v28  ;;  %v1577_v26 = vpop.xlane.xlu1 %1576 }
 0x39f   : > { %v4506_v38 = vpop.f32.mrf.mxu1  ;;  %v4444_v12 = vpop.f32.mrf.mxu0  ;;  %v1593_v19 = vadd.f32 %v1577_v26, %v1497_v53 }
 0x3a0   : > { %v2151_v25 = vadd.f32 %v2119_v35, %v1717_v32  ;;  %v4507_v57 = vadd.f32 %v4506_v38, %v4505_v20 }
 0x3a1   : > { %v4508_v39 = vpop.f32.mrf.mxu1  ;;  %v4445_v21 = vpop.f32.mrf.mxu0  ;;  %1610 = vst.msk [vmem:[#allocation3 + $0x78] sm:$0xff] %vm309_vm1, %v1593_v19 }
 0x3a2   : > { %2167 = vst.msk [vmem:[#allocation4 + $0x50] sm:$0xff] %vm374_vm0, %v2151_v25  ;;  %v7237_v45 = vadd.f32 %v4507_v57, %v4443_v17  ;;  %v4446_v14 = vadd.f32 %v4445_v21, %v4444_v12 }
 0x3a3   : > { %v4509_v49 = vpop.f32.mrf.mxu1  ;;  %v4447_v46 = vpop.f32.mrf.mxu0 }
 0x3a4   : > { %8359 = vst [vmem:[#allocation25_spill] sm:$0xff] %v7237_v45  ;;  %v4510_v58 = vadd.f32 %v4509_v49, %v4508_v39 }
 0x3a5   : > { %v4511_v13 = vpop.f32.mrf.mxu1  ;;  %v4448_v8 = vpop.f32.mrf.mxu0 }
 0x3a6   : > { %v7240_v27 = vadd.f32 %v4510_v58, %v4446_v14  ;;  %v4449_v50 = vadd.f32 %v4448_v8, %v4447_v46 }
 0x3a7   : > { %v4512_v43 = vpop.f32.mrf.mxu1  ;;  %v4450_v11 = vpop.f32.mrf.mxu0 }
 0x3a8   : > { %8360 = vst [vmem:[#allocation27_spill] sm:$0xff] %v7240_v27  ;;  %v4513_v34 = vadd.f32 %v4512_v43, %v4511_v13 }
 0x3a9   : > { %v4514_v1 = vpop.f32.mrf.mxu1  ;;  %v4451_v51 = vpop.f32.mrf.mxu0 }
 0x3aa   : > { %v7242_v63 = vadd.f32 %v4513_v34, %v4449_v50  ;;  %v4452_v29 = vadd.f32 %v4451_v51, %v4450_v11 }
 0x3ab   : > { %v4515_v61 = vpop.f32.mrf.mxu1  ;;  %v4453_v24 = vpop.f32.mrf.mxu0 }
 0x3ac   : > { %8361 = vst [vmem:[#allocation26_spill] sm:$0xff] %v7242_v63  ;;  %v4516_v52 = vadd.f32 %v4515_v61, %v4514_v1  ;;  %v5340_v63 = vld [vmem:[%s6364_s11 + $0xc8] sm:$0xff]  }
 0x3ad   : > { %v4517_v44 = vpop.f32.mrf.mxu1  ;;  %v4454_v7 = vpop.f32.mrf.mxu0 }
 0x3ae   : > { %v7244_v41 = vadd.f32 %v4516_v52, %v4452_v29  ;;  %v4455_v31 = vadd.f32 %v4454_v7, %v4453_v24 }
 0x3af   : > { %v4518_v9 = vpop.f32.mrf.mxu1 }
 0x3b0   : > { %8362 = vst [vmem:[#allocation70_spill] sm:$0xff] %v7244_v41  ;;  %v4519_v3 = vadd.f32 %v4518_v9, %v4517_v44 }
 0x3b2   : > { %v7246_v0 = vpop.f32.mrf.mxu0  ;;  %v7248_v18 = vadd.f32 %v4519_v3, %v4455_v31 }
 0x3b4   : > { %8363 = vst [vmem:[#allocation28_spill] sm:$0xff] %v7248_v18  ;;  %v7250_v37 = vpop.f32.mrf.mxu0 }
 0x3b5   : > { %v2632_v56 = vmax.f32 %v7246_v0, %v7250_v37 }
 0x3b6   : > { %v7254_v59 = vpop.f32.mrf.mxu1  ;;  %v7256_v22 = vpop.f32.mrf.mxu0 }
 0x3b7   : > { %v2633_v48 = vmax.f32 %v2632_v56, %v7254_v59 }
 0x3b8   : > { %v7259_v42 = vpop.f32.mrf.mxu1  ;;  %v7261_v36 = vpop.f32.mrf.mxu0 }
 0x3b9   : > { %v2634_v55 = vmax.f32 %v2633_v48, %v7259_v42  ;;  %v2637_v16 = vmax.f32 %v7256_v22, %v7261_v36 }
 0x3ba   : > { %v7266_v40 = vpop.f32.mrf.mxu1  ;;  %v7268_v15 = vpop.f32.mrf.mxu0 }
 0x3bb   : > { %v2638_v28 = vmax.f32 %v2637_v16, %v7266_v40  ;;  %2635 = vmax.xlane.f32.xlu1 %v2634_v55 }
 0x3bc   : > { %v7271_v2 = vpop.f32.mrf.mxu1  ;;  %v7273_v30 = vpop.f32.mrf.mxu0 }
 0x3bd   : > { %v2639_v23 = vmax.f32 %v2638_v28, %v7271_v2  ;;  %v2642_v33 = vmax.f32 %v7268_v15, %v7273_v30 }
 0x3be   : > { %v7278_v6 = vpop.f32.mrf.mxu1  ;;  %v7280_v20 = vpop.f32.mrf.mxu0 }
 0x3bf   : > { %v2643_v4 = vmax.f32 %v2642_v33, %v7278_v6  ;;  %2640 = vmax.xlane.f32.xlu0 %v2639_v23 }
 0x3c0   : > { %v7283_v62 = vpop.f32.mrf.mxu1  ;;  %v7285_v32 = vpop.f32.mrf.mxu0 }
 0x3c1   : > { %v2644_v35 = vmax.f32 %v2643_v4, %v7283_v62  ;;  %v2647_v17 = vmax.f32 %v7280_v20, %v7285_v32 }
 0x3c2   : > { %v7290_v38 = vpop.f32.mrf.mxu1  ;;  %v7292_v12 = vpop.f32.mrf.mxu0 }
 0x3c3   : > { %v2648_v53 = vmax.f32 %v2647_v17, %v7290_v38  ;;  %2645 = vmax.xlane.f32.xlu0 %v2644_v35 }
 0x3c4   : > { %v7295_v25 = vpop.f32.mrf.mxu1  ;;  %v7297_v57 = vpop.f32.mrf.mxu0 }
 0x3c5   : > { %v2649_v26 = vmax.f32 %v2648_v53, %v7295_v25  ;;  %v2652_v39 = vmax.f32 %v7292_v12, %v7297_v57 }
 0x3c6   : > { %v7302_v21 = vpop.f32.mrf.mxu1  ;;  %v7304_v19 = vpop.f32.mrf.mxu0 }
 0x3c7   : > { %v2653_v14 = vmax.f32 %v2652_v39, %v7302_v21  ;;  %2650 = vmax.xlane.f32.xlu1 %v2649_v26 }
 0x3c8   : > { %v7307_v49 = vpop.f32.mrf.mxu1  ;;  %v7309_v46 = vpop.f32.mrf.mxu0 }
 0x3c9   : > { %v2654_v58 = vmax.f32 %v2653_v14, %v7307_v49  ;;  %v2657_v13 = vmax.f32 %v7304_v19, %v7309_v46 }
 0x3ca   : > { %v7314_v8 = vpop.f32.mrf.mxu1  ;;  %v7316_v50 = vpop.f32.mrf.mxu0 }
 0x3cb   : > { %v2658_v43 = vmax.f32 %v2657_v13, %v7314_v8  ;;  %2655 = vmax.xlane.f32.xlu0 %v2654_v58 }
 0x3cc   : > { %v7319_v11 = vpop.f32.mrf.mxu1  ;;  %v7321_v34 = vpop.f32.mrf.mxu0 }
 0x3cd   : > { %v2659_v1 = vmax.f32 %v2658_v43, %v7319_v11  ;;  %v2662_v51 = vmax.f32 %v7316_v50, %v7321_v34 }
 0x3ce   : > { %v7326_v29 = vpop.f32.mrf.mxu1  ;;  %v7328_v61 = vpop.f32.mrf.mxu0 }
 0x3cf   : > { %v2663_v24 = vmax.f32 %v2662_v51, %v7326_v29  ;;  %2660 = vmax.xlane.f32.xlu1 %v2659_v1 }
 0x3d0   : > { %v7331_v52 = vpop.f32.mrf.mxu1  ;;  %v7333_v44 = vpop.f32.mrf.mxu0 }
 0x3d1   : > { %v2664_v7 = vmax.f32 %v2663_v24, %v7331_v52  ;;  %v2667_v31 = vmax.f32 %v7328_v61, %v7333_v44 }
 0x3d2   : > { %v7338_v9 = vpop.f32.mrf.mxu1  ;;  %v7340_v3 = vpop.f32.mrf.mxu0 }
 0x3d3   : > { %v2668_v56 = vmax.f32 %v2667_v31, %v7338_v9  ;;  %2665 = vmax.xlane.f32.xlu0 %v2664_v7 }
 0x3d4   : > { %v7343_v48 = vpop.f32.mrf.mxu1  ;;  %v7345_v55 = vpop.f32.mrf.mxu0 }
 0x3d5   : > { %v2669_v16 = vmax.f32 %v2668_v56, %v7343_v48  ;;  %v2672_v28 = vmax.f32 %v7340_v3, %v7345_v55 }
 0x3d6   : > { %v7350_v23 = vpop.f32.mrf.mxu1  ;;  %v7352_v33 = vpop.f32.mrf.mxu0 }
 0x3d7   : > { %v2673_v4 = vmax.f32 %v2672_v28, %v7350_v23  ;;  %2670 = vmax.xlane.f32.xlu1 %v2669_v16 }
 0x3d8   : > { %v7355_v35 = vpop.f32.mrf.mxu1  ;;  %v7357_v17 = vpop.f32.mrf.mxu0 }
 0x3d9   : > { %v2677_v53 = vmax.f32 %v7352_v33, %v7357_v17  ;;  %v2674_v26 = vmax.f32 %v2673_v4, %v7355_v35 }
 0x3da   : > { %v7362_v39 = vpop.f32.mrf.mxu1  ;;  %v7364_v14 = vpop.f32.mrf.mxu0 }
 0x3db   : > { %v2678_v58 = vmax.f32 %v2677_v53, %v7362_v39  ;;  %2675 = vmax.xlane.f32.xlu1 %v2674_v26 }
 0x3dc   : > { %v7367_v13 = vpop.f32.mrf.mxu1  ;;  %v7369_v43 = vpop.f32.mrf.mxu0 }
 0x3dd   : > { %v2682_v1 = vmax.f32 %v7364_v14, %v7369_v43  ;;  %v2679_v51 = vmax.f32 %v2678_v58, %v7367_v13 }
 0x3de   : > { %v7374_v24 = vpop.f32.mrf.mxu1  ;;  %v7376_v7 = vpop.f32.mrf.mxu0 }
 0x3df   : > { %v2683_v31 = vmax.f32 %v2682_v1, %v7374_v24  ;;  %2680 = vmax.xlane.f32.xlu1 %v2679_v51 }
 0x3e0   : > { %v7379_v56 = vpop.f32.mrf.mxu1  ;;  %v7381_v16 = vpop.f32.mrf.mxu0 }
 0x3e1   : > { %8364 = vst [vmem:[#allocation78_spill] sm:$0xff] %v7381_v16  ;;  %v2687_v28 = vmax.f32 %v7376_v7, %v7381_v16  ;;  %v2684_v4 = vmax.f32 %v2683_v31, %v7379_v56 }
 0x3e2   : > { %v7386_v53 = vpop.f32.mrf.mxu1  ;;  %v7388_v26 = vpop.f32.mrf.mxu0 }
 0x3e3   : > { %8365 = vst [vmem:[#allocation29_spill] sm:$0xff] %v7386_v53  ;;  %8366 = vst [vmem:[#allocation31_spill] sm:$0xff] %v7388_v26  ;;  %v2688_v58 = vmax.f32 %v2687_v28, %v7386_v53  ;;  %2685 = vmax.xlane.f32.xlu1 %v2684_v4 }
 0x3e4   : > { %v7391_v41 = vpop.f32.mrf.mxu1  ;;  %v7393_v1 = vpop.f32.mrf.mxu0 }
 0x3e5   : > { %8367 = vst [vmem:[#allocation30_spill] sm:$0xff] %v7391_v41  ;;  %8368 = vst [vmem:[#allocation69_spill] sm:$0xff] %v7393_v1  ;;  %v2692_v51 = vmax.f32 %v7388_v26, %v7393_v1  ;;  %v2689_v27 = vmax.f32 %v2688_v58, %v7391_v41 }
 0x3e6   : > { %v7398_v5 = vpop.f32.mrf.mxu1  ;;  %v7400_v31 = vpop.f32.mrf.mxu0 }
 0x3e7   : > { %8369 = vst [vmem:[#allocation32_spill] sm:$0xff] %v7398_v5  ;;  %v2693_v47 = vmax.f32 %v2692_v51, %v7398_v5  ;;  %2690 = vmax.xlane.f32.xlu1 %v2689_v27 }
 0x3e8   : > { %v7403_v18 = vpop.f32.mrf.mxu1  ;;  %v7405_v28 = vpop.f32.mrf.mxu0 }
 0x3e9   : > { %8370 = vst [vmem:[#allocation80_spill] sm:$0xff] %v7403_v18  ;;  %v2694_v4 = vmax.f32 %v2693_v47, %v7403_v18  ;;  %3308 = vrot.lane.b32.xlu0 %v5340_v63, %s5565_s23 }
 0x3ea   : > { %v7410_v45 = vpop.f32.mrf.mxu1  ;;  %v7412_v1 = vpop.f32.mrf.mxu0 }
 0x3eb   : > { %8371 = vst [vmem:[#allocation33_spill] sm:$0xff] %v7412_v1  ;;  %2695 = vmax.xlane.f32.xlu1 %v2694_v4 }
 0x3ec   : > { %v7414_v58 = vpop.f32.mrf.mxu1  ;;  %v7416_v26 = vpop.f32.mrf.mxu0 }
 0x3ed   : > { %8372 = vst [vmem:[#allocation35_spill] sm:$0xff] %v7414_v58  ;;  %8373 = vst [vmem:[#allocation34_spill] sm:$0xff] %v7416_v26  ;;  %v2702_v27 = vmax.f32 %v7412_v1, %v7416_v26 }
 0x3ee   : > { %v7420_v51 = vpop.f32.mrf.mxu1  ;;  %v7422_v5 = vpop.f32.mrf.mxu0 }
 0x3ef   : > { %8374 = vst [vmem:[#allocation71_spill] sm:$0xff] %v7420_v51  ;;  %8375 = vst [vmem:[#allocation36_spill] sm:$0xff] %v7422_v5  ;;  %v2703_v47 = vmax.f32 %v2702_v27, %v7420_v51  ;;  %v2697_v27 = vmax.f32 %v7400_v31, %v7405_v28 }
 0x3f0   : > { %v7425_v18 = vpop.f32.mrf.mxu1  ;;  %v7427_v63 = vpop.f32.mrf.mxu0 }
 0x3f1   : > { %8376 = vst [vmem:[#allocation82_spill] sm:$0xff] %v7427_v63  ;;  %v2704_v41 = vmax.f32 %v2703_v47, %v7425_v18  ;;  %v2707_v4 = vmax.f32 %v7422_v5, %v7427_v63  ;;  %v2698_v51 = vmax.f32 %v2697_v27, %v7410_v45  ;;  %v7442_v63 = vld [vmem:[#allocation2 + $0x80] sm:$0xff]  ;;  %v7457_v27 = vld [vmem:[#allocation2 + $0x90] sm:$0xff] }
 0x3f2   : > { %v7432_v53 = vpop.f32.mrf.mxu1  ;;  %8381 = vst [vmem:[#allocation38_spill] sm:$0xff] %v7457_v27 }
 0x3f3   : > { %8377 = vst [vmem:[#allocation72_spill] sm:$0xff] %v7432_v53  ;;  %2705 = vmax.xlane.f32.xlu1 %v2704_v41  ;;  %v2708_v26 = vmax.f32 %v2707_v4, %v7432_v53  ;;  %v2699_v47 = vmax.f32 %v2698_v51, %v7414_v58  ;;  %v7447_v4 = vld [vmem:[#allocation2 + $0x88] sm:$0xff]  ;;  %v5343_v53 = vld [vmem:[%s6364_s11 + $0x40] sm:$0xff]  }
 0x3f4   : > { %v7435_v1 = vpop.f32.mrf.mxu1  ;;  %8379 = vst [vmem:[#allocation37_spill] sm:$0xff] %v7447_v4 }
 0x3f5   : > { %8378 = vst [vmem:[#allocation84_spill] sm:$0xff] %v7435_v1  ;;  %v2709_v16 = vmax.f32 %v2708_v26, %v7435_v1 }
 0x3f7   : > { %2710 = vmax.xlane.f32.xlu1 %v2709_v16 }
 0x408   : > { %2700 = vmax.xlane.f32.xlu0 %v2699_v47  ;;  %v5341_v47 = vld [vmem:[%s6364_s11 + $0x8] sm:$0xff]  }
 0x444   : > { %v2636_v5 = vpop.xlane.xlu1 %2635 }
 0x445   : > { %v7445_v41 = vmax.f32 %v7442_v63, %v2636_v5  ;;  %v5342_v5 = vld [vmem:[%s6364_s11 + $0x88] sm:$0xff]  }
 0x447   : > { %3580 = vst.msk [vmem:[#allocation2 + $0x80] sm:$0xff] %vm309_vm1, %v7445_v41  ;;  %2762 = vperm.xlu1 %4864, %v7445_v41  }
 0x448   : > { %v2641_v26 = vpop.xlane.xlu0 %2640 }
 0x449   : > { %v7455_v51 = vmax.f32 %v7447_v4, %v2641_v26  ;;  %v7469_v26 = vld [vmem:[#allocation2 + $0x98] sm:$0xff]  ;;  %v5344_v4 = vld [vmem:[%s6364_s11 + $0xc0] sm:$0xff]  }
 0x44a   : > { %8383 = vst [vmem:[#allocation41_spill] sm:$0xff] %v7469_v26 }
 0x44b   : > { %8380 = vst [vmem:[#allocation39_spill] sm:$0xff] %v7455_v51  ;;  %3581 = vst.msk [vmem:[#allocation2 + $0x88] sm:$0xff] %vm309_vm1, %v7455_v51  ;;  %3260 = vrot.lane.b32.xlu1 %v5341_v47, %s5565_s23  ;;  %2767 = vperm.xlu0 %4863, %v7455_v51  }
 0x44c   : > { %v2646_v16 = vpop.xlane.xlu0 %2645 }
 0x44d   : > { %v7467_v1 = vmax.f32 %v7457_v27, %v2646_v16  ;;  %v7481_v16 = vld [vmem:[#allocation2 + $0xa0] sm:$0xff] }
 0x44e   : > { %8385 = vst [vmem:[#allocation43_spill] sm:$0xff] %v7481_v16  ;;  %v5345_v27 = vld [vmem:[%s6364_s11] sm:$0xff]  }
 0x44f   : > { %8382 = vst [vmem:[#allocation40_spill] sm:$0xff] %v7467_v1  ;;  %3582 = vst.msk [vmem:[#allocation2 + $0x90] sm:$0xff] %vm309_vm1, %v7467_v1  ;;  %3292 = vrot.lane.b32.xlu0 %v5342_v5, %s5565_s23  ;;  %2772 = vperm.xlu1 %4864, %v7467_v1  }
 0x450   : > { %v2651_v47 = vpop.xlane.xlu1 %2650 }
 0x451   : > { %v7479_v51 = vmax.f32 %v7469_v26, %v2651_v47  ;;  %v7493_v47 = vld [vmem:[#allocation2 + $0xa8] sm:$0xff]  ;;  %v5346_v26 = vld [vmem:[%s6364_s11 + $0x80] sm:$0xff]  }
 0x452   : > { %8387 = vst [vmem:[#allocation42_spill] sm:$0xff] %v7493_v47 }
 0x453   : > { %8384 = vst [vmem:[#allocation73_spill] sm:$0xff] %v7479_v51  ;;  %3583 = vst.msk [vmem:[#allocation2 + $0x98] sm:$0xff] %vm309_vm1, %v7479_v51  ;;  %2777 = vperm.xlu0 %4863, %v7479_v51   ;;  %3274 = vrot.lane.b32.xlu1 %v5343_v53, %s5565_s23 }
 0x454   : > { %v2656_v5 = vpop.xlane.xlu0 %2655 }
 0x455   : > { %v7491_v1 = vmax.f32 %v7481_v16, %v2656_v5  ;;  %v7505_v5 = vld [vmem:[#allocation2 + $0xb0] sm:$0xff]  ;;  %v7517_v16 = vld [vmem:[#allocation2 + $0xb8] sm:$0xff] }
 0x456   : > { %8389 = vst [vmem:[#allocation75_spill] sm:$0xff] %v7505_v5 }
 0x457   : > { %8386 = vst [vmem:[#allocation86_spill] sm:$0xff] %v7491_v1  ;;  %3584 = vst.msk [vmem:[#allocation2 + $0xa0] sm:$0xff] %vm309_vm1, %v7491_v1  ;;  %3306 = vrot.lane.b32.xlu0 %v5344_v4, %s5565_s23  ;;  %2782 = vperm.xlu1 %4864, %v7491_v1  }
 0x458   : > { %v2661_v51 = vpop.xlane.xlu1 %2660 }
 0x459   : > { %v7503_v53 = vmax.f32 %v7493_v47, %v2661_v51 }
 0x45b   : > { %8388 = vst [vmem:[#allocation44_spill] sm:$0xff] %v7503_v53  ;;  %3585 = vst.msk [vmem:[#allocation2 + $0xa8] sm:$0xff] %vm309_vm1, %v7503_v53  ;;  %2787 = vperm.xlu0 %4863, %v7503_v53   ;;  %3258 = vrot.lane.b32.xlu1 %v5345_v27, %s5565_s23 }
 0x45c   : > { %v2666_v4 = vpop.xlane.xlu0 %2665 }
 0x45d   : > { %v7515_v1 = vmax.f32 %v7505_v5, %v2666_v4  ;;  %v7529_v4 = vld [vmem:[#allocation2 + $0xc0] sm:$0xff]  ;;  %v7549_v5 = vld [vmem:[#allocation2 + $0xd0] sm:$0xff] }
 0x45e   : > { %8392 = vst [vmem:[#allocation47_spill] sm:$0xff] %v7529_v4  ;;  %8396 = vst [vmem:[#allocation51_spill] sm:$0xff] %v7549_v5 }
 0x45f   : > { %8390 = vst [vmem:[#allocation87_spill] sm:$0xff] %v7515_v1  ;;  %3586 = vst.msk [vmem:[#allocation2 + $0xb0] sm:$0xff] %vm309_vm1, %v7515_v1  ;;  %3290 = vrot.lane.b32.xlu0 %v5346_v26, %s5565_s23  ;;  %2792 = vperm.xlu1 %4864, %v7515_v1   ;;  %v7539_v1 = vld [vmem:[#allocation2 + $0xc8] sm:$0xff] }
 0x460   : > { %v2671_v53 = vpop.xlane.xlu1 %2670  ;;  %v3309_v47 = vpop.permute.xlu0 %3308  ;;  %8394 = vst [vmem:[#allocation48_spill] sm:$0xff] %v7539_v1 }
 0x461   : > { %v7527_v27 = vmax.f32 %v7517_v16, %v2671_v53  ;;  %4660 = vmatprep.subr.bf16.mxu1 %v3309_v47 }
 0x463   : > { %8391 = vst [vmem:[#allocation45_spill] sm:$0xff] %v7527_v27  ;;  %3587 = vst.msk [vmem:[#allocation2 + $0xb8] sm:$0xff] %vm309_vm1, %v7527_v27  ;;  %2797 = vperm.xlu0 %4863, %v7527_v27   ;;  %v7559_v27 = vld [vmem:[#allocation2 + $0xd8] sm:$0xff] }
 0x464   : > { %v2676_v51 = vpop.xlane.xlu1 %2675  ;;  %8398 = vst [vmem:[#allocation50_spill] sm:$0xff] %v7559_v27 }
 0x465   : > { %v7537_v26 = vmax.f32 %v7529_v4, %v2676_v51 }
 0x467   : > { %8393 = vst [vmem:[#allocation46_spill] sm:$0xff] %v7537_v26  ;;  %3588 = vst.msk [vmem:[#allocation2 + $0xc0] sm:$0xff] %vm309_vm1, %v7537_v26  ;;  %2802 = vperm.xlu1 %4864, %v7537_v26  }
 0x468   : > { %v2681_v47 = vpop.xlane.xlu1 %2680 }
 0x469   : > { %v7547_v58 = vmax.f32 %v7539_v1, %v2681_v47  ;;  %v7569_v1 = vld [vmem:[#allocation2 + $0xe0] sm:$0xff] }
 0x46a   : > { %8399 = vst [vmem:[#allocation52_spill] sm:$0xff] %v7569_v1 }
 0x46b   : > { %8395 = vst [vmem:[#allocation49_spill] sm:$0xff] %v7547_v58  ;;  %3589 = vst.msk [vmem:[#allocation2 + $0xc8] sm:$0xff] %vm309_vm1, %v7547_v58  ;;  %2807 = vperm.xlu0 %4863, %v7547_v58   ;;  %v7589_v58 = vld [vmem:[#allocation2 + $0xf8] sm:$0xff] }
 0x46c   : > { %v2686_v53 = vpop.xlane.xlu1 %2685  ;;  %8403 = vst [vmem:[#allocation54_spill] sm:$0xff] %v7589_v58 }
 0x46d   : > { %v7557_v4 = vmax.f32 %v7549_v5, %v2686_v53 }
 0x46f   : > { %8397 = vst [vmem:[#allocation76_spill] sm:$0xff] %v7557_v4  ;;  %3590 = vst.msk [vmem:[#allocation2 + $0xd0] sm:$0xff] %vm309_vm1, %v7557_v4  ;;  %2812 = vperm.xlu1 %4864, %v7557_v4  }
 0x470   : > { %v2691_v51 = vpop.xlane.xlu1 %2690 }
 0x471   : > { %v7567_v26 = vmax.f32 %v7559_v27, %v2691_v51  ;;  %v7584_v51 = vld [vmem:[#allocation2 + $0xf0] sm:$0xff] }
 0x472   : > { %8401 = vst [vmem:[#allocation53_spill] sm:$0xff] %v7584_v51 }
 0x473   : > { %3591 = vst.msk [vmem:[#allocation2 + $0xd8] sm:$0xff] %vm309_vm1, %v7567_v26  ;;  %2817 = vperm.xlu0 %4863, %v7567_v26  }
 0x474   : > { %v2696_v47 = vpop.xlane.xlu1 %2695 }
 0x475   : > { %v7577_v5 = vmax.f32 %v7569_v1, %v2696_v47  ;;  %v7606_v47 = vld [vmem:[#allocation2 + $0xe8] sm:$0xff] }
 0x477   : > { %8400 = vst [vmem:[#allocation77_spill] sm:$0xff] %v7577_v5  ;;  %3592 = vst.msk [vmem:[#allocation2 + $0xe0] sm:$0xff] %vm309_vm1, %v7577_v5  ;;  %2822 = vperm.xlu1 %4864, %v7577_v5  }
 0x47c   : > { %v2706_v53 = vpop.xlane.xlu1 %2705 }
 0x47d   : > { %v7587_v27 = vmax.f32 %v7584_v51, %v2706_v53 }
 0x47f   : > { %8402 = vst [vmem:[#allocation55_spill] sm:$0xff] %v7587_v27  ;;  %3594 = vst.msk [vmem:[#allocation2 + $0xf0] sm:$0xff] %vm309_vm1, %v7587_v27  ;;  %2832 = vperm.xlu1 %4864, %v7587_v27  }
 0x480   : > { %v2711_v4 = vpop.xlane.xlu1 %2710 }
 0x481   : > { %v7597_v1 = vmax.f32 %v7589_v58, %v2711_v4 }
 0x483   : > { %8404 = vst [vmem:[#allocation56_spill] sm:$0xff] %v7597_v1  ;;  %1684 = vperm.xlu1 %4864, %v7219_v10   ;;  %3595 = vst.msk [vmem:[#allocation2 + $0xf8] sm:$0xff] %vm309_vm1, %v7597_v1 }
 0x487   : > { %1694 = vperm.xlu1 %4864, %v7224_v54  }
 0x48b   : > { %1704 = vperm.xlu1 %4864, %v7230_v60  }
 0x491   : > { %v2701_v51 = vpop.xlane.xlu0 %2700 }
 0x492   : > { %v7609_v27 = vmax.f32 %v7606_v47, %v2701_v51 }
 0x494   : > { %8405 = vst [vmem:[#allocation57_spill] sm:$0xff] %v7609_v27  ;;  %3593 = vst.msk [vmem:[#allocation2 + $0xe8] sm:$0xff] %vm309_vm1, %v7609_v27  ;;  %2827 = vperm.xlu0 %4863, %v7609_v27  }
 0x498   : > { %2837 = vperm.xlu0 %4863, %v7597_v1  }
 0x4c2   : > { %v2763_v10 = vpop.permute.xlu1 %2762 }
 0x4c3   : > { %v2840_v54 = vsub.f32 %v7246_v0, %v2763_v10  ;;  %v2841_v60 = vsub.f32 %v7250_v37, %v2763_v10  ;;  %v2842_v53 = vsub.f32 %v7254_v59, %v2763_v10  ;;  %v2843_v51 = vsub.f32 %v7259_v42, %v2763_v10 }
 0x4c5   : > { %5089 = vpow2.f32 %v2840_v54 }
 0x4c6   : > { %5091 = vpow2.f32 %v2841_v60  ;;  %v3261_v5 = vpop.permute.xlu1 %3260  ;;  %v2768_v4 = vpop.permute.xlu0 %2767 }
 0x4c7   : > { %5093 = vpow2.f32 %v2842_v53  ;;  %v2844_v58 = vsub.f32 %v7256_v22, %v2768_v4  ;;  %v2845_v27 = vsub.f32 %v7261_v36, %v2768_v4  ;;  %v2846_v1 = vsub.f32 %v7266_v40, %v2768_v4  ;;  %4597 = vmatpush3.bf16.msra.mxu0 %v3261_v5 }
 0x4c8   : > { %5095 = vpow2.f32 %v2843_v51  ;;  %v2847_v0 = vsub.f32 %v7271_v2, %v2768_v4 }
 0x4c9   : > { %5097 = vpow2.f32 %v2844_v58 }
 0x4ca   : > { %5099 = vpow2.f32 %v2845_v27  ;;  %v2773_v37 = vpop.permute.xlu1 %2772  ;;  %v3293_v59 = vpop.permute.xlu0 %3292 }
 0x4cb   : > { %5101 = vpow2.f32 %v2846_v1  ;;  %v2848_v42 = vsub.f32 %v7268_v15, %v2773_v37  ;;  %v2849_v10 = vsub.f32 %v7273_v30, %v2773_v37  ;;  %v2850_v53 = vsub.f32 %v7278_v6, %v2773_v37  ;;  %4661 = vmatpush3.bf16.msra.mxu1 %v3293_v59 }
 0x4cc   : > { %5103 = vpow2.f32 %v2847_v0  ;;  %v2851_v22 = vsub.f32 %v7283_v62, %v2773_v37 }
 0x4cd   : > { %5105 = vpow2.f32 %v2848_v42 }
 0x4ce   : > { %5107 = vpow2.f32 %v2849_v10  ;;  %v3275_v36 = vpop.permute.xlu1 %3274  ;;  %v2778_v40 = vpop.permute.xlu0 %2777 }
 0x4cf   : > { %5109 = vpow2.f32 %v2850_v53  ;;  %v2852_v2 = vsub.f32 %v7280_v20, %v2778_v40  ;;  %v2853_v58 = vsub.f32 %v7285_v32, %v2778_v40  ;;  %v2854_v1 = vsub.f32 %v7290_v38, %v2778_v40  ;;  %4598 = vmatprep.subr.bf16.mxu0 %v3275_v36 }
 0x4d0   : > { %5111 = vpow2.f32 %v2851_v22  ;;  %v2855_v15 = vsub.f32 %v7295_v25, %v2778_v40 }
 0x4d1   : > { %5113 = vpow2.f32 %v2852_v2 }
 0x4d2   : > { %v5090_v30 = vpop.eup %5089  ;;  %5115 = vpow2.f32 %v2853_v58  ;;  %v2783_v6 = vpop.permute.xlu1 %2782 }
 0x4d3   : > { %v3307_v62 = vpop.permute.xlu0 %3306  ;;  %v5092_v5 = vpop.eup %5091  ;;  %5117 = vpow2.f32 %v2854_v1  ;;  %v2856_v27 = vsub.f32 %v7292_v12, %v2783_v6  ;;  %v2857_v4 = vsub.f32 %v7297_v57, %v2783_v6  ;;  %v2858_v20 = vsub.f32 %v7302_v21, %v2783_v6 }
 0x4d4   : > { %4662 = vmatprep.subr.bf16.mxu1 %v3307_v62  ;;  %v5094_v32 = vpop.eup %5093  ;;  %5119 = vpow2.f32 %v2855_v15  ;;  %v2859_v38 = vsub.f32 %v7307_v49, %v2783_v6  ;;  %v3001_v54 = vadd.f32 %v5092_v5, %v5090_v30 }
 0x4d5   : > { %v5096_v25 = vpop.eup %5095  ;;  %5121 = vpow2.f32 %v2856_v27 }
 0x4d6   : > { %v5098_v60 = vpop.eup %5097  ;;  %5123 = vpow2.f32 %v2857_v4  ;;  %v3259_v51 = vpop.permute.xlu1 %3258  ;;  %v3002_v37 = vadd.f32 %v5094_v32, %v3001_v54 }
 0x4d7   : > { %v2788_v0 = vpop.permute.xlu0 %2787  ;;  %v5100_v59 = vpop.eup %5099  ;;  %5125 = vpow2.f32 %v2858_v20  ;;  %4599 = vmatpush3.bf16.msra.mxu0 %v3259_v51  ;;  %v3226_v36 = vpack.c.bf16 %v5098_v60, %v5090_v30 }
 0x4d8   : > { %v2860_v12 = vsub.f32 %v7304_v19, %v2788_v0  ;;  %v2861_v57 = vsub.f32 %v7309_v46, %v2788_v0  ;;  %v2862_v21 = vsub.f32 %v7314_v8, %v2788_v0  ;;  %v5102_v42 = vpop.eup %5101  ;;  %5127 = vpow2.f32 %v2859_v38 }
 0x4d9   : > { %v2863_v49 = vsub.f32 %v7319_v11, %v2788_v0  ;;  %v3003_v10 = vadd.f32 %v5096_v25, %v3002_v37  ;;  %v3227_v53 = vpack.c.bf16 %v5100_v59, %v5092_v5  ;;  %v5104_v22 = vpop.eup %5103  ;;  %v3006_v40 = vadd.f32 %v5100_v59, %v5098_v60 }
 0x4da   : > { %5129 = vpow2.f32 %v2860_v12  ;;  %v5106_v2 = vpop.eup %5105  ;;  %v3229_v19 = vpack.c.bf16 %v5104_v22, %v5096_v25  ;;  %v2793_v58 = vpop.permute.xlu1 %2792  ;;  %v3228_v1 = vpack.c.bf16 %v5102_v42, %v5094_v32 }
 0x4db   : > { %5131 = vpow2.f32 %v2861_v57  ;;  %3004 = vadd.xlane.f32.xlu0 %v3003_v10  ;;  %3386 = vmatprep.mubr.bf16.mxu0 %v3227_v53  ;;  %v3291_v46 = vpop.permute.xlu0 %3290  ;;  %v5108_v8 = vpop.eup %5107  ;;  %v2864_v15 = vsub.f32 %v7316_v50, %v2793_v58  ;;  %v2865_v11 = vsub.f32 %v7321_v34, %v2793_v58  ;;  %v2866_v6 = vsub.f32 %v7326_v29, %v2793_v58 }
 0x4dc   : > { %5133 = vpow2.f32 %v2862_v21  ;;  %3387 = vmatmul.mubr.bf16.vlgmr.msra.gmra.mxu0 %v3226_v36  ;;  %4663 = vmatpush3.bf16.msra.mxu1 %v3291_v46  ;;  %v5110_v30 = vpop.eup %5109  ;;  %v2867_v62 = vsub.f32 %v7331_v52, %v2793_v58  ;;  %v3007_v5 = vadd.f32 %v5102_v42, %v3006_v40  ;;  %v3011_v27 = vadd.f32 %v5108_v8, %v5106_v2 }
 0x4dd   : > { %5135 = vpow2.f32 %v2863_v49  ;;  %3483 = vmatprep.mubr.bf16.mxu1 %v3229_v19  ;;  %v5112_v4 = vpop.eup %5111 }
 0x4de   : > { %5137 = vpow2.f32 %v2864_v15  ;;  %v5114_v20 = vpop.eup %5113  ;;  %v3008_v32 = vadd.f32 %v5104_v22, %v3007_v5  ;;  %v3012_v38 = vadd.f32 %v5110_v30, %v3011_v27 }
 0x4df   : > { %5139 = vpow2.f32 %v2865_v11  ;;  %3484 = vmatmul.mubr.bf16.vlgmr.msra.gmra.mxu1 %v3228_v1  ;;  %v2798_v50 = vpop.permute.xlu0 %2797  ;;  %v5116_v34 = vpop.eup %5115  ;;  %v3230_v59 = vpack.c.bf16 %v5114_v20, %v5106_v2 }
 0x4e0   : > { %5141 = vpow2.f32 %v2866_v6  ;;  %v2868_v29 = vsub.f32 %v7328_v61, %v2798_v50  ;;  %v2869_v54 = vsub.f32 %v7333_v44, %v2798_v50  ;;  %v2870_v25 = vsub.f32 %v7338_v9, %v2798_v50  ;;  %v5118_v60 = vpop.eup %5117  ;;  %3009 = vadd.xlane.f32.xlu1 %v3008_v32 }
 0x4e1   : > { %5143 = vpow2.f32 %v2867_v62  ;;  %v2871_v52 = vsub.f32 %v7343_v48, %v2798_v50  ;;  %v3013_v51 = vadd.f32 %v5112_v4, %v3012_v38  ;;  %v3231_v0 = vpack.c.bf16 %v5116_v34, %v5108_v8  ;;  %v5120_v37 = vpop.eup %5119 }
 0x4e2   : > { %5145 = vpow2.f32 %v2868_v29  ;;  %v3016_v12 = vadd.f32 %v5116_v34, %v5114_v20  ;;  %v5122_v57 = vpop.eup %5121  ;;  %v3233_v61 = vpack.c.bf16 %v5120_v37, %v5112_v4  ;;  %v2803_v21 = vpop.permute.xlu1 %2802  ;;  %v3232_v44 = vpack.c.bf16 %v5118_v60, %v5110_v30 }
 0x4e3   : > { %5147 = vpow2.f32 %v2869_v54  ;;  %3014 = vadd.xlane.f32.xlu0 %v3013_v51  ;;  %3394 = vmatprep.mubr.bf16.mxu0 %v3231_v0  ;;  %v5124_v42 = vpop.eup %5123  ;;  %v2872_v9 = vsub.f32 %v7340_v3, %v2803_v21  ;;  %v2873_v49 = vsub.f32 %v7345_v55, %v2803_v21  ;;  %v2874_v48 = vsub.f32 %v7350_v23, %v2803_v21  ;;  %v8407_v0 = vld [vmem:[#allocation29_spill] sm:$0xff] }
 0x4e4   : > { %5149 = vpow2.f32 %v2870_v25  ;;  %3395 = vmatmul.mubr.bf16.gmra.mxu0 %v3230_v59  ;;  %v5126_v10 = vpop.eup %5125  ;;  %3491 = vmatprep.mubr.bf16.mxu1 %v3233_v61  ;;  %v2875_v53 = vsub.f32 %v7355_v35, %v2803_v21  ;;  %v3017_v22 = vadd.f32 %v5118_v60, %v3016_v12  ;;  %v3021_v36 = vadd.f32 %v5124_v42, %v5122_v57 }
 0x4e5   : > { %5151 = vpow2.f32 %v2871_v52  ;;  %v5128_v40 = vpop.eup %5127 }
 0x4e6   : > { %5153 = vpow2.f32 %v2872_v9  ;;  %v3018_v19 = vadd.f32 %v5120_v37, %v3017_v22  ;;  %v2808_v58 = vpop.permute.xlu0 %2807  ;;  %v3022_v3 = vadd.f32 %v5126_v10, %v3021_v36  ;;  %v8410_v22 = vld [vmem:[#allocation69_spill] sm:$0xff] }
 0x4e7   : > { %v5130_v2 = vpop.eup %5129  ;;  %5155 = vpow2.f32 %v2873_v49  ;;  %3492 = vmatmul.mubr.bf16.gmra.mxu1 %v3232_v44  ;;  %v2876_v55 = vsub.f32 %v7352_v33, %v2808_v58  ;;  %v2877_v23 = vsub.f32 %v7357_v17, %v2808_v58  ;;  %v2878_v1 = vsub.f32 %v7362_v39, %v2808_v58 }
 0x4e8   : > { %v5132_v46 = vpop.eup %5131  ;;  %5157 = vpow2.f32 %v2874_v48  ;;  %3019 = vadd.xlane.f32.xlu0 %v3018_v19  ;;  %v2879_v35 = vsub.f32 %v7367_v13, %v2808_v58  ;;  %v3023_v15 = vadd.f32 %v5128_v40, %v3022_v3  ;;  %v3234_v30 = vpack.c.bf16 %v5130_v2, %v5122_v57  ;;  %v8411_v19 = vld [vmem:[#allocation32_spill] sm:$0xff] }
 0x4e9   : > { %v5134_v8 = vpop.eup %5133  ;;  %5159 = vpow2.f32 %v2875_v53  ;;  %v3235_v11 = vpack.c.bf16 %v5132_v46, %v5124_v42  ;;  %v3026_v62 = vadd.f32 %v5132_v46, %v5130_v2 }
 0x4ea   : > { %v5136_v6 = vpop.eup %5135  ;;  %5161 = vpow2.f32 %v2876_v55  ;;  %3024 = vadd.xlane.f32.xlu1 %v3023_v15  ;;  %v2813_v27 = vpop.permute.xlu1 %2812  ;;  %v3236_v17 = vpack.c.bf16 %v5134_v8, %v5126_v10  ;;  %v8409_v10 = vld [vmem:[#allocation31_spill] sm:$0xff] }
 0x4eb   : > { %v5138_v5 = vpop.eup %5137  ;;  %5163 = vpow2.f32 %v2877_v23  ;;  %3402 = vmatprep.mubr.bf16.mxu0 %v3235_v11  ;;  %v3237_v33 = vpack.c.bf16 %v5136_v6, %v5128_v40  ;;  %v2880_v39 = vsub.f32 %v7364_v14, %v2813_v27  ;;  %v2881_v20 = vsub.f32 %v7369_v43, %v2813_v27 }
 0x4ec   : > { %v5140_v4 = vpop.eup %5139  ;;  %5165 = vpow2.f32 %v2878_v1  ;;  %v2882_v13 = vsub.f32 %v7374_v24, %v2813_v27  ;;  %3403 = vmatmul.mubr.bf16.gmra.mxu0 %v3234_v30  ;;  %v2883_v50 = vsub.f32 %v7379_v56, %v2813_v27  ;;  %v3027_v38 = vadd.f32 %v5134_v8, %v3026_v62  ;;  %v8406_v24 = vld [vmem:[#allocation78_spill] sm:$0xff]  ;;  %v8412_v1 = vld [vmem:[#allocation80_spill] sm:$0xff] }
 0x4ed   : > { %v5142_v32 = vpop.eup %5141  ;;  %5167 = vpow2.f32 %v2879_v35  ;;  %3499 = vmatprep.mubr.bf16.mxu1 %v3237_v33  ;;  %v3031_v34 = vadd.f32 %v5140_v4, %v5138_v5  ;;  %v8408_v56 = vld [vmem:[#allocation30_spill] sm:$0xff] }
 0x4ee   : > { %v5144_v29 = vpop.eup %5143  ;;  %5169 = vpow2.f32 %v2880_v39  ;;  %v3028_v25 = vadd.f32 %v5136_v6, %v3027_v38  ;;  %v2818_v60 = vpop.permute.xlu0 %2817  ;;  %v8414_v38 = vld [vmem:[#allocation34_spill] sm:$0xff] }
 0x4ef   : > { %v5146_v54 = vpop.eup %5145  ;;  %5171 = vpow2.f32 %v2881_v20  ;;  %3500 = vmatmul.mubr.bf16.gmra.mxu1 %v3236_v17  ;;  %v3032_v14 = vadd.f32 %v5142_v32, %v3031_v34  ;;  %v2884_v43 = vsub.f32 %v7376_v7, %v2818_v60  ;;  %v2885_v51 = vsub.f32 %v8406_v24, %v2818_v60 }
 0x4f0   : > { %v5148_v52 = vpop.eup %5147  ;;  %5173 = vpow2.f32 %v2882_v13  ;;  %v2886_v37 = vsub.f32 %v8407_v0, %v2818_v60  ;;  %3029 = vadd.xlane.f32.xlu0 %v3028_v25  ;;  %v2887_v12 = vsub.f32 %v8408_v56, %v2818_v60  ;;  %v3238_v44 = vpack.c.bf16 %v5146_v54, %v5138_v5 }
 0x4f1   : > { %v5150_v59 = vpop.eup %5149  ;;  %5175 = vpow2.f32 %v2883_v50  ;;  %v3033_v57 = vadd.f32 %v5144_v29, %v3032_v14  ;;  %v3239_v61 = vpack.c.bf16 %v5148_v52, %v5140_v4  ;;  %v3036_v42 = vadd.f32 %v5148_v52, %v5146_v54  ;;  %v8415_v54 = vld [vmem:[#allocation71_spill] sm:$0xff] }
 0x4f2   : > { %v5152_v21 = vpop.eup %5151  ;;  %5177 = vpow2.f32 %v2884_v43  ;;  %v2823_v49 = vpop.permute.xlu1 %2822  ;;  %v3240_v40 = vpack.c.bf16 %v5150_v59, %v5142_v32  ;;  %v8413_v32 = vld [vmem:[#allocation33_spill] sm:$0xff]  ;;  %v1622_v14 = vld [vmem:[#allocation4 + $0x58] sm:$0xff] }
 0x4f3   : > { %v5154_v9 = vpop.eup %5153  ;;  %5179 = vpow2.f32 %v2885_v51  ;;  %3034 = vadd.xlane.f32.xlu1 %v3033_v57  ;;  %3410 = vmatprep.mubr.bf16.mxu0 %v3239_v61  ;;  %v3241_v7 = vpack.c.bf16 %v5152_v21, %v5144_v29  ;;  %v2888_v53 = vsub.f32 %v8409_v10, %v2823_v49  ;;  %v2889_v36 = vsub.f32 %v8410_v22, %v2823_v49 }
 0x4f4   : > { %v5156_v48 = vpop.eup %5155  ;;  %5181 = vpow2.f32 %v2886_v37  ;;  %3411 = vmatmul.mubr.bf16.gmra.mxu0 %v3238_v44  ;;  %v2890_v58 = vsub.f32 %v8411_v19, %v2823_v49  ;;  %v3037_v3 = vadd.f32 %v5150_v59, %v3036_v42  ;;  %v2891_v8 = vsub.f32 %v8412_v1, %v2823_v49  ;;  %v1624_v42 = vld [vmem:[#allocation4 + $0x68] sm:$0xff]  ;;  %v1626_v19 = vld [vmem:[#allocation4 + $0x78] sm:$0xff] }
 0x4f5   : > { %v5158_v2 = vpop.eup %5157  ;;  %5183 = vpow2.f32 %v2887_v12  ;;  %3507 = vmatprep.mubr.bf16.mxu1 %v3241_v7  ;;  %v3041_v46 = vadd.f32 %v5156_v48, %v5154_v9  ;;  %v8416_v49 = vld [vmem:[#allocation25_spill] sm:$0xff] }
 0x4f6   : > { %v5160_v55 = vpop.eup %5159  ;;  %5185 = vpow2.f32 %v2888_v53  ;;  %v3038_v35 = vadd.f32 %v5152_v21, %v3037_v3 }
 0x4f7   : > { %v5162_v23 = vpop.eup %5161  ;;  %5187 = vpow2.f32 %v2889_v36  ;;  %3508 = vmatmul.mubr.bf16.gmra.mxu1 %v3240_v40  ;;  %v3042_v15 = vadd.f32 %v5158_v2, %v3041_v46 }
 0x4f8   : > { %v5164_v11 = vpop.eup %5163  ;;  %v3242_v6 = vpack.c.bf16 %v5162_v23, %v5154_v9  ;;  %5189 = vpow2.f32 %v2890_v58  ;;  %3039 = vadd.xlane.f32.xlu0 %v3038_v35 }
 0x4f9   : > { %v5166_v30 = vpop.eup %5165  ;;  %v3043_v62 = vadd.f32 %v5160_v55, %v3042_v15  ;;  %v3243_v5 = vpack.c.bf16 %v5164_v11, %v5156_v48  ;;  %v3046_v33 = vadd.f32 %v5164_v11, %v5162_v23  ;;  %5191 = vpow2.f32 %v2891_v8 }
 0x4fa   : > { %v5168_v27 = vpop.eup %5167  ;;  %v2833_v39 = vpop.permute.xlu1 %2832  ;;  %v3244_v52 = vpack.c.bf16 %v5166_v30, %v5158_v2 }
 0x4fb   : > { %v5170_v17 = vpop.eup %5169  ;;  %3044 = vadd.xlane.f32.xlu1 %v3043_v62  ;;  %3418 = vmatprep.mubr.bf16.mxu0 %v3243_v5  ;;  %v3245_v4 = vpack.c.bf16 %v5168_v27, %v5160_v55  ;;  %v3047_v20 = vadd.f32 %v5166_v30, %v3046_v33  ;;  %v2896_v50 = vsub.f32 %v8413_v32, %v2833_v39  ;;  %v8417_v55 = vld [vmem:[#allocation26_spill] sm:$0xff] }
 0x4fc   : > { %v5172_v13 = vpop.eup %5171  ;;  %v2897_v34 = vsub.f32 %v8414_v38, %v2833_v39  ;;  %3419 = vmatmul.mubr.bf16.gmra.mxu0 %v3242_v6  ;;  %v2898_v25 = vsub.f32 %v8415_v54, %v2833_v39  ;;  %v2899_v56 = vsub.f32 %v7425_v18, %v2833_v39  ;;  %v8418_v6 = vld [vmem:[#allocation28_spill] sm:$0xff]  ;;  %v8420_v38 = vld [vmem:[#allocation35_spill] sm:$0xff] }
 0x4fd   : > { %v5174_v29 = vpop.eup %5173  ;;  %3515 = vmatprep.mubr.bf16.mxu1 %v3245_v4  ;;  %v3048_v60 = vadd.f32 %v5168_v27, %v3047_v20  ;;  %v3051_v43 = vadd.f32 %v5172_v13, %v5170_v17  ;;  %5193 = vpow2.f32 %v2896_v50  ;;  %v8419_v50 = vsub.f32 %v7442_v63, %v7445_v41  ;;  %v8425_v63 = vld [vmem:[#allocation38_spill] sm:$0xff]  ;;  %v8426_v41 = vld [vmem:[#allocation40_spill] sm:$0xff] }
 0x4fe   : > { %v5176_v24 = vpop.eup %5175  ;;  %5195 = vpow2.f32 %v2897_v34  ;;  %v1685_v0 = vpop.permute.xlu1 %1684 }
 0x4ff   : > { %v5178_v51 = vpop.eup %5177  ;;  %3049 = vadd.xlane.f32.xlu0 %v3048_v60  ;;  %3516 = vmatmul.mubr.bf16.gmra.mxu1 %v3244_v52  ;;  %v3052_v37 = vadd.f32 %v5174_v29, %v3051_v43  ;;  %v1718_v12 = vmul.f32 %v1685_v0, %v1622_v14  ;;  %5197 = vpow2.f32 %v2898_v25  ;;  %v8421_v25 = vld [vmem:[#allocation36_spill] sm:$0xff]  ;;  %v8422_v14 = vld [vmem:[#allocation82_spill] sm:$0xff]  ;;  %v8428_v0 = vld [vmem:[#allocation41_spill] sm:$0xff] }
 0x500   : > { %v5180_v59 = vpop.eup %5179  ;;  %v3246_v57 = vpack.c.bf16 %v5178_v51, %v5170_v17  ;;  %5199 = vpow2.f32 %v2899_v56  ;;  %v8423_v52 = vld [vmem:[#allocation72_spill] sm:$0xff] }
 0x501   : > { %v5182_v61 = vpop.eup %5181  ;;  %v3053_v21 = vadd.f32 %v5176_v24, %v3052_v37  ;;  %v3247_v44 = vpack.c.bf16 %v5180_v59, %v5172_v13  ;;  %v3056_v9 = vadd.f32 %v5180_v59, %v5178_v51  ;;  %v2152_v48 = vadd.f32 %v8416_v49, %v1718_v12  ;;  %v8429_v37 = vld [vmem:[#allocation73_spill] sm:$0xff] }
 0x502   : > { %v5184_v7 = vpop.eup %5183  ;;  %v1695_v22 = vpop.permute.xlu1 %1694  ;;  %v3248_v58 = vpack.c.bf16 %v5182_v61, %v5174_v29  ;;  %5201 = vpow2.f32 %v8419_v50  ;;  %v8430_v59 = vsub.f32 %v8428_v0, %v8429_v37  ;;  %v8446_v50 = vld [vmem:[#allocation37_spill] sm:$0xff]  ;;  %v8460_v0 = vld [vmem:[#allocation51_spill] sm:$0xff]  ;;  %v8461_v37 = vld [vmem:[#allocation76_spill] sm:$0xff] }
 0x503   : > { %v7674_v10 = vpop.eup %5185  ;;  %3054 = vadd.xlane.f32.xlu1 %v3053_v21  ;;  %3426 = vmatprep.mubr.bf16.mxu0 %v3247_v44  ;;  %v3249_v53 = vpack.c.bf16 %v5184_v7, %v5176_v24  ;;  %v3057_v36 = vadd.f32 %v5182_v61, %v3056_v9  ;;  %2168 = vst.msk [vmem:[#allocation4 + $0x58] sm:$0xff] %vm374_vm0, %v2152_v48  ;;  %v8431_v9 = vld [vmem:[#allocation42_spill] sm:$0xff] }
 0x504   : > { %v7676_v40 = vpop.eup %5187  ;;  %v1720_v18 = vmul.f32 %v1695_v22, %v1624_v42  ;;  %3427 = vmatmul.mubr.bf16.gmra.mxu0 %v3246_v57  ;;  %v8427_v24 = vsub.f32 %v8425_v63, %v8426_v41  ;;  %v8458_v63 = vld [vmem:[#allocation46_spill] sm:$0xff] }
 0x505   : > { %3523 = vmatprep.mubr.bf16.mxu1 %v3249_v53  ;;  %v3058_v2 = vadd.f32 %v5184_v7, %v3057_v36  ;;  %v3061_v3 = vadd.f32 %v7676_v40, %v7674_v10  ;;  %v7681_v46 = vpop.eup %5189  ;;  %v8432_v7 = vld [vmem:[#allocation44_spill] sm:$0xff] }
 0x506   : > { %v2154_v23 = vadd.f32 %v8417_v55, %v1720_v18  ;;  %v1705_v1 = vpop.permute.xlu1 %1704  ;;  %v5192_v35 = vpop.eup %5191  ;;  %v8433_v49 = vsub.f32 %v8431_v9, %v8432_v7 }
 0x507   : > { %3059 = vadd.xlane.f32.xlu0 %v3058_v2  ;;  %3524 = vmatmul.mubr.bf16.gmra.mxu1 %v3248_v58  ;;  %v3062_v8 = vadd.f32 %v7681_v46, %v3061_v3  ;;  %v1722_v15 = vmul.f32 %v1705_v1, %v1626_v19  ;;  %v8434_v3 = vld [vmem:[#allocation45_spill] sm:$0xff] }
 0x508   : > { %2170 = vst.msk [vmem:[#allocation4 + $0x68] sm:$0xff] %vm374_vm0, %v2154_v23  ;;  %v8435_v55 = vsub.f32 %v7517_v16, %v8434_v3 }
 0x509   : > { %v3063_v11 = vadd.f32 %v5192_v35, %v3062_v8  ;;  %v2156_v30 = vadd.f32 %v8418_v6, %v1722_v15  ;;  %v8437_v15 = vld [vmem:[#allocation49_spill] sm:$0xff] }
 0x50a   : > { %v7687_v62 = vpop.eup %5193 }
 0x50b   : > { %3064 = vadd.xlane.f32.xlu1 %v3063_v11  ;;  %v5196_v5 = vpop.eup %5195  ;;  %2172 = vst.msk [vmem:[#allocation4 + $0x78] sm:$0xff] %vm374_vm0, %v2156_v30 }
 0x50c   : > { %v3071_v33 = vadd.f32 %v5196_v5, %v7687_v62  ;;  %v7691_v27 = vpop.eup %5197 }
 0x50d   : > { %v5200_v39 = vpop.eup %5199 }
 0x50e   : > { %v3072_v17 = vadd.f32 %v7691_v27, %v3071_v33 }
 0x50f   : > { %v2828_v4 = vpop.permute.xlu0 %2827  ;;  %v7708_v51 = vpop.eup %5201 }
 0x510   : > { %v2892_v20 = vsub.f32 %v7400_v31, %v2828_v4  ;;  %v2893_v13 = vsub.f32 %v7405_v28, %v2828_v4  ;;  %v2894_v32 = vsub.f32 %v7410_v45, %v2828_v4  ;;  %v2895_v34 = vsub.f32 %v8420_v38, %v2828_v4  ;;  %v8424_v45 = vld [vmem:[#allocation84_spill] sm:$0xff]  ;;  %v8441_v4 = vld [vmem:[#allocation57_spill] sm:$0xff]  ;;  %v8447_v38 = vld [vmem:[#allocation39_spill] sm:$0xff] }
 0x511   : > { %v3073_v29 = vadd.f32 %v5200_v39, %v3072_v17 }
 0x512   : > { %5203 = vpow2.f32 %v2892_v20  ;;  %v8443_v20 = vld [vmem:[#allocation54_spill] sm:$0xff] }
 0x513   : > { %5205 = vpow2.f32 %v2893_v13  ;;  %3074 = vadd.xlane.f32.xlu1 %v3073_v29  ;;  %v2838_v54 = vpop.permute.xlu0 %2837  ;;  %v8444_v13 = vld [vmem:[#allocation56_spill] sm:$0xff]  ;;  %v8449_v29 = vld [vmem:[#allocation43_spill] sm:$0xff] }
 0x514   : > { %5207 = vpow2.f32 %v2894_v32  ;;  %v2900_v60 = vsub.f32 %v8421_v25, %v2838_v54  ;;  %v2901_v31 = vsub.f32 %v8422_v14, %v2838_v54  ;;  %v2902_v28 = vsub.f32 %v8423_v52, %v2838_v54  ;;  %v8454_v52 = vld [vmem:[#allocation87_spill] sm:$0xff] }
 0x515   : > { %5209 = vpow2.f32 %v2895_v34  ;;  %v2903_v43 = vsub.f32 %v8424_v45, %v2838_v54  ;;  %v8448_v34 = vsub.f32 %v8446_v50, %v8447_v38  ;;  %v8450_v54 = vld [vmem:[#allocation86_spill] sm:$0xff] }
 0x516   : > { %5211 = vpow2.f32 %v2900_v60  ;;  %v8451_v25 = vsub.f32 %v8449_v29, %v8450_v54  ;;  %v8452_v60 = vld [vmem:[#allocation24_spill] sm:$0xff]  ;;  %v8456_v45 = vld [vmem:[#allocation74_spill] sm:$0xff] }
 0x517   : > { %5213 = vpow2.f32 %v2901_v31  ;;  %v8453_v31 = vld [vmem:[#allocation75_spill] sm:$0xff] }
 0x518   : > { %5215 = vpow2.f32 %v2902_v28  ;;  %v8455_v28 = vsub.f32 %v8453_v31, %v8454_v52  ;;  %v2977_v31 = vld [vmem:[#allocation3 + $0xc0] sm:$0xff] }
 0x519   : > { %5217 = vpow2.f32 %v2903_v43  ;;  %v8457_v43 = vld [vmem:[#allocation47_spill] sm:$0xff] }
 0x51a   : > { %5219 = vpow2.f32 %v8427_v24  ;;  %v8459_v41 = vsub.f32 %v8457_v43, %v8458_v63 }
 0x51b   : > { %5221 = vpow2.f32 %v8430_v59  ;;  %v8462_v59 = vsub.f32 %v8460_v0, %v8461_v37  ;;  %v2978_v0 = vld [vmem:[#allocation3 + $0xc8] sm:$0xff] }
 0x51c   : > { %5223 = vpow2.f32 %v8433_v49 }
 0x51d   : > { %5225 = vpow2.f32 %v8435_v55 }
 0x51f   : > { %v5204_v56 = vpop.eup %5203 }
 0x520   : > { %v5206_v12 = vpop.eup %5205  ;;  %v3250_v57 = vpack.c.bf16 %v5204_v56, %v7674_v10 }
 0x521   : > { %v5208_v61 = vpop.eup %5207  ;;  %v3251_v21 = vpack.c.bf16 %v5206_v12, %v7676_v40  ;;  %v3066_v44 = vadd.f32 %v5206_v12, %v5204_v56  ;;  %v8463_v12 = vld [vmem:[#allocation52_spill] sm:$0xff] }
 0x522   : > { %v5210_v42 = vpop.eup %5209  ;;  %v3252_v48 = vpack.c.bf16 %v5208_v61, %v7681_v46 }
 0x523   : > { %v5212_v53 = vpop.eup %5211  ;;  %3434 = vmatprep.mubr.bf16.mxu0 %v3251_v21  ;;  %v3253_v22 = vpack.c.bf16 %v5210_v42, %v5192_v35  ;;  %v3067_v36 = vadd.f32 %v5208_v61, %v3066_v44  ;;  %v8436_v35 = vld [vmem:[#allocation48_spill] sm:$0xff]  ;;  %v8466_v44 = vld [vmem:[#allocation53_spill] sm:$0xff] }
 0x524   : > { %v5214_v18 = vpop.eup %5213  ;;  %3132 = vperm.xlu1 %4864, %v7708_v51   ;;  %3435 = vmatmul.mubr.bf16.gmra.mxu0 %v3250_v57  ;;  %v8438_v11 = vsub.f32 %v8436_v35, %v8437_v15  ;;  %v3254_v6 = vpack.c.bf16 %v5212_v53, %v7687_v62  ;;  %v8442_v62 = vsub.f32 %v7606_v47, %v8441_v4  ;;  %v8464_v57 = vld [vmem:[#allocation77_spill] sm:$0xff]  ;;  %v2972_v35 = vld [vmem:[#allocation3 + $0x98] sm:$0xff] }
 0x525   : > { %v5216_v10 = vpop.eup %5215  ;;  %3531 = vmatprep.mubr.bf16.mxu1 %v3253_v22  ;;  %v3068_v2 = vadd.f32 %v5210_v42, %v3067_v36  ;;  %v3255_v40 = vpack.c.bf16 %v5214_v18, %v5196_v5  ;;  %v3076_v19 = vadd.f32 %v5214_v18, %v5212_v53  ;;  %v8439_v5 = vld [vmem:[#allocation50_spill] sm:$0xff]  ;;  %v8465_v61 = vsub.f32 %v8463_v12, %v8464_v57  ;;  %v8467_v42 = vld [vmem:[#allocation55_spill] sm:$0xff]  ;;  %v2969_v53 = vld [vmem:[#allocation3 + $0x80] sm:$0xff] }
 0x526   : > { %v5218_v58 = vpop.eup %5217  ;;  %3532 = vmatmul.mubr.bf16.gmra.mxu1 %v3252_v48  ;;  %5227 = vpow2.f32 %v8438_v11  ;;  %v3256_v16 = vpack.c.bf16 %v5216_v10, %v7691_v27  ;;  %v8440_v33 = vsub.f32 %v8439_v5, %v7567_v26  ;;  %v8445_v27 = vsub.f32 %v8443_v20, %v8444_v13  ;;  %v2975_v20 = vld [vmem:[#allocation3 + $0xb0] sm:$0xff] }
 0x527   : > { %v7723_v46 = vpop.eup %5219  ;;  %3069 = vadd.xlane.f32.xlu0 %v3068_v2  ;;  %3442 = vmatprep.mubr.bf16.mxu0 %v3255_v40  ;;  %v3257_v23 = vpack.c.bf16 %v5218_v58, %v5200_v39  ;;  %v3077_v1 = vadd.f32 %v5216_v10, %v3076_v19  ;;  %v8468_v9 = vsub.f32 %v8466_v44, %v8467_v42  ;;  %v2970_v2 = vld [vmem:[#allocation3 + $0x88] sm:$0xff]  ;;  %v2971_v40 = vld [vmem:[#allocation3 + $0x90] sm:$0xff] }
 0x528   : > { %3142 = vperm.xlu1 %4864, %v7723_v46   ;;  %v7730_v30 = vpop.eup %5221  ;;  %5229 = vpow2.f32 %v8440_v33  ;;  %v2985_v36 = vmul.f32 %v7708_v51, %v2969_v53  ;;  %v2987_v55 = vmul.f32 %v7723_v46, %v2971_v40  ;;  %v2973_v51 = vld [vmem:[#allocation3 + $0xa0] sm:$0xff]  ;;  %v2979_v12 = vld [vmem:[#allocation3 + $0xd0] sm:$0xff] }
 0x529   : > { %3539 = vmatprep.mubr.bf16.mxu1 %v3257_v23  ;;  %v3078_v8 = vadd.f32 %v5218_v58, %v3077_v1  ;;  %v7737_v17 = vpop.eup %5223  ;;  %5231 = vpow2.f32 %v8442_v62  ;;  %v2988_v15 = vmul.f32 %v7730_v30, %v2972_v35  ;;  %v2974_v62 = vld [vmem:[#allocation3 + $0xa8] sm:$0xff] }
 0x52a   : > { %v7743_v39 = vpop.eup %5225  ;;  %5233 = vpow2.f32 %v8445_v27  ;;  %v2990_v13 = vmul.f32 %v7737_v17, %v2974_v62 }
 0x52b   : > { %3079 = vadd.xlane.f32.xlu0 %v3078_v8  ;;  %5235 = vpow2.f32 %v8448_v34 }
 0x52c   : > { %3147 = vperm.xlu1 %4864, %v7730_v30   ;;  %3443 = vmatmul.mubr.bf16.gmra.mxu0 %v3254_v6  ;;  %5237 = vpow2.f32 %v8451_v25 }
 0x52d   : > { %5239 = vpow2.f32 %v8455_v28 }
 0x52e   : > { %3540 = vmatmul.mubr.bf16.gmra.mxu1 %v3256_v16  ;;  %5241 = vpow2.f32 %v8459_v41 }
 0x52f   : > { %5243 = vpow2.f32 %v8462_v59 }
 0x530   : > { %3157 = vperm.xlu1 %4864, %v7737_v17   ;;  %5245 = vpow2.f32 %v8465_v61 }
 0x531   : > { %5247 = vpow2.f32 %v8468_v9 }
 0x533   : > { %v7749_v32 = vpop.eup %5227 }
 0x534   : > { %3167 = vperm.xlu1 %4864, %v7743_v39  }
 0x535   : > { %v7752_v26 = vpop.eup %5229 }
 0x536   : > { %v7758_v47 = vpop.eup %5231 }
 0x537   : > { %v7765_v14 = vpop.eup %5233 }
 0x538   : > { %3177 = vperm.xlu1 %4864, %v7749_v32   ;;  %v5236_v24 = vpop.eup %5235 }
 0x539   : > { %v5238_v56 = vpop.eup %5237  ;;  %v2986_v19 = vmul.f32 %v5236_v24, %v2970_v2 }
 0x53a   : > { %v5240_v21 = vpop.eup %5239  ;;  %v2989_v16 = vmul.f32 %v5238_v56, %v2973_v51 }
 0x53b   : > { %v5242_v7 = vpop.eup %5241  ;;  %v2991_v30 = vmul.f32 %v5240_v21, %v2975_v20 }
 0x53c   : > { %3187 = vperm.xlu1 %4864, %v7752_v26   ;;  %v7784_v49 = vpop.eup %5243  ;;  %v2993_v43 = vmul.f32 %v5242_v7, %v2977_v31 }
 0x53d   : > { %v7787_v48 = vpop.eup %5245 }
 0x53e   : > { %v7790_v22 = vpop.eup %5247 }
 0x540   : > { %3197 = vperm.xlu1 %4864, %v7758_v47  }
 0x541   : > { %1689 = vperm.xlu0 %4863, %v8452_v60   ;;  %v2976_v60 = vld [vmem:[#allocation3 + $0xb8] sm:$0xff] }
 0x542   : > { %v2992_v52 = vmul.f32 %v7743_v39, %v2976_v60  ;;  %v2994_v39 = vmul.f32 %v7749_v32, %v2978_v0 }
 0x544   : > { %3207 = vperm.xlu1 %4864, %v7765_v14  }
 0x545   : > { %1699 = vperm.xlu0 %4863, %v8456_v45  }
 0x549   : > { %3137 = vperm.xlu0 %4863, %v5236_v24  }
 0x54d   : > { %3152 = vperm.xlu0 %4863, %v5238_v56  }
 0x551   : > { %3162 = vperm.xlu0 %4863, %v5240_v21   ;;  %v2995_v21 = vmul.f32 %v7784_v49, %v2979_v12 }
 0x555   : > { %3172 = vperm.xlu0 %4863, %v5242_v7   ;;  %v2980_v7 = vld [vmem:[#allocation3 + $0xd8] sm:$0xff] }
 0x556   : > { %v2996_v32 = vmul.f32 %v7752_v26, %v2980_v7  ;;  %v2983_v26 = vld [vmem:[#allocation3 + $0xf0] sm:$0xff] }
 0x559   : > { %3182 = vperm.xlu0 %4863, %v7784_v49  }
 0x55d   : > { %3192 = vperm.xlu0 %4863, %v7787_v48  }
 0x561   : > { %3202 = vperm.xlu0 %4863, %v7790_v22  }
 0x564   : > { %v3005_v18 = vpop.xlane.xlu0 %3004 }
 0x565   : > { %v3081_v10 = vadd.f32 %v3005_v18, %v2985_v36 }
 0x567   : > { %3097 = vst.msk [vmem:[#allocation3 + $0x80] sm:$0xff] %vm309_vm1, %v3081_v10  ;;  %v2981_v10 = vld [vmem:[#allocation3 + $0xe0] sm:$0xff] }
 0x568   : > { %v2997_v49 = vmul.f32 %v7787_v48, %v2981_v10 }
 0x569   : > { %v3010_v58 = vpop.xlane.xlu1 %3009 }
 0x56a   : > { %v3082_v3 = vadd.f32 %v3010_v58, %v2986_v19 }
 0x56c   : > { %v3015_v23 = vpop.xlane.xlu0 %3014  ;;  %3098 = vst.msk [vmem:[#allocation3 + $0x88] sm:$0xff] %vm309_vm1, %v3082_v3 }
 0x56d   : > { %v3083_v1 = vadd.f32 %v3015_v23, %v2987_v55 }
 0x56e   : > { %v3751_v8 = vld [vmem:[#allocation3 + $0x80] sm:$0xff] }
 0x56f   : > { %5249 = vrcp.f32 %v3751_v8  ;;  %3099 = vst.msk [vmem:[#allocation3 + $0x90] sm:$0xff] %vm309_vm1, %v3083_v1 }
 0x571   : > { %v3020_v11 = vpop.xlane.xlu0 %3019 }
 0x572   : > { %v3084_v6 = vadd.f32 %v3020_v11, %v2988_v15  ;;  %v2999_v15 = vmul.f32 %v7790_v22, %v2983_v26 }
 0x573   : > { %v3752_v5 = vld [vmem:[#allocation3 + $0x88] sm:$0xff]  ;;  %v3025_v33 = vpop.xlane.xlu1 %3024 }
 0x574   : > { %5251 = vrcp.f32 %v3752_v5  ;;  %3100 = vst.msk [vmem:[#allocation3 + $0x98] sm:$0xff] %vm309_vm1, %v3084_v6  ;;  %v3085_v46 = vadd.f32 %v3025_v33, %v2989_v16 }
 0x576   : > { %v3753_v4 = vld [vmem:[#allocation3 + $0x90] sm:$0xff]  ;;  %3101 = vst.msk [vmem:[#allocation3 + $0xa0] sm:$0xff] %vm309_vm1, %v3085_v46 }
 0x577   : > { %5253 = vrcp.f32 %v3753_v4  ;;  %v3114_v4 = vld [vmem:[#allocation4 + $0x80] sm:$0xff] }
 0x579   : > { %v3030_v27 = vpop.xlane.xlu0 %3029 }
 0x57a   : > { %v3086_v50 = vadd.f32 %v3030_v27, %v2990_v13 }
 0x57b   : > { %v3754_v34 = vld [vmem:[#allocation3 + $0x98] sm:$0xff] }
 0x57c   : > { %v5250_v38 = vpop.eup %5249  ;;  %v3035_v29 = vpop.xlane.xlu1 %3034  ;;  %5255 = vrcp.f32 %v3754_v34  ;;  %3102 = vst.msk [vmem:[#allocation3 + $0xa8] sm:$0xff] %vm309_vm1, %v3086_v50 }
 0x57d   : > { %v3087_v54 = vadd.f32 %v3035_v29, %v2991_v30  ;;  %3801 = vperm.xlu0 %4863, %v5250_v38   ;;  %v3755_v25 = vld [vmem:[#allocation3 + $0xa0] sm:$0xff] }
 0x57e   : > { %5257 = vrcp.f32 %v3755_v25 }
 0x57f   : > { %3103 = vst.msk [vmem:[#allocation3 + $0xb0] sm:$0xff] %vm309_vm1, %v3087_v54 }
 0x581   : > { %v5252_v17 = vpop.eup %5251  ;;  %v3040_v28 = vpop.xlane.xlu0 %3039 }
 0x582   : > { %v3088_v45 = vadd.f32 %v3040_v28, %v2992_v52  ;;  %3806 = vperm.xlu1 %4864, %v5252_v17  }
 0x583   : > { %v3756_v41 = vld [vmem:[#allocation3 + $0xa8] sm:$0xff] }
 0x584   : > { %v5254_v63 = vpop.eup %5253  ;;  %v3045_v24 = vpop.xlane.xlu1 %3044  ;;  %5259 = vrcp.f32 %v3756_v41  ;;  %3104 = vst.msk [vmem:[#allocation3 + $0xb8] sm:$0xff] %vm309_vm1, %v3088_v45 }
 0x585   : > { %v3089_v37 = vadd.f32 %v3045_v24, %v2993_v43  ;;  %3811 = vperm.xlu0 %4863, %v5254_v63   ;;  %v3599_v43 = vld [vmem:[#allocation3] sm:$0xff]  ;;  %v3116_v63 = vld [vmem:[#allocation4 + $0x90] sm:$0xff] }
 0x586   : > { %v3757_v59 = vld [vmem:[#allocation3 + $0xb0] sm:$0xff] }
 0x587   : > { %5261 = vrcp.f32 %v3757_v59  ;;  %3105 = vst.msk [vmem:[#allocation3 + $0xc0] sm:$0xff] %vm309_vm1, %v3089_v37 }
 0x588   : > { %v3050_v56 = vpop.xlane.xlu0 %3049 }
 0x589   : > { %v3090_v57 = vadd.f32 %v3050_v56, %v2994_v39  ;;  %v5256_v61 = vpop.eup %5255 }
 0x58a   : > { %3816 = vperm.xlu1 %4864, %v5256_v61   ;;  %v3601_v61 = vld [vmem:[#allocation3 + $0x10] sm:$0xff] }
 0x58b   : > { %3106 = vst.msk [vmem:[#allocation3 + $0xc8] sm:$0xff] %vm309_vm1, %v3090_v57  ;;  %v5258_v44 = vpop.eup %5257  ;;  %v3758_v42 = vld [vmem:[#allocation3 + $0xb8] sm:$0xff] }
 0x58c   : > { %v3055_v9 = vpop.xlane.xlu1 %3054  ;;  %5263 = vrcp.f32 %v3758_v42  ;;  %3821 = vperm.xlu0 %4863, %v5258_v44  }
 0x58d   : > { %v3091_v53 = vadd.f32 %v3055_v9, %v2995_v21  ;;  %v3117_v21 = vld [vmem:[#allocation4 + $0x98] sm:$0xff]  ;;  %v2982_v9 = vld [vmem:[#allocation3 + $0xe8] sm:$0xff] }
 0x58e   : > { %v3759_v36 = vld [vmem:[#allocation3 + $0xc0] sm:$0xff] }
 0x58f   : > { %5265 = vrcp.f32 %v3759_v36  ;;  %3107 = vst.msk [vmem:[#allocation3 + $0xd0] sm:$0xff] %vm309_vm1, %v3091_v53 }
 0x590   : > { %v3060_v18 = vpop.xlane.xlu0 %3059 }
 0x591   : > { %v3092_v2 = vadd.f32 %v3060_v18, %v2996_v32  ;;  %v5260_v40 = vpop.eup %5259 }
 0x592   : > { %v3760_v19 = vld [vmem:[#allocation3 + $0xc8] sm:$0xff]  ;;  %3826 = vperm.xlu1 %4864, %v5260_v40  }
 0x593   : > { %5267 = vrcp.f32 %v3760_v19  ;;  %3108 = vst.msk [vmem:[#allocation3 + $0xd8] sm:$0xff] %vm309_vm1, %v3092_v2  ;;  %v2998_v19 = vmul.f32 %v7758_v47, %v2982_v9  ;;  %v3605_v47 = vld [vmem:[#allocation3 + $0x30] sm:$0xff] }
 0x594   : > { %v5262_v58 = vpop.eup %5261  ;;  %v3065_v3 = vpop.xlane.xlu1 %3064 }
 0x595   : > { %v3093_v55 = vadd.f32 %v3065_v3, %v2997_v49  ;;  %3831 = vperm.xlu0 %4863, %v5262_v58   ;;  %v3603_v49 = vld [vmem:[#allocation3 + $0x20] sm:$0xff]  ;;  %v2984_v3 = vld [vmem:[#allocation3 + $0xf8] sm:$0xff] }
 0x596   : > { %v3761_v23 = vld [vmem:[#allocation3 + $0xd0] sm:$0xff] }
 0x597   : > { %5269 = vrcp.f32 %v3761_v23  ;;  %3109 = vst.msk [vmem:[#allocation3 + $0xe0] sm:$0xff] %vm309_vm1, %v3093_v55 }
 0x599   : > { %v5264_v1 = vpop.eup %5263 }
 0x59a   : > { %v3762_v8 = vld [vmem:[#allocation3 + $0xd8] sm:$0xff]  ;;  %3836 = vperm.xlu1 %4864, %v5264_v1  }
 0x59b   : > { %5271 = vrcp.f32 %v3762_v8 }
 0x59c   : > { %v5266_v35 = vpop.eup %5265  ;;  %v4600_v51 = vpop.f32.mrf.mxu0 }
 0x59d   : > { %v3075_v11 = vpop.xlane.xlu1 %3074  ;;  %3841 = vperm.xlu0 %4863, %v5266_v35  }
 0x59e   : > { %v3763_v48 = vld [vmem:[#allocation3 + $0xe0] sm:$0xff]  ;;  %v3095_v6 = vadd.f32 %v3075_v11, %v2999_v15  ;;  %v4601_v16 = vpop.f32.mrf.mxu0 }
 0x59f   : > { %5273 = vrcp.f32 %v3763_v48  ;;  %v4664_v5 = vpop.f32.mrf.mxu1  ;;  %v4602_v13 = vadd.f32 %v4601_v16, %v4600_v51  ;;  %v3000_v51 = vmul.f32 %v7765_v14, %v2984_v3 }
 0x5a0   : > { %v5268_v33 = vpop.eup %5267  ;;  %3111 = vst.msk [vmem:[#allocation3 + $0xf0] sm:$0xff] %vm309_vm1, %v3095_v6  ;;  %v7817_v46 = vpop.f32.mrf.mxu0  ;;  %v3119_v6 = vld [vmem:[#allocation4 + $0xa8] sm:$0xff] }
 0x5a1   : > { %v3133_v62 = vpop.permute.xlu1 %3132  ;;  %3846 = vperm.xlu1 %4864, %v5268_v33   ;;  %v4665_v20 = vpop.f32.mrf.mxu1 }
 0x5a2   : > { %v7819_v27 = vpop.f32.mrf.mxu0  ;;  %v4666_v22 = vadd.f32 %v4665_v20, %v4664_v5  ;;  %v3210_v38 = vmul.f32 %v3133_v62, %v3114_v4  ;;  %v3607_v20 = vld [vmem:[#allocation3 + $0x40] sm:$0xff] }
 0x5a3   : > { %v7821_v50 = vpop.f32.mrf.mxu1 }
 0x5a4   : > { %v5270_v30 = vpop.eup %5269  ;;  %v3486_v34 = vadd.f32 %v4666_v22, %v4602_v13  ;;  %v4606_v29 = vpop.f32.mrf.mxu0 }
 0x5a5   : > { %3851 = vperm.xlu0 %4863, %v5270_v30   ;;  %v7823_v54 = vpop.f32.mrf.mxu1  ;;  %v3143_v52 = vpop.permute.xlu1 %3142 }
 0x5a6   : > { %v3548_v25 = vadd.f32 %v3486_v34, %v3210_v38  ;;  %v4607_v60 = vpop.f32.mrf.mxu0  ;;  %v3212_v56 = vmul.f32 %v3143_v52, %v3116_v63  ;;  %v3609_v52 = vld [vmem:[#allocation3 + $0x50] sm:$0xff] }
 0x5a7   : > { %v3765_v31 = vld [vmem:[#allocation3 + $0xf0] sm:$0xff]  ;;  %v4670_v17 = vpop.f32.mrf.mxu1  ;;  %v4608_v24 = vadd.f32 %v4607_v60, %v4606_v29 }
 0x5a8   : > { %v5272_v28 = vpop.eup %5271  ;;  %5275 = vrcp.f32 %v3765_v31  ;;  %3564 = vst.msk [vmem:[#allocation4 + $0x80] sm:$0xff] %vm374_vm0, %v3548_v25  ;;  %v4609_v45 = vpop.f32.mrf.mxu0  ;;  %v1623_v31 = vld [vmem:[#allocation4 + $0x60] sm:$0xff] }
 0x5a9   : > { %3856 = vperm.xlu1 %4864, %v5272_v28   ;;  %v4671_v41 = vpop.f32.mrf.mxu1  ;;  %5277 = vrcp.f32 %v3599_v43  ;;  %v3148_v44 = vpop.permute.xlu1 %3147 }
 0x5aa   : > { %v4610_v0 = vpop.f32.mrf.mxu0  ;;  %v4672_v37 = vadd.f32 %v4671_v41, %v4670_v17  ;;  %5279 = vrcp.f32 %v3601_v61  ;;  %v3213_v10 = vmul.f32 %v3148_v44, %v3117_v21  ;;  %v3121_v41 = vld [vmem:[#allocation4 + $0xb8] sm:$0xff]  ;;  %v3600_v61 = vld [vmem:[#allocation3 + $0x8] sm:$0xff] }
 0x5ab   : > { %v4673_v59 = vpop.f32.mrf.mxu1  ;;  %v4611_v7 = vadd.f32 %v4610_v0, %v4609_v45  ;;  %5281 = vrcp.f32 %v3603_v49  ;;  %v8469_v21 = vld [vmem:[#allocation27_spill] sm:$0xff] }
 0x5ac   : > { %v5274_v39 = vpop.eup %5273  ;;  %v3494_v12 = vadd.f32 %v4672_v37, %v4608_v24  ;;  %v7826_v57 = vpop.f32.mrf.mxu0  ;;  %5283 = vrcp.f32 %v3605_v47 }
 0x5ad   : > { %3861 = vperm.xlu0 %4863, %v5274_v39   ;;  %v4674_v42 = vpop.f32.mrf.mxu1  ;;  %v3158_v11 = vpop.permute.xlu1 %3157  ;;  %5285 = vrcp.f32 %v3607_v20 }
 0x5ae   : > { %v3550_v53 = vadd.f32 %v3494_v12, %v3212_v56  ;;  %v7828_v36 = vpop.f32.mrf.mxu0  ;;  %v4675_v32 = vadd.f32 %v4674_v42, %v4673_v59  ;;  %v3215_v30 = vmul.f32 %v3158_v11, %v3119_v6  ;;  %v1625_v12 = vld [vmem:[#allocation4 + $0x70] sm:$0xff] }
 0x5af   : > { %v7830_v18 = vpop.f32.mrf.mxu1 }
 0x5b0   : > { %3566 = vst.msk [vmem:[#allocation4 + $0x90] sm:$0xff] %vm374_vm0, %v3550_v53  ;;  %v3497_v2 = vadd.f32 %v4675_v32, %v4611_v7  ;;  %v4615_v40 = vpop.f32.mrf.mxu0  ;;  %v3070_v58 = vpop.xlane.xlu0 %3069  ;;  %v3611_v53 = vld [vmem:[#allocation3 + $0x60] sm:$0xff] }
 0x5b1   : > { %v3094_v23 = vadd.f32 %v3070_v58, %v2998_v19  ;;  %v7834_v1 = vpop.f32.mrf.mxu1  ;;  %v3168_v43 = vpop.permute.xlu1 %3167 }
 0x5b2   : > { %v3551_v55 = vadd.f32 %v3497_v2, %v3213_v10  ;;  %v4616_v26 = vpop.f32.mrf.mxu0  ;;  %v3217_v32 = vmul.f32 %v3168_v43, %v3121_v41 }
 0x5b3   : > { %3110 = vst.msk [vmem:[#allocation3 + $0xe8] sm:$0xff] %vm309_vm1, %v3094_v23  ;;  %v4679_v35 = vpop.f32.mrf.mxu1  ;;  %v4617_v4 = vadd.f32 %v4616_v26, %v4615_v40  ;;  %v4669_v40 = vadd.f32 %v7823_v54, %v7821_v50  ;;  %v3613_v23 = vld [vmem:[#allocation3 + $0x70] sm:$0xff]  ;;  %v4605_v26 = vadd.f32 %v7819_v27, %v7817_v46  ;;  %v3602_v54 = vld [vmem:[#allocation3 + $0x18] sm:$0xff] }
 0x5b4   : > { %3567 = vst.msk [vmem:[#allocation4 + $0x98] sm:$0xff] %vm374_vm0, %v3551_v55  ;;  %v7838_v8 = vpop.f32.mrf.mxu0  ;;  %v3080_v48 = vpop.xlane.xlu0 %3079  ;;  %v3115_v55 = vld [vmem:[#allocation4 + $0x88] sm:$0xff] }
 0x5b5   : > { %v5276_v15 = vpop.eup %5275  ;;  %v3096_v16 = vadd.f32 %v3080_v48, %v3000_v51  ;;  %v4680_v33 = vpop.f32.mrf.mxu1  ;;  %v3489_v6 = vadd.f32 %v4669_v40, %v4605_v26 }
 0x5b6   : > { %3871 = vperm.xlu0 %4863, %v5276_v15   ;;  %v7841_v5 = vpop.f32.mrf.mxu0  ;;  %v4681_v62 = vadd.f32 %v4680_v33, %v4679_v35  ;;  %v5278_v14 = vpop.eup %5277  ;;  %v8470_v35 = vld [vmem:[#allocation70_spill] sm:$0xff]  ;;  %v3123_v33 = vld [vmem:[#allocation4 + $0xc8] sm:$0xff] }
 0x5b7   : > { %3112 = vst.msk [vmem:[#allocation3 + $0xf8] sm:$0xff] %vm309_vm1, %v3096_v16  ;;  %v7844_v22 = vpop.f32.mrf.mxu1  ;;  %v5280_v45 = vpop.eup %5279  ;;  %v4678_v16 = vadd.f32 %v7834_v1, %v7830_v18 }
 0x5b8   : > { %v4621_v13 = vpop.f32.mrf.mxu0  ;;  %v3505_v38 = vadd.f32 %v4681_v62, %v4617_v4  ;;  %v5282_v7 = vpop.eup %5281 }
 0x5b9   : > { %v7846_v29 = vpop.f32.mrf.mxu1  ;;  %v5284_v50 = vpop.eup %5283 }
 0x5ba   : > { %3649 = vperm.xlu0 %4863, %v5278_v14   ;;  %v4622_v34 = vpop.f32.mrf.mxu0  ;;  %v3764_v25 = vld [vmem:[#allocation3 + $0xe8] sm:$0xff]  ;;  %v3553_v60 = vadd.f32 %v3505_v38, %v3215_v30  ;;  %v3178_v11 = vpop.permute.xlu1 %3177  ;;  %v4614_v30 = vadd.f32 %v7828_v36, %v7826_v57  ;;  %v3120_v57 = vld [vmem:[#allocation4 + $0xb0] sm:$0xff] }
 0x5bb   : > { %5287 = vrcp.f32 %v3764_v25  ;;  %v4685_v28 = vpop.f32.mrf.mxu1  ;;  %v4623_v39 = vadd.f32 %v4622_v34, %v4621_v13  ;;  %v3118_v13 = vld [vmem:[#allocation4 + $0xa0] sm:$0xff]  ;;  %v5286_v14 = vpop.eup %5285  ;;  %v3604_v25 = vld [vmem:[#allocation3 + $0x28] sm:$0xff] }
 0x5bc   : > { %v7848_v17 = vpop.f32.mrf.mxu0  ;;  %3569 = vst.msk [vmem:[#allocation4 + $0xa8] sm:$0xff] %vm374_vm0, %v3553_v60  ;;  %v1690_v63 = vpop.permute.xlu0 %1689  ;;  %5289 = vrcp.f32 %v3609_v52  ;;  %v3219_v60 = vmul.f32 %v3178_v11, %v3123_v33  ;;  %v3612_v33 = vld [vmem:[#allocation3 + $0x68] sm:$0xff] }
 0x5bd   : > { %v1719_v24 = vmul.f32 %v1690_v63, %v1623_v31  ;;  %v4686_v37 = vpop.f32.mrf.mxu1 }
 0x5be   : > { %3659 = vperm.xlu0 %4863, %v5280_v45   ;;  %v7851_v0 = vpop.f32.mrf.mxu0  ;;  %v3766_v59 = vld [vmem:[#allocation3 + $0xf8] sm:$0xff]  ;;  %v4687_v56 = vadd.f32 %v4686_v37, %v4685_v28  ;;  %v3502_v28 = vadd.f32 %v4678_v16, %v4614_v30  ;;  %v4684_v45 = vadd.f32 %v7846_v29, %v7844_v22 }
 0x5bf   : > { %5291 = vrcp.f32 %v3766_v59  ;;  %v2153_v44 = vadd.f32 %v8469_v21, %v1719_v24  ;;  %v7854_v9 = vpop.f32.mrf.mxu1  ;;  %v4620_v24 = vadd.f32 %v7841_v5, %v7838_v8  ;;  %v3125_v29 = vld [vmem:[#allocation4 + $0xd8] sm:$0xff] }
 0x5c0   : > { %v4627_v42 = vpop.f32.mrf.mxu0  ;;  %v3513_v10 = vadd.f32 %v4687_v56, %v4623_v39  ;;  %v1700_v2 = vpop.permute.xlu0 %1699  ;;  %5293 = vrcp.f32 %v3600_v61 }
 0x5c1   : > { %2169 = vst.msk [vmem:[#allocation4 + $0x60] sm:$0xff] %vm374_vm0, %v2153_v44  ;;  %v1721_v19 = vmul.f32 %v1700_v2, %v1625_v12  ;;  %v4689_v58 = vpop.f32.mrf.mxu1  ;;  %5295 = vrcp.f32 %v3611_v53  ;;  %v3606_v12 = vld [vmem:[#allocation3 + $0x38] sm:$0xff]  ;;  %v3188_v61 = vpop.permute.xlu1 %3187  ;;  %v3510_v21 = vadd.f32 %v4684_v45, %v4620_v24  ;;  %v3122_v53 = vld [vmem:[#allocation4 + $0xc0] sm:$0xff] }
 0x5c2   : > { %3669 = vperm.xlu0 %4863, %v5282_v7   ;;  %v4628_v49 = vpop.f32.mrf.mxu0  ;;  %v3555_v3 = vadd.f32 %v3513_v10, %v3217_v32  ;;  %5297 = vrcp.f32 %v3613_v23  ;;  %v4690_v44 = vadd.f32 %v4689_v58, %v7854_v9  ;;  %v4626_v10 = vadd.f32 %v7851_v0, %v7848_v17 }
 0x5c3   : > { %v2155_v51 = vadd.f32 %v8470_v35, %v1721_v19  ;;  %v4691_v47 = vpop.f32.mrf.mxu1  ;;  %v4629_v62 = vadd.f32 %v4628_v49, %v4627_v42  ;;  %5299 = vrcp.f32 %v3602_v54  ;;  %v3608_v19 = vld [vmem:[#allocation3 + $0x48] sm:$0xff]  ;;  %v3221_v49 = vmul.f32 %v3188_v61, %v3125_v29  ;;  %v3124_v35 = vld [vmem:[#allocation4 + $0xd0] sm:$0xff] }
 0x5c4   : > { %v7862_v15 = vpop.f32.mrf.mxu0  ;;  %3571 = vst.msk [vmem:[#allocation4 + $0xb8] sm:$0xff] %vm374_vm0, %v3555_v3  ;;  %v3138_v48 = vpop.permute.xlu0 %3137  ;;  %5301 = vrcp.f32 %v3604_v25  ;;  %v3518_v58 = vadd.f32 %v4690_v44, %v4626_v10  ;;  %v3128_v61 = vld [vmem:[#allocation4 + $0xf0] sm:$0xff] }
 0x5c5   : > { %2171 = vst.msk [vmem:[#allocation4 + $0x70] sm:$0xff] %vm374_vm0, %v2155_v51  ;;  %v3211_v4 = vmul.f32 %v3138_v48, %v3115_v55  ;;  %v4692_v27 = vpop.f32.mrf.mxu1  ;;  %5303 = vrcp.f32 %v3606_v12 }
 0x5c6   : > { %3679 = vperm.xlu0 %4863, %v5284_v50   ;;  %v7868_v46 = vpop.f32.mrf.mxu0  ;;  %v4693_v20 = vadd.f32 %v4692_v27, %v4691_v47  ;;  %5305 = vrcp.f32 %v3608_v19  ;;  %v3610_v50 = vld [vmem:[#allocation3 + $0x58] sm:$0xff] }
 0x5c7   : > { %v3549_v38 = vadd.f32 %v3489_v6, %v3211_v4  ;;  %v4694_v18 = vpop.f32.mrf.mxu1  ;;  %v4632_v17 = vadd.f32 %v7868_v46, %v7862_v15  ;;  %5307 = vrcp.f32 %v3610_v50  ;;  %v3614_v4 = vld [vmem:[#allocation3 + $0x78] sm:$0xff] }
 0x5c8   : > { %v4633_v34 = vpop.f32.mrf.mxu0  ;;  %v5288_v1 = vpop.eup %5287  ;;  %v3521_v31 = vadd.f32 %v4693_v20, %v4629_v62  ;;  %5309 = vrcp.f32 %v3612_v33 }
 0x5c9   : > { %v3153_v52 = vpop.permute.xlu0 %3152  ;;  %3565 = vst.msk [vmem:[#allocation4 + $0x88] sm:$0xff] %vm374_vm0, %v3549_v38  ;;  %v4695_v63 = vpop.f32.mrf.mxu1  ;;  %3866 = vperm.xlu1 %4864, %v5288_v1   ;;  %5311 = vrcp.f32 %v3614_v4 }
 0x5ca   : > { %v3214_v43 = vmul.f32 %v3153_v52, %v3118_v13  ;;  %3689 = vperm.xlu0 %4863, %v5286_v14   ;;  %v3557_v41 = vadd.f32 %v3521_v31, %v3219_v60  ;;  %v5290_v36 = vpop.eup %5289  ;;  %v4634_v59 = vpop.f32.mrf.mxu0  ;;  %v4696_v55 = vadd.f32 %v4695_v63, %v4694_v18 }
 0x5cb   : > { %v4697_v39 = vpop.f32.mrf.mxu1  ;;  %v4635_v8 = vadd.f32 %v4634_v59, %v4633_v34  ;;  %v3126_v34 = vld [vmem:[#allocation4 + $0xe0] sm:$0xff]  ;;  %v3198_v52 = vpop.permute.xlu1 %3197 }
 0x5cc   : > { %v3552_v37 = vadd.f32 %v3502_v28, %v3214_v43  ;;  %v5292_v56 = vpop.eup %5291  ;;  %3573 = vst.msk [vmem:[#allocation4 + $0xc8] sm:$0xff] %vm374_vm0, %v3557_v41  ;;  %v3526_v11 = vadd.f32 %v4696_v55, %v4632_v17  ;;  %v3127_v41 = vld [vmem:[#allocation4 + $0xe8] sm:$0xff] }
 0x5cd   : > { %v3163_v22 = vpop.permute.xlu0 %3162  ;;  %v4698_v7 = vpop.f32.mrf.mxu1  ;;  %3876 = vperm.xlu1 %4864, %v5292_v56   ;;  %v3223_v56 = vmul.f32 %v3198_v52, %v3127_v41 }
 0x5ce   : > { %3568 = vst.msk [vmem:[#allocation4 + $0xa0] sm:$0xff] %vm374_vm0, %v3552_v37  ;;  %v3216_v42 = vmul.f32 %v3163_v22, %v3120_v57  ;;  %3699 = vperm.xlu0 %4863, %v5290_v36   ;;  %v4699_v5 = vadd.f32 %v4698_v7, %v4697_v39  ;;  %v5294_v32 = vpop.eup %5293 }
 0x5cf   : > { %v5296_v40 = vpop.eup %5295 }
 0x5d0   : > { %v3554_v2 = vadd.f32 %v3510_v21, %v3216_v42  ;;  %v3529_v3 = vadd.f32 %v4699_v5, %v4635_v8  ;;  %v5298_v51 = vpop.eup %5297 }
 0x5d1   : > { %v3173_v9 = vpop.permute.xlu0 %3172  ;;  %3654 = vperm.xlu1 %4864, %v5294_v32   ;;  %v5300_v47 = vpop.eup %5299 }
 0x5d2   : > { %3570 = vst.msk [vmem:[#allocation4 + $0xb0] sm:$0xff] %vm374_vm0, %v3554_v2  ;;  %v3218_v23 = vmul.f32 %v3173_v9, %v3122_v53  ;;  %3709 = vperm.xlu0 %4863, %v5296_v40   ;;  %v3559_v26 = vadd.f32 %v3529_v3, %v3221_v49  ;;  %v5302_v16 = vpop.eup %5301  ;;  %v3129_v2 = vld [vmem:[#allocation4 + $0xf8] sm:$0xff]  ;;  %v3208_v40 = vpop.permute.xlu1 %3207 }
 0x5d3   : > { %v5304_v15 = vpop.eup %5303  ;;  %v3225_v9 = vmul.f32 %v3208_v40, %v3129_v2  ;;  %v3792_v52 = vld [vmem:[#allocation4 + $0xc8] sm:$0xff] }
 0x5d4   : > { %v3556_v0 = vadd.f32 %v3518_v58, %v3218_v23  ;;  %3575 = vst.msk [vmem:[#allocation4 + $0xd8] sm:$0xff] %vm374_vm0, %v3559_v26  ;;  %v5306_v46 = vpop.eup %5305  ;;  %v3783_v26 = vld [vmem:[#allocation4 + $0x80] sm:$0xff] }
 0x5d5   : > { %v3183_v54 = vpop.permute.xlu0 %3182  ;;  %3664 = vperm.xlu1 %4864, %v5300_v47   ;;  %v5308_v27 = vpop.eup %5307  ;;  %v3787_v4 = vld [vmem:[#allocation4 + $0xa0] sm:$0xff] }
 0x5d6   : > { %3572 = vst.msk [vmem:[#allocation4 + $0xc0] sm:$0xff] %vm374_vm0, %v3556_v0  ;;  %v3220_v48 = vmul.f32 %v3183_v54, %v3124_v35  ;;  %3719 = vperm.xlu0 %4863, %v5298_v51   ;;  %v5310_v38 = vpop.eup %5309  ;;  %v3784_v51 = vld [vmem:[#allocation4 + $0x88] sm:$0xff]  ;;  %v3785_v54 = vld [vmem:[#allocation4 + $0x90] sm:$0xff] }
 0x5d7   : > { %v5312_v63 = vpop.eup %5311 }
 0x5d8   : > { %v3558_v6 = vadd.f32 %v3526_v11, %v3220_v48  ;;  %v3786_v11 = vld [vmem:[#allocation4 + $0x98] sm:$0xff] }
 0x5d9   : > { %3674 = vperm.xlu1 %4864, %v5302_v16   ;;  %v3193_v14 = vpop.permute.xlu0 %3192 }
 0x5da   : > { %3574 = vst.msk [vmem:[#allocation4 + $0xd0] sm:$0xff] %vm374_vm0, %v3558_v6  ;;  %v3222_v28 = vmul.f32 %v3193_v14, %v3126_v34 }
 0x5dd   : > { %3684 = vperm.xlu1 %4864, %v5304_v15   ;;  %v3203_v12 = vpop.permute.xlu0 %3202 }
 0x5de   : > { %v3224_v53 = vmul.f32 %v3203_v12, %v3128_v61 }
 0x5e1   : > { %3694 = vperm.xlu1 %4864, %v5306_v46   ;;  %v3788_v46 = vld [vmem:[#allocation4 + $0xa8] sm:$0xff] }
 0x5e4   : > { %v4636_v62 = vpop.f32.mrf.mxu0 }
 0x5e5   : > { %3704 = vperm.xlu1 %4864, %v5308_v27  }
 0x5e6   : > { %v4700_v20 = vpop.f32.mrf.mxu1  ;;  %v4637_v13 = vpop.f32.mrf.mxu0 }
 0x5e7   : > { %v4638_v30 = vadd.f32 %v4637_v13, %v4636_v62 }
 0x5e8   : > { %v4701_v18 = vpop.f32.mrf.mxu1  ;;  %v4639_v1 = vpop.f32.mrf.mxu0 }
 0x5e9   : > { %v4702_v25 = vadd.f32 %v4701_v18, %v4700_v20  ;;  %3714 = vperm.xlu1 %4864, %v5310_v38   ;;  %v3790_v38 = vld [vmem:[#allocation4 + $0xb8] sm:$0xff] }
 0x5ea   : > { %v4703_v60 = vpop.f32.mrf.mxu1  ;;  %v4640_v31 = vpop.f32.mrf.mxu0 }
 0x5eb   : > { %v3534_v45 = vadd.f32 %v4702_v25, %v4638_v30  ;;  %v4641_v43 = vadd.f32 %v4640_v31, %v4639_v1  ;;  %v3789_v30 = vld [vmem:[#allocation4 + $0xb0] sm:$0xff]  ;;  %v3791_v31 = vld [vmem:[#allocation4 + $0xc0] sm:$0xff] }
 0x5ec   : > { %v4704_v57 = vpop.f32.mrf.mxu1  ;;  %v4642_v36 = vpop.f32.mrf.mxu0 }
 0x5ed   : > { %v3560_v24 = vadd.f32 %v3534_v45, %v3222_v28  ;;  %v4705_v37 = vadd.f32 %v4704_v57, %v4703_v60  ;;  %3724 = vperm.xlu1 %4864, %v5312_v63   ;;  %v3793_v57 = vld [vmem:[#allocation4 + $0xd0] sm:$0xff] }
 0x5ee   : > { %v4706_v59 = vpop.f32.mrf.mxu1  ;;  %v4643_v39 = vpop.f32.mrf.mxu0 }
 0x5ef   : > { %3576 = vst.msk [vmem:[#allocation4 + $0xe0] sm:$0xff] %vm374_vm0, %v3560_v24  ;;  %v3537_v22 = vadd.f32 %v4705_v37, %v4641_v43  ;;  %v4644_v29 = vadd.f32 %v4643_v39, %v4642_v36  ;;  %v3794_v36 = vld [vmem:[#allocation4 + $0xd8] sm:$0xff] }
 0x5f0   : > { %v4707_v21 = vpop.f32.mrf.mxu1  ;;  %v4645_v44 = vpop.f32.mrf.mxu0 }
 0x5f1   : > { %v3561_v42 = vadd.f32 %v3537_v22, %v3223_v56  ;;  %v4708_v7 = vadd.f32 %v4707_v21, %v4706_v59 }
 0x5f2   : > { %v4709_v8 = vpop.f32.mrf.mxu1  ;;  %v4646_v5 = vpop.f32.mrf.mxu0 }
 0x5f3   : > { %3577 = vst.msk [vmem:[#allocation4 + $0xe8] sm:$0xff] %vm374_vm0, %v3561_v42  ;;  %v3542_v32 = vadd.f32 %v4708_v7, %v4644_v29  ;;  %v4647_v10 = vadd.f32 %v4646_v5, %v4645_v44 }
 0x5f4   : > { %v4710_v19 = vpop.f32.mrf.mxu1 }
 0x5f5   : > { %v3562_v49 = vadd.f32 %v3542_v32, %v3224_v53  ;;  %v4711_v3 = vadd.f32 %v4710_v19, %v4709_v8 }
 0x5f6   : > { %v3795_v61 = vld [vmem:[#allocation4 + $0xe0] sm:$0xff] }
 0x5f7   : > { %3578 = vst.msk [vmem:[#allocation4 + $0xf0] sm:$0xff] %vm374_vm0, %v3562_v49  ;;  %v3545_v58 = vadd.f32 %v4711_v3, %v4647_v10 }
 0x5f8   : > { %v3802_v23 = vpop.permute.xlu0 %3801 }
 0x5f9   : > { %v3563_v55 = vadd.f32 %v3545_v58, %v3225_v9  ;;  %v3879_v17 = vmul.f32 %v3802_v23, %v3783_v26 }
 0x5fa   : > { %v3796_v21 = vld [vmem:[#allocation4 + $0xe8] sm:$0xff] }
 0x5fb   : > { %3579 = vst.msk [vmem:[#allocation4 + $0xf8] sm:$0xff] %vm374_vm0, %v3563_v55 }
 0x5fd   : > { %v3807_v35 = vpop.permute.xlu1 %3806 }
 0x5fe   : > { %v3880_v0 = vmul.f32 %v3807_v35, %v3784_v51  ;;  %v3797_v5 = vld [vmem:[#allocation4 + $0xf0] sm:$0xff] }
 0x600   : > { %v3895_v47 = vpack.c.bf16 %v3880_v0, %v3879_v17  ;;  %v3812_v50 = vpop.permute.xlu0 %3811  ;;  %v3643_v0 = vld [vmem:[#allocation4 + $0x60] sm:$0xff] }
 0x601   : > { %v3881_v6 = vmul.f32 %v3812_v50, %v3785_v54 }
 0x602   : > { %3911 = vrot.lane.b32.xlu0 %v3895_v47, %s5565_s23  ;;  %v3798_v32 = vld [vmem:[#allocation4 + $0xf8] sm:$0xff]  ;;  %v3644_v47 = vld [vmem:[#allocation4 + $0x68] sm:$0xff] }
 0x605   : > { %v3817_v48 = vpop.permute.xlu1 %3816 }
 0x606   : > { %v3882_v16 = vmul.f32 %v3817_v48, %v3786_v11 }
 0x607   : > { %v3822_v15 = vpop.permute.xlu0 %3821 }
 0x608   : > { %v3896_v33 = vpack.c.bf16 %v3882_v16, %v3881_v6  ;;  %v3883_v62 = vmul.f32 %v3822_v15, %v3787_v4  ;;  %v3645_v16 = vld [vmem:[#allocation4 + $0x70] sm:$0xff] }
 0x60a   : > { %3913 = vrot.lane.b32.xlu1 %v3896_v33, %s5565_s23  ;;  %v3646_v33 = vld [vmem:[#allocation4 + $0x78] sm:$0xff] }
 0x60d   : > { %v3827_v27 = vpop.permute.xlu1 %3826 }
 0x60e   : > { %v3884_v20 = vmul.f32 %v3827_v27, %v3788_v46 }
 0x610   : > { %v3897_v13 = vpack.c.bf16 %v3884_v20, %v3883_v62  ;;  %v3832_v14 = vpop.permute.xlu0 %3831  ;;  %v3632_v62 = vld [vmem:[#allocation4 + $0x8] sm:$0xff] }
 0x611   : > { %v3885_v18 = vmul.f32 %v3832_v14, %v3789_v30 }
 0x612   : > { %3915 = vrot.lane.b32.xlu0 %v3897_v13, %s5565_s23  ;;  %v3631_v13 = vld [vmem:[#allocation4] sm:$0xff] }
 0x615   : > { %v3837_v34 = vpop.permute.xlu1 %3836 }
 0x616   : > { %v3886_v1 = vmul.f32 %v3837_v34, %v3790_v38 }
 0x618   : > { %v3898_v25 = vpack.c.bf16 %v3886_v1, %v3885_v18  ;;  %v3842_v60 = vpop.permute.xlu0 %3841  ;;  %v3634_v18 = vld [vmem:[#allocation4 + $0x18] sm:$0xff] }
 0x619   : > { %v3887_v45 = vmul.f32 %v3842_v60, %v3791_v31  ;;  %v3633_v31 = vld [vmem:[#allocation4 + $0x10] sm:$0xff] }
 0x61a   : > { %3917 = vrot.lane.b32.xlu1 %v3898_v25, %s5565_s23 }
 0x61c   : > { %v3847_v28 = vpop.permute.xlu1 %3846 }
 0x61d   : > { %v3888_v43 = vmul.f32 %v3847_v28, %v3792_v52 }
 0x61f   : > { %v3899_v63 = vpack.c.bf16 %v3888_v43, %v3887_v45 }
 0x620   : > { %v3852_v41 = vpop.permute.xlu0 %3851 }
 0x621   : > { %3919 = vrot.lane.b32.xlu0 %v3899_v63, %s5565_s23  ;;  %v3889_v37 = vmul.f32 %v3852_v41, %v3793_v57  ;;  %v3636_v63 = vld [vmem:[#allocation4 + $0x28] sm:$0xff] }
 0x624   : > { %v3857_v24 = vpop.permute.xlu1 %3856 }
 0x625   : > { %v3890_v59 = vmul.f32 %v3857_v24, %v3794_v36  ;;  %v3635_v24 = vld [vmem:[#allocation4 + $0x20] sm:$0xff] }
 0x627   : > { %v3900_v39 = vpack.c.bf16 %v3890_v59, %v3889_v37 }
 0x628   : > { %v3862_v56 = vpop.permute.xlu0 %3861 }
 0x629   : > { %3921 = vrot.lane.b32.xlu1 %v3900_v39, %s5565_s23  ;;  %v3891_v42 = vmul.f32 %v3862_v56, %v3795_v61 }
 0x631   : > { %v3872_v12 = vpop.permute.xlu0 %3871 }
 0x632   : > { %v3893_v2 = vmul.f32 %v3872_v12, %v3797_v5  ;;  %v3638_v12 = vld [vmem:[#allocation4 + $0x38] sm:$0xff] }
 0x635   : > { %v3650_v22 = vpop.permute.xlu0 %3649 }
 0x636   : > { %v3727_v14 = vmul.f32 %v3650_v22, %v3631_v13 }
 0x639   : > { %v3660_v29 = vpop.permute.xlu0 %3659 }
 0x63a   : > { %v3729_v52 = vmul.f32 %v3660_v29, %v3633_v31 }
 0x63d   : > { %v3670_v53 = vpop.permute.xlu0 %3669 }
 0x63e   : > { %v3731_v37 = vmul.f32 %v3670_v53, %v3635_v24 }
 0x641   : > { %v3680_v3 = vpop.permute.xlu0 %3679 }
 0x644   : > { %v3867_v44 = vpop.permute.xlu1 %3866 }
 0x645   : > { %v3892_v7 = vmul.f32 %v3867_v44, %v3796_v21  ;;  %v7900_v58 = vpop.permute.xlu0 %3689  ;;  %v3637_v21 = vld [vmem:[#allocation4 + $0x30] sm:$0xff] }
 0x646   : > { %v3733_v44 = vmul.f32 %v3680_v3, %v3637_v21 }
 0x647   : > { %v3901_v8 = vpack.c.bf16 %v3892_v7, %v3891_v42  ;;  %v3640_v7 = vld [vmem:[#allocation4 + $0x48] sm:$0xff] }
 0x648   : > { %v3877_v10 = vpop.permute.xlu1 %3876 }
 0x649   : > { %v3894_v40 = vmul.f32 %v3877_v10, %v3798_v32  ;;  %3923 = vrot.lane.b32.xlu0 %v3901_v8, %s5565_s23  ;;  %v7902_v26 = vpop.permute.xlu0 %3699  ;;  %v3639_v32 = vld [vmem:[#allocation4 + $0x40] sm:$0xff] }
 0x64b   : > { %v3902_v19 = vpack.c.bf16 %v3894_v40, %v3893_v2  ;;  %v3735_v40 = vmul.f32 %v7900_v58, %v3639_v32 }
 0x64c   : > { %v3655_v49 = vpop.permute.xlu1 %3654 }
 0x64d   : > { %3925 = vrot.lane.b32.xlu1 %v3902_v19, %s5565_s23  ;;  %v3710_v51 = vpop.permute.xlu0 %3709  ;;  %v3728_v20 = vmul.f32 %v3655_v49, %v3632_v62 }
 0x64e   : > { %v7906_v54 = vmul.f32 %v3710_v51, %v3643_v0  ;;  %v3641_v51 = vld [vmem:[#allocation4 + $0x50] sm:$0xff] }
 0x64f   : > { %v3743_v30 = vpack.c.bf16 %v3728_v20, %v3727_v14  ;;  %v3737_v58 = vmul.f32 %v7902_v26, %v3641_v51 }
 0x650   : > { %v3665_v9 = vpop.permute.xlu1 %3664 }
 0x651   : > { %v3720_v48 = vpop.permute.xlu0 %3719  ;;  %v3730_v60 = vmul.f32 %v3665_v9, %v3634_v18  ;;  %v3642_v9 = vld [vmem:[#allocation4 + $0x58] sm:$0xff] }
 0x652   : > { %v7912_v4 = vmul.f32 %v3720_v48, %v3645_v16 }
 0x653   : > { %v3744_v28 = vpack.c.bf16 %v3730_v60, %v3729_v52 }
 0x654   : > { %v3675_v55 = vpop.permute.xlu1 %3674 }
 0x655   : > { %v3732_v36 = vmul.f32 %v3675_v55, %v3636_v63 }
 0x657   : > { %v3745_v59 = vpack.c.bf16 %v3732_v36, %v3731_v37 }
 0x658   : > { %v3685_v23 = vpop.permute.xlu1 %3684 }
 0x659   : > { %v3734_v61 = vmul.f32 %v3685_v23, %v3638_v12 }
 0x65b   : > { %v3746_v42 = vpack.c.bf16 %v3734_v61, %v3733_v44 }
 0x65c   : > { %v3695_v35 = vpop.permute.xlu1 %3694 }
 0x65d   : > { %v3736_v5 = vmul.f32 %v3695_v35, %v3640_v7 }
 0x65f   : > { %v3747_v19 = vpack.c.bf16 %v3736_v5, %v3735_v40 }
 0x660   : > { %v7904_v17 = vpop.permute.xlu1 %3704 }
 0x661   : > { %v3738_v35 = vmul.f32 %v7904_v17, %v3642_v9 }
 0x663   : > { %v3748_v0 = vpack.c.bf16 %v3738_v35, %v3737_v58 }
 0x664   : > { %v3715_v50 = vpop.permute.xlu1 %3714 }
 0x665   : > { %v7908_v11 = vmul.f32 %v3715_v50, %v3644_v47 }
 0x667   : > { %v3749_v6 = vpack.c.bf16 %v7908_v11, %v7906_v54 }
 0x668   : > { %v3725_v15 = vpop.permute.xlu1 %3724 }
 0x669   : > { %v7914_v46 = vmul.f32 %v3725_v15, %v3646_v33 }
 0x66b   : > { %v3750_v27 = vpack.c.bf16 %v7914_v46, %v7912_v4 }
 0x674   : > { %v3912_v38 = vpop.permute.xlu0 %3911 }
 0x675   : > { %v3929_v34 = vsel %vm374_vm0, %v3743_v30, %v3912_v38 }
 0x676   : > { %v4304_v1 = vcombine.low %v3929_v34, %v3929_v34  ;;  %v4305_v25 = vcombine.high %v3929_v34, %v3929_v34 }
 0x678   : > { %4007 = vst [vmem:[%s7921_s13] sm:$0xf] %v4304_v1  ;;  %4008 = vst [vmem:[%s7921_s13 + $0x4] sm:$0xf] %v4305_v25 }
 0x67c   : > { %v3914_v45 = vpop.permute.xlu1 %3913 }
 0x67d   : > { %v3932_v43 = vsel %vm374_vm0, %v3744_v28, %v3914_v45 }
 0x67e   : > { %v4306_v41 = vcombine.low %v3932_v43, %v3932_v43  ;;  %v4307_v57 = vcombine.high %v3932_v43, %v3932_v43 }
 0x680   : > { %4009 = vst [vmem:[%s7921_s13 + $0x8] sm:$0xf] %v4306_v41  ;;  %4010 = vst [vmem:[%s7921_s13 + $0xc] sm:$0xf] %v4307_v57 }
 0x684   : > { %v3916_v39 = vpop.permute.xlu0 %3915 }
 0x685   : > { %v3935_v56 = vsel %vm374_vm0, %v3745_v59, %v3916_v39 }
 0x686   : > { %v4308_v22 = vcombine.low %v3935_v56, %v3935_v56  ;;  %v4309_v29 = vcombine.high %v3935_v56, %v3935_v56 }
 0x688   : > { %4011 = vst [vmem:[%s7921_s13 + $0x10] sm:$0xf] %v4308_v22  ;;  %4012 = vst [vmem:[%s7921_s13 + $0x14] sm:$0xf] %v4309_v29 }
 0x68c   : > { %v3918_v8 = vpop.permute.xlu1 %3917 }
 0x68d   : > { %v3938_v53 = vsel %vm374_vm0, %v3746_v42, %v3918_v8 }
 0x68e   : > { %v4310_v10 = vcombine.low %v3938_v53, %v3938_v53  ;;  %v4311_v2 = vcombine.high %v3938_v53, %v3938_v53 }
 0x690   : > { %4013 = vst [vmem:[%s7921_s13 + $0x18] sm:$0xf] %v4310_v10  ;;  %4014 = vst [vmem:[%s7921_s13 + $0x1c] sm:$0xf] %v4311_v2 }
 0x693   : > { %v3920_v49 = vpop.permute.xlu0 %3919 }
 0x694   : > { %v3941_v3 = vsel %vm374_vm0, %v3747_v19, %v3920_v49 }
 0x695   : > { %v4312_v55 = vcombine.low %v3941_v3, %v3941_v3  ;;  %v4313_v23 = vcombine.high %v3941_v3, %v3941_v3 }
 0x697   : > { %4015 = vst [vmem:[%s7921_s13 + $0x20] sm:$0xf] %v4312_v55  ;;  %4016 = vst [vmem:[%s7921_s13 + $0x24] sm:$0xf] %v4313_v23 }
 0x69b   : > { %v3922_v47 = vpop.permute.xlu1 %3921 }
 0x69c   : > { %v3944_v50 = vsel %vm374_vm0, %v3748_v0, %v3922_v47 }
 0x69d   : > { %v4314_v48 = vcombine.low %v3944_v50, %v3944_v50  ;;  %v4315_v16 = vcombine.high %v3944_v50, %v3944_v50 }
 0x69f   : > { %4017 = vst [vmem:[%s7921_s13 + $0x28] sm:$0xf] %v4314_v48  ;;  %4018 = vst [vmem:[%s7921_s13 + $0x2c] sm:$0xf] %v4315_v16 }
 0x6bb   : > { %v3924_v17 = vpop.permute.xlu0 %3923 }
 0x6bc   : > { %v3947_v26 = vsel %vm374_vm0, %v3749_v6, %v3924_v17 }
 0x6bd   : > { %v4316_v33 = vcombine.low %v3947_v26, %v3947_v26  ;;  %v4317_v15 = vcombine.high %v3947_v26, %v3947_v26 }
 0x6bf   : > { %4019 = vst [vmem:[%s7921_s13 + $0x30] sm:$0xf] %v4316_v33  ;;  %4020 = vst [vmem:[%s7921_s13 + $0x34] sm:$0xf] %v4317_v15  ;;  %v3926_v62 = vpop.permute.xlu1 %3925 }
 0x6c0   : > { %v3950_v20 = vsel %vm374_vm0, %v3750_v27, %v3926_v62 }
 0x6c1   : > { %v4318_v54 = vcombine.low %v3950_v20, %v3950_v20  ;;  %v4319_v11 = vcombine.high %v3950_v20, %v3950_v20 }
 0x6c3   : > { %4021 = vst [vmem:[%s7921_s13 + $0x38] sm:$0xf] %v4318_v54  ;;  %4022 = vst [vmem:[%s7921_s13 + $0x3c] sm:$0xf] %v4319_v11 }
 0x6c4   : > { %5444 = shalt.err (!%p5441_p2)
}
 0x6c5   : > { %s5445_s18 = scalar_lea.hbm %s7961_s9, 1024  ;;  %s5449_s19 = scalar_lea.hbm %s8474_s8, 8192 }
 0x6c6   : > { %p5446_p4 = scmp.ne.s32.totalorder %s7961_s9, %s5445_s18  ;;  %p5450_p0 = scmp.lt.s32.totalorder %s7961_s9, %s8474_s8 }
 0x6c7   : > { %p5451_p3 = scmp.lt.s32.totalorder %s5449_s19, %s5445_s18 }
 0x6c8   : > { %p5447_p11 = pnand %p5446_p4, %p8475_p7 }
 0x6c9   : > { %p5452_p1 = por %p5451_p3, %p5450_p0 }
 0x6ca   : > { %p5448_p5 = pneg %p5447_p11 }
 0x6cc   : > { %p5453_p6 = pnand %p5452_p1, %p5448_p5 }
 0x6ce   : > { %5456 = shalt.err (!%p5453_p6)
}
 0x6cf   : > { %s5567_s4 = smov 4  }
 0x6d0   : > { %4750 = dma.vmem_to_hbm [thread:$0]  (%p8475_p7), %s7956_s27, 1024, %s7961_s9, %s4024_s10, %s5565_s23, %s5565_s23, %s5567_s4  }
 0x6d1 PF: > { %s8476_s26 = sld [smem:[#allocation16_spill]]  ;;  %p4767_p8 = scmp.ge.s32.totalorder %s5555_s22, 2 }
 0x6d2   : > { %s8477_s1 = sld [smem:[#allocation23_spill]] }
 0x6d7   : > { %s4054_s28 = sand.u32 1, %s8476_s26  }
 0x6d8   : > { %p8478_p10 = scmp.ne.s32.totalorder %s8477_s1, 0  ;;  %s4055_s2 = scalar_lea.sflag [#allocation7], %s4054_s28 }
 0x6da   : > { %p4763_p9 = pnand %p4767_p8, %p8478_p10 }
 0x6dc   : > { %p4764_p13 = pneg %p4763_p9 }
 0x6de   : > { %5510 = dma.done.wait (%p4764_p13), %s4055_s2, 1024  }
 0x6df   : > { %5512 = vsyncadd (%p4764_p13), %s4055_s2, 4294966272  ;;  %s22_s22 = sadd.s32 1, %s5555_s22   ;;  %s8479_s12 = sld [smem:[#allocation15_spill]] }
 0x6e0   : > { %p19_p12 = scmp.ge.s32.totalorder %s22_s22, 10   ;;  %s8480_s25 = sld [smem:[#allocation20_spill]] }
 0x6e1   : > { %s8481_s23 = sld [smem:[#allocation22_spill]]  ;;  %s8482_s13 = smov %s5523_s14 }
 0x6e2   : > { %s8483_s14 = smov %s5749_s3  ;;  %s8484_s15 = smov %s5531_s16 }
 0x6e3   : > { %s8485_s16 = smov %s5535_s17  ;;  %s8486_s17 = smov %s5752_s24 }
 0x6e4   : > { %s8487_s18 = smov %s5547_s20  ;;  %s8488_s19 = smov %s5551_s21 }
 0x6e5   :  { %21 = sbr.rel (!%p19_p12) target bundleno = 15 (0xf), region = 112 }
 0x6e6   : > { %s8489_s20 = smov %s8480_s25 }
 0x6e7   : > { %s8490_s21 = smov %s8481_s23 }
 0x6ea   :  { %4060 = vsyncpa [#allocation6], 1 }
 0x6eb   :  { %4062 = vsyncpa [#allocation6 + $0x1], 1 }
 0x6ec   :  { %4063 = vsyncpa [#allocation9], 1 }
 0x6ed   :  { %4065 = vsyncpa [#allocation9 + $0x1], 1 }
 0x6ee   :  { %4066 = vsyncpa [#allocation7], 1 }
 0x6ef   :  { %4068 = vsyncpa [#allocation7 + $0x1], 1 }

</bundles_post_ra>
